<compile_context>
chip_gen: v7x
topology: tpu7x:2x2x1
jax: 0.10.0
libtpu: 0.0.40
codegen_flags: <defaults>
</compile_context>

<pallas_src>
import math

import numpy as np

import jax
import jax.numpy as jnp
from jax.experimental import pallas as pl
from jax.experimental.pallas import tpu as pltpu


# --------------------------------------------------------------------------
# Activation helper (tanh-approx GELU: one EUP op + a few VALU ops).
# --------------------------------------------------------------------------
_SQRT_2_OVER_PI = 0.7978845608028654


def _gelu(x):
    return 0.5 * x * (1.0 + jnp.tanh(_SQRT_2_OVER_PI * (x + 0.044715 * x * x * x)))


# --------------------------------------------------------------------------
# In-kernel depthwise "same" convs on flattened [C, H*W] activations.
# Shifts are XLU lane rolls of the flattened H*W axis; out-of-image lanes are
# killed either by pre-masked weight planes (static conv) or by explicit
# border masks (dynamic conv).
# --------------------------------------------------------------------------
def _dw_conv_premasked(v, wp_ref, *, K, W, HW):
    """wp_ref: [K*K, C, HW] per-tap (weight x border-mask) planes."""
    pad = K // 2
    acc = jnp.zeros_like(v)
    for ky in range(K):
        for kx in range(K):
            t = ky * K + kx
            d = (ky - pad) * W + (kx - pad)          # flattened source offset
            shifted = v if d == 0 else pltpu.roll(v, shift=(-d) % HW, axis=1)
            acc = acc + shifted * wp_ref[t]
    return acc


def _dw_conv_dynamic(v, taps, mask_ref, *, K, W, HW):
    """taps: [C, K*K] in-kernel dynamic weights; mask_ref: [K*K, HW] 0/1."""
    pad = K // 2
    acc = jnp.zeros_like(v)
    for ky in range(K):
        for kx in range(K):
            t = ky * K + kx
            d = (ky - pad) * W + (kx - pad)
            shifted = v if d == 0 else pltpu.roll(v, shift=(-d) % HW, axis=1)
            acc = acc + (shifted * mask_ref[t:t + 1, :]) * taps[:, t:t + 1]
    return acc


# --------------------------------------------------------------------------
# The single fused kernel: one grid step == one batch element.
# --------------------------------------------------------------------------
def _make_luky_kernel(C, H, W):
    HW = H * W

    def kernel(x_ref,
               fc1_w_ref, fc1_s_ref, fc1_t_ref,
               ms_wp_ref, ms_b_ref, nrm_s_ref, nrm_t_ref,
               fc2_w_ref, fc2_b_ref,
               pool_w_ref, mask3_ref,
               pm1_w_ref, pm1_b_ref, pm2_w_ref, pm2_b_ref,
               dyn_w0_ref, dyn_w1_ref, dyn_b0_ref, dyn_b1_ref,
               se_w1t_ref, se_w2_ref,
               o_ref):
        x = x_ref[0]                                     # [C, HW] (residual)

        # ---------------- Mlp_1.fc1 : 1x1 conv -> GELU -> BN ----------------
        h = jnp.dot(fc1_w_ref[...], x, preferred_element_type=jnp.float32)
        h = _gelu(h) * fc1_s_ref[...] + fc1_t_ref[...]

        # ---- Mlp_1 : multiscale depthwise (+bias) + x -> GELU -> BN ----
        dw = _dw_conv_premasked(h, ms_wp_ref, K=7, W=W, HW=HW)
        dw = _gelu(dw + ms_b_ref[...] + h)
        dw = dw * nrm_s_ref[...] + nrm_t_ref[...]

        # ---------------- Mlp_1.fc2 : 1x1 conv -> BN (folded) ----------------
        m = jnp.dot(fc2_w_ref[...], dw, preferred_element_type=jnp.float32)
        m = m + fc2_b_ref[...]

        # ------- DynamicConv2d : group-attention weight / bias generation ----
        # cols 0..8: adaptive 3x3 avg-pool bins (PyTorch edges), col 9: global mean
        pooled = jnp.dot(m, pool_w_ref[...], preferred_element_type=jnp.float32)  # [C,10]
        z = jnp.dot(pm1_w_ref[...], pooled, preferred_element_type=jnp.float32)   # [Cr,10]
        z = _gelu(z + pm1_b_ref[...])               # ConvModule conv->BN(folded)->GELU
        z = jnp.dot(pm2_w_ref[...], z, preferred_element_type=jnp.float32)
        z = z + pm2_b_ref[...]                      # [2C, 10]
        # softmax over the 2 groups == sigmoid of the logit difference
        s_w = jax.nn.sigmoid(z[:C, :9] - z[C:, :9])                     # [C, 9]
        s_b = jax.nn.sigmoid(z[:C, 9:] - z[C:, 9:])                     # [C, 1]
        w_dyn = s_w * dyn_w0_ref[...] + (1.0 - s_w) * dyn_w1_ref[...]   # [C, 9]
        b_dyn = s_b * dyn_b0_ref[...] + (1.0 - s_b) * dyn_b1_ref[...]   # [C, 1]

        # ---------- per-sample dynamic 3x3 depthwise conv ----------
        idc = _dw_conv_dynamic(m, w_dyn, mask3_ref, K=3, W=W, HW=HW) + b_dyn

        # ---------- SEAttention -> sigmoid -> + residual ----------
        # (tiny matvecs kept on the VPU via broadcast + axis reductions)
        pse = jnp.mean(idc, axis=1, keepdims=True)                         # [C, 1]
        h1 = jnp.maximum(
            jnp.sum(se_w1t_ref[...] * pse, axis=0, keepdims=True), 0.0)    # [1, C//8]
        gate = jax.nn.sigmoid(
            jnp.sum(se_w2_ref[...] * h1, axis=1, keepdims=True))           # [C, 1]
        o_ref[0] = jax.nn.sigmoid(idc * gate) + x

    return kernel


# --------------------------------------------------------------------------
# Host-side constant builders (one-time).
# --------------------------------------------------------------------------
def _build_dw_masks(H, W, K):
    """[K*K, H*W] 0/1 validity masks for 'same' padding, tap order ky*K+kx."""
    pad = K // 2
    yy, xx = np.meshgrid(np.arange(H), np.arange(W), indexing="ij")
    yy = yy.reshape(-1)
    xx = xx.reshape(-1)
    rows = []
    for ky in range(K):
        for kx in range(K):
            dy, dx = ky - pad, kx - pad
            valid = ((yy + dy >= 0) & (yy + dy < H) &
                     (xx + dx >= 0) & (xx + dx < W))
            rows.append(valid.astype(np.float32))
    return np.stack(rows, axis=0).astype(np.float32)


def _build_pool_weights(H, W, out_hw=3):
    """[H*W, out_hw*out_hw + 1]: adaptive avg-pool bin weights + global mean."""
    yy, xx = np.meshgrid(np.arange(H), np.arange(W), indexing="ij")
    yy = yy.reshape(-1)
    xx = xx.reshape(-1)

    def edges(n, m, i):                 # PyTorch adaptive-pool bin edges
        return (i * n) // m, -(-((i + 1) * n) // m)

    cols = []
    for by in range(out_hw):
        ys, ye = edges(H, out_hw, by)
        for bx in range(out_hw):
            xs, xe = edges(W, out_hw, bx)
            sel = ((yy >= ys) & (yy < ye) & (xx >= xs) & (xx < xe)).astype(np.float32)
            cols.append(sel / sel.sum())
    cols.append(np.full(H * W, 1.0 / (H * W), np.float32))
    return np.stack(cols, axis=1).astype(np.float32)


# --------------------------------------------------------------------------
# Deterministic synthetic parameters (shapes follow the module __init__).
# All per-channel vectors are stored as [C, 1] (channels on sublanes).
# --------------------------------------------------------------------------
def init_params(key, C):
    keys = iter(jax.random.split(key, 24))

    def nrm(shape, std=0.1):
        return (std * jax.random.normal(next(keys), shape)).astype(jnp.float32)

    eps = 1e-5
    bn_scale = jnp.float32(1.0 / math.sqrt(1.0 + eps))   # default BN, inference

    def bn(c):
        return (jnp.full((c, 1), bn_scale, jnp.float32),
                jnp.zeros((c, 1), jnp.float32))

    p = {}
    # ---- Mlp_1 (hidden = in = C) ----
    p["fc1_w"] = nrm((C, C))                              # [Cout, Cin]
    p["fc1_s"], p["fc1_t"] = bn(C)
    # MultiScaleDWConv: per-group kernels 1/3/5/7 zero-embedded into 7x7.
    splits = [C - (C // 4) * 3] + [C // 4] * 3
    scales = (1, 3, 5, 7)
    K = 7
    w_rows, b_rows = [], []
    for ch, k in zip(splits, scales):
        wk = nrm((ch, k, k))
        full = jnp.zeros((ch, K, K), jnp.float32)
        off = (K - k) // 2
        full = full.at[:, off:off + k, off:off + k].set(wk)
        w_rows.append(full)
        b_rows.append(nrm((ch,)))
    p["ms_w"] = jnp.concatenate(w_rows, axis=0).reshape(C, K * K)   # [C, 49]
    p["ms_b"] = jnp.concatenate(b_rows, axis=0).reshape(C, 1)
    p["nrm_s"], p["nrm_t"] = bn(C)
    p["fc2_w"] = nrm((C, C))
    p["fc2_s"], p["fc2_t"] = bn(C)
    # ---- DynamicConv2d (dim=C, K=3, num_groups=2, reduction=4) ----
    Cr = C // 4
    dyn_w = nrm((2, C, 3, 3), std=0.02)                   # ~trunc_normal(0.02)
    dyn_b = nrm((2, C), std=0.02)
    p["dyn_w0"] = dyn_w[0].reshape(C, 9)
    p["dyn_w1"] = dyn_w[1].reshape(C, 9)
    p["dyn_b0"] = dyn_b[0].reshape(C, 1)
    p["dyn_b1"] = dyn_b[1].reshape(C, 1)
    p["pm1_w"] = nrm((Cr, C))
    p["pm1_s"], p["pm1_t"] = bn(Cr)
    p["pm2_w"] = nrm((2 * C, Cr))
    p["pm2_b"] = nrm((2 * C,)).reshape(2 * C, 1)
    # ---- SEAttention (reduction=8) ----
    # se_w1t = W1^T with W1:[C//8, C] (Linear weight); se_w2 = W2:[C, C//8].
    p["se_w1t"] = nrm((C, C // 8))
    p["se_w2"] = nrm((C, C // 8))
    return p


# --------------------------------------------------------------------------
# One-time lowering of module parameters into kernel-ready tensors:
#  * zero-embedded 7x7 tap weights x border masks -> [49, C, HW] planes
#  * fc2 / proj-ConvModule BatchNorms folded into the conv weight + bias
#  * adaptive-pool bin weights and 3x3 border masks
# Run this OUTSIDE jit (it is pure preprocessing, done once).
# --------------------------------------------------------------------------
def prepare_luky_params(p, H, W):
    C = p["fc1_w"].shape[0]
    mask7 = jnp.asarray(_build_dw_masks(H, W, 7))          # [49, HW]
    q = {}
    q["fc1_w"], q["fc1_s"], q["fc1_t"] = p["fc1_w"], p["fc1_s"], p["fc1_t"]
    q["ms_wp"] = p["ms_w"].T[:, :, None] * mask7[:, None, :]   # [49, C, HW]
    q["ms_b"], q["nrm_s"], q["nrm_t"] = p["ms_b"], p["nrm_s"], p["nrm_t"]
    q["fc2_w"] = p["fc2_s"] * p["fc2_w"]                   # BN folded (conv->BN)
    q["fc2_b"] = p["fc2_t"]
    q["pool_w"] = jnp.asarray(_build_pool_weights(H, W, 3))    # [HW, 10]
    q["mask3"] = jnp.asarray(_build_dw_masks(H, W, 3))         # [9, HW]
    q["pm1_w"] = p["pm1_s"] * p["pm1_w"]                   # BN folded (conv->BN->GELU)
    q["pm1_b"] = p["pm1_t"]
    q["pm2_w"], q["pm2_b"] = p["pm2_w"], p["pm2_b"]
    for k in ("dyn_w0", "dyn_w1", "dyn_b0", "dyn_b1", "se_w1t", "se_w2"):
        q[k] = p[k]
    return q


# --------------------------------------------------------------------------
# Luky forward: single fused pallas_call gridded over batch.
# --------------------------------------------------------------------------
def luky_forward(x_nchw, q):
    B, C, H, W = x_nchw.shape
    HW = H * W
    x = x_nchw.reshape(B, C, HW).astype(jnp.float32)       # free reshape, lane-dense

    def full(a):
        return pl.BlockSpec(a.shape, lambda b, _nd=a.ndim: (0,) * _nd)

    args = (x,
            q["fc1_w"], q["fc1_s"], q["fc1_t"],
            q["ms_wp"], q["ms_b"], q["nrm_s"], q["nrm_t"],
            q["fc2_w"], q["fc2_b"],
            q["pool_w"], q["mask3"],
            q["pm1_w"], q["pm1_b"], q["pm2_w"], q["pm2_b"],
            q["dyn_w0"], q["dyn_w1"], q["dyn_b0"], q["dyn_b1"],
            q["se_w1t"], q["se_w2"])

    in_specs = ([pl.BlockSpec((1, C, HW), lambda b: (b, 0, 0))]
                + [full(a) for a in args[1:]])

    out = pl.pallas_call(
        _make_luky_kernel(C, H, W),
        grid=(B,),
        in_specs=in_specs,
        out_specs=pl.BlockSpec((1, C, HW), lambda b: (b, 0, 0)),
        out_shape=jax.ShapeDtypeStruct((B, C, HW), jnp.float32),
        compiler_params=pltpu.CompilerParams(
            dimension_semantics=("parallel",)),
    )(*args)
    return out.reshape(B, C, H, W)


# --------------------------------------------------------------------------
# Pure-JAX reference (module semantics, unfolded params) for verification.
# --------------------------------------------------------------------------
def luky_reference(x_nchw, p):
    B, C, H, W = x_nchw.shape

    def dwconv(v, w, b=None):          # v:[C,H,W], w:[C,k,k]
        k = w.shape[-1]
        pad = k // 2
        vp = jnp.pad(v, ((0, 0), (pad, pad), (pad, pad)))
        out = jnp.zeros_like(v)
        for ky in range(k):
            for kx in range(k):
                out = out + w[:, ky, kx][:, None, None] * vp[:, ky:ky + H, kx:kx + W]
        if b is not None:
            out = out + b[:, None, None]
        return out

    def adaptive_pool3(v):             # v:[C,H,W] -> [C,3,3]
        def edges(n, m, i):
            return (i * n) // m, -(-((i + 1) * n) // m)
        rows = []
        for by in range(3):
            ys, ye = edges(H, 3, by)
            cols = []
            for bx in range(3):
                xs, xe = edges(W, 3, bx)
                cols.append(jnp.mean(v[:, ys:ye, xs:xe], axis=(1, 2)))
            rows.append(jnp.stack(cols, axis=-1))
        return jnp.stack(rows, axis=-2)

    def proj(feat):                    # feat:[C, n]
        z = jnp.dot(p["pm1_w"], feat)
        z = _gelu(z * p["pm1_s"] + p["pm1_t"])
        return jnp.dot(p["pm2_w"], z) + p["pm2_b"]     # [2C, n]

    outs = []
    for b in range(B):
        xb = x_nchw[b].astype(jnp.float32)             # [C,H,W]
        # Mlp_1
        h = jnp.einsum("oc,chw->ohw", p["fc1_w"], xb)
        h = _gelu(h) * p["fc1_s"][:, :, None] + p["fc1_t"][:, :, None]
        dw = dwconv(h, p["ms_w"].reshape(C, 7, 7), p["ms_b"][:, 0])
        hh = _gelu(dw + h)
        hh = hh * p["nrm_s"][:, :, None] + p["nrm_t"][:, :, None]
        m = jnp.einsum("oc,chw->ohw", p["fc2_w"], hh)
        m = m * p["fc2_s"][:, :, None] + p["fc2_t"][:, :, None]
        # DynamicConv2d
        pooled = adaptive_pool3(m).reshape(C, 9)
        sw = jax.nn.softmax(proj(pooled).reshape(2, C, 9), axis=0)[0]
        w_dyn = sw * p["dyn_w0"] + (1.0 - sw) * p["dyn_w1"]
        gm = jnp.mean(m, axis=(1, 2)).reshape(C, 1)
        sb = jax.nn.softmax(proj(gm).reshape(2, C, 1), axis=0)[0]
        b_dyn = sb * p["dyn_b0"] + (1.0 - sb) * p["dyn_b1"]
        idc = dwconv(m, w_dyn.reshape(C, 3, 3)) + b_dyn[:, :, None]
        # SEAttention -> sigmoid -> + residual
        pse = jnp.mean(idc, axis=(1, 2))
        h1 = jax.nn.relu(jnp.dot(p["se_w1t"].T, pse))
        gate = jax.nn.sigmoid(jnp.dot(p["se_w2"], h1))
        outs.append(jax.nn.sigmoid(idc * gate[:, None, None]) + xb)
    return jnp.stack(outs, axis=0)


if __name__ == "__main__":
    B, C, H, W = 2, 16, 16, 16          # C=16 (divisible by 4 and 8), 16x16 spatial
    key = jax.random.PRNGKey(0)
    kx_, kp_ = jax.random.split(key)
    x = jax.random.normal(kx_, (B, C, H, W), dtype=jnp.float32)   # NCHW like PyTorch
    params = init_params(kp_, C)
    kparams = prepare_luky_params(params, H, W)      # one-time, outside jit

    fwd = jax.jit(luky_forward)
    y = fwd(x, kparams)
    jax.block_until_ready(y)
    assert y.shape == (B, C, H, W) and y.dtype == jnp.float32

    y_ref = jax.jit(luky_reference)(x, params)
    jax.block_until_ready(y_ref)
    np.testing.assert_allclose(np.asarray(y), np.asarray(y_ref), atol=5e-2, rtol=0)

    print("KERNEL_OK")
</pallas_src>

<mosaic_0001>
module attributes {stable_mosaic.version = 11 : i64} {
  func.func @kernel(%arg0: i32, %arg1: memref<1x16x256xf32, #tpu.memory_space<vmem>>, %arg2: memref<16x16xf32, #tpu.memory_space<vmem>>, %arg3: memref<16x1xf32, #tpu.memory_space<vmem>>, %arg4: memref<16x1xf32, #tpu.memory_space<vmem>>, %arg5: memref<49x16x256xf32, #tpu.memory_space<vmem>>, %arg6: memref<16x1xf32, #tpu.memory_space<vmem>>, %arg7: memref<16x1xf32, #tpu.memory_space<vmem>>, %arg8: memref<16x1xf32, #tpu.memory_space<vmem>>, %arg9: memref<16x16xf32, #tpu.memory_space<vmem>>, %arg10: memref<16x1xf32, #tpu.memory_space<vmem>>, %arg11: memref<256x10xf32, #tpu.memory_space<vmem>>, %arg12: memref<9x256xf32, #tpu.memory_space<vmem>>, %arg13: memref<4x16xf32, #tpu.memory_space<vmem>>, %arg14: memref<4x1xf32, #tpu.memory_space<vmem>>, %arg15: memref<32x4xf32, #tpu.memory_space<vmem>>, %arg16: memref<32x1xf32, #tpu.memory_space<vmem>>, %arg17: memref<16x9xf32, #tpu.memory_space<vmem>>, %arg18: memref<16x9xf32, #tpu.memory_space<vmem>>, %arg19: memref<16x1xf32, #tpu.memory_space<vmem>>, %arg20: memref<16x1xf32, #tpu.memory_space<vmem>>, %arg21: memref<16x2xf32, #tpu.memory_space<vmem>>, %arg22: memref<16x2xf32, #tpu.memory_space<vmem>>, %arg23: memref<1x16x256xf32, #tpu.memory_space<vmem>>) attributes {dimension_semantics = [#tpu.dimension_semantics<parallel>], iteration_bounds = array<i64: 2>, scalar_prefetch = 0 : i64, scratch_operands = 0 : i64, tpu.core_type = #tpu.core_type<tc>, window_params = [{transform_indices = @transform_0, window_bounds = array<i64: 1, 16, 256>}, {pipeline_mode = #tpu.pipeline_mode<synchronous>, transform_indices = @transform_1, window_bounds = array<i64: 16, 16>}, {pipeline_mode = #tpu.pipeline_mode<synchronous>, transform_indices = @transform_2, window_bounds = array<i64: 16, 1>}, {pipeline_mode = #tpu.pipeline_mode<synchronous>, transform_indices = @transform_3, window_bounds = array<i64: 16, 1>}, {pipeline_mode = #tpu.pipeline_mode<synchronous>, transform_indices = @transform_4, window_bounds = array<i64: 49, 16, 256>}, {pipeline_mode = #tpu.pipeline_mode<synchronous>, transform_indices = @transform_5, window_bounds = array<i64: 16, 1>}, {pipeline_mode = #tpu.pipeline_mode<synchronous>, transform_indices = @transform_6, window_bounds = array<i64: 16, 1>}, {pipeline_mode = #tpu.pipeline_mode<synchronous>, transform_indices = @transform_7, window_bounds = array<i64: 16, 1>}, {pipeline_mode = #tpu.pipeline_mode<synchronous>, transform_indices = @transform_8, window_bounds = array<i64: 16, 16>}, {pipeline_mode = #tpu.pipeline_mode<synchronous>, transform_indices = @transform_9, window_bounds = array<i64: 16, 1>}, {pipeline_mode = #tpu.pipeline_mode<synchronous>, transform_indices = @transform_10, window_bounds = array<i64: 256, 10>}, {pipeline_mode = #tpu.pipeline_mode<synchronous>, transform_indices = @transform_11, window_bounds = array<i64: 9, 256>}, {pipeline_mode = #tpu.pipeline_mode<synchronous>, transform_indices = @transform_12, window_bounds = array<i64: 4, 16>}, {pipeline_mode = #tpu.pipeline_mode<synchronous>, transform_indices = @transform_13, window_bounds = array<i64: 4, 1>}, {pipeline_mode = #tpu.pipeline_mode<synchronous>, transform_indices = @transform_14, window_bounds = array<i64: 32, 4>}, {pipeline_mode = #tpu.pipeline_mode<synchronous>, transform_indices = @transform_15, window_bounds = array<i64: 32, 1>}, {pipeline_mode = #tpu.pipeline_mode<synchronous>, transform_indices = @transform_16, window_bounds = array<i64: 16, 9>}, {pipeline_mode = #tpu.pipeline_mode<synchronous>, transform_indices = @transform_17, window_bounds = array<i64: 16, 9>}, {pipeline_mode = #tpu.pipeline_mode<synchronous>, transform_indices = @transform_18, window_bounds = array<i64: 16, 1>}, {pipeline_mode = #tpu.pipeline_mode<synchronous>, transform_indices = @transform_19, window_bounds = array<i64: 16, 1>}, {pipeline_mode = #tpu.pipeline_mode<synchronous>, transform_indices = @transform_20, window_bounds = array<i64: 16, 2>}, {pipeline_mode = #tpu.pipeline_mode<synchronous>, transform_indices = @transform_21, window_bounds = array<i64: 16, 2>}, {transform_indices = @transform_22, window_bounds = array<i64: 1, 16, 256>}]} {
    %c0 = arith.constant 0 : index
    %c0_0 = arith.constant 0 : index
    %c0_1 = arith.constant 0 : index
    %0 = vector.load %arg1[%c0, %c0_0, %c0_1] : memref<1x16x256xf32, #tpu.memory_space<vmem>>, vector<1x16x256xf32>
    %1 = vector.shape_cast %0 : vector<1x16x256xf32> to vector<16x256xf32>
    %c0_2 = arith.constant 0 : index
    %c0_3 = arith.constant 0 : index
    %2 = vector.load %arg2[%c0_2, %c0_3] : memref<16x16xf32, #tpu.memory_space<vmem>>, vector<16x16xf32>
    %cst = arith.constant dense<0.000000e+00> : vector<16x256xf32>
    %3 = tpu.matmul %2, %1, %cst {dimension_numbers = #tpu.dot_dimension_numbers<[1], [0], [0], [1], [0, 0, 1, 1], [], []>} : vector<16x16xf32>, vector<16x256xf32>, vector<16x256xf32> -> vector<16x256xf32>
    %cst_4 = arith.constant 5.000000e-01 : f32
    %4 = vector.broadcast %cst_4 : f32 to vector<16x256xf32>
    %5 = arith.mulf %4, %3 : vector<16x256xf32>
    %cst_5 = arith.constant 4.471500e-02 : f32
    %6 = vector.broadcast %cst_5 : f32 to vector<16x256xf32>
    %7 = arith.mulf %6, %3 : vector<16x256xf32>
    %8 = arith.mulf %7, %3 : vector<16x256xf32>
    %9 = arith.mulf %8, %3 : vector<16x256xf32>
    %10 = arith.addf %3, %9 : vector<16x256xf32>
    %cst_6 = arith.constant 0.797884583 : f32
    %11 = vector.broadcast %cst_6 : f32 to vector<16x256xf32>
    %12 = arith.mulf %11, %10 : vector<16x256xf32>
    %13 = math.tanh %12 : vector<16x256xf32>
    %cst_7 = arith.constant 1.000000e+00 : f32
    %14 = vector.broadcast %cst_7 : f32 to vector<16x256xf32>
    %15 = arith.addf %14, %13 : vector<16x256xf32>
    %16 = arith.mulf %5, %15 : vector<16x256xf32>
    %c0_8 = arith.constant 0 : index
    %c0_9 = arith.constant 0 : index
    %17 = vector.load %arg3[%c0_8, %c0_9] : memref<16x1xf32, #tpu.memory_space<vmem>>, vector<16x1xf32>
    %18 = vector.broadcast %17 : vector<16x1xf32> to vector<16x256xf32>
    %19 = arith.mulf %16, %18 : vector<16x256xf32>
    %c0_10 = arith.constant 0 : index
    %c0_11 = arith.constant 0 : index
    %20 = vector.load %arg4[%c0_10, %c0_11] : memref<16x1xf32, #tpu.memory_space<vmem>>, vector<16x1xf32>
    %21 = vector.broadcast %20 : vector<16x1xf32> to vector<16x256xf32>
    %22 = arith.addf %19, %21 : vector<16x256xf32>
    %cst_12 = arith.constant 0.000000e+00 : f32
    %23 = vector.broadcast %cst_12 : f32 to vector<16x256xf32>
    %c51_i32 = arith.constant 51 : i32
    %24 = tpu.dynamic_rotate %22 by %c51_i32 dim 1 : vector<16x256xf32>, i32 -> vector<16x256xf32>
    %c0_13 = arith.constant 0 : index
    %c0_14 = arith.constant 0 : index
    %c0_15 = arith.constant 0 : index
    %25 = vector.load %arg5[%c0_13, %c0_14, %c0_15] : memref<49x16x256xf32, #tpu.memory_space<vmem>>, vector<1x16x256xf32>
    %26 = vector.shape_cast %25 : vector<1x16x256xf32> to vector<16x256xf32>
    %27 = arith.mulf %24, %26 : vector<16x256xf32>
    %28 = arith.addf %23, %27 : vector<16x256xf32>
    %c50_i32 = arith.constant 50 : i32
    %29 = tpu.dynamic_rotate %22 by %c50_i32 dim 1 : vector<16x256xf32>, i32 -> vector<16x256xf32>
    %c1 = arith.constant 1 : index
    %c0_16 = arith.constant 0 : index
    %c0_17 = arith.constant 0 : index
    %30 = vector.load %arg5[%c1, %c0_16, %c0_17] : memref<49x16x256xf32, #tpu.memory_space<vmem>>, vector<1x16x256xf32>
    %31 = vector.shape_cast %30 : vector<1x16x256xf32> to vector<16x256xf32>
    %32 = arith.mulf %29, %31 : vector<16x256xf32>
    %33 = arith.addf %28, %32 : vector<16x256xf32>
    %c49_i32 = arith.constant 49 : i32
    %34 = tpu.dynamic_rotate %22 by %c49_i32 dim 1 : vector<16x256xf32>, i32 -> vector<16x256xf32>
    %c2 = arith.constant 2 : index
    %c0_18 = arith.constant 0 : index
    %c0_19 = arith.constant 0 : index
    %35 = vector.load %arg5[%c2, %c0_18, %c0_19] : memref<49x16x256xf32, #tpu.memory_space<vmem>>, vector<1x16x256xf32>
    %36 = vector.shape_cast %35 : vector<1x16x256xf32> to vector<16x256xf32>
    %37 = arith.mulf %34, %36 : vector<16x256xf32>
    %38 = arith.addf %33, %37 : vector<16x256xf32>
    %c48_i32 = arith.constant 48 : i32
    %39 = tpu.dynamic_rotate %22 by %c48_i32 dim 1 : vector<16x256xf32>, i32 -> vector<16x256xf32>
    %c3 = arith.constant 3 : index
    %c0_20 = arith.constant 0 : index
    %c0_21 = arith.constant 0 : index
    %40 = vector.load %arg5[%c3, %c0_20, %c0_21] : memref<49x16x256xf32, #tpu.memory_space<vmem>>, vector<1x16x256xf32>
    %41 = vector.shape_cast %40 : vector<1x16x256xf32> to vector<16x256xf32>
    %42 = arith.mulf %39, %41 : vector<16x256xf32>
    %43 = arith.addf %38, %42 : vector<16x256xf32>
    %c47_i32 = arith.constant 47 : i32
    %44 = tpu.dynamic_rotate %22 by %c47_i32 dim 1 : vector<16x256xf32>, i32 -> vector<16x256xf32>
    %c4 = arith.constant 4 : index
    %c0_22 = arith.constant 0 : index
    %c0_23 = arith.constant 0 : index
    %45 = vector.load %arg5[%c4, %c0_22, %c0_23] : memref<49x16x256xf32, #tpu.memory_space<vmem>>, vector<1x16x256xf32>
    %46 = vector.shape_cast %45 : vector<1x16x256xf32> to vector<16x256xf32>
    %47 = arith.mulf %44, %46 : vector<16x256xf32>
    %48 = arith.addf %43, %47 : vector<16x256xf32>
    %c46_i32 = arith.constant 46 : i32
    %49 = tpu.dynamic_rotate %22 by %c46_i32 dim 1 : vector<16x256xf32>, i32 -> vector<16x256xf32>
    %c5 = arith.constant 5 : index
    %c0_24 = arith.constant 0 : index
    %c0_25 = arith.constant 0 : index
    %50 = vector.load %arg5[%c5, %c0_24, %c0_25] : memref<49x16x256xf32, #tpu.memory_space<vmem>>, vector<1x16x256xf32>
    %51 = vector.shape_cast %50 : vector<1x16x256xf32> to vector<16x256xf32>
    %52 = arith.mulf %49, %51 : vector<16x256xf32>
    %53 = arith.addf %48, %52 : vector<16x256xf32>
    %c45_i32 = arith.constant 45 : i32
    %54 = tpu.dynamic_rotate %22 by %c45_i32 dim 1 : vector<16x256xf32>, i32 -> vector<16x256xf32>
    %c6 = arith.constant 6 : index
    %c0_26 = arith.constant 0 : index
    %c0_27 = arith.constant 0 : index
    %55 = vector.load %arg5[%c6, %c0_26, %c0_27] : memref<49x16x256xf32, #tpu.memory_space<vmem>>, vector<1x16x256xf32>
    %56 = vector.shape_cast %55 : vector<1x16x256xf32> to vector<16x256xf32>
    %57 = arith.mulf %54, %56 : vector<16x256xf32>
    %58 = arith.addf %53, %57 : vector<16x256xf32>
    %c35_i32 = arith.constant 35 : i32
    %59 = tpu.dynamic_rotate %22 by %c35_i32 dim 1 : vector<16x256xf32>, i32 -> vector<16x256xf32>
    %c7 = arith.constant 7 : index
    %c0_28 = arith.constant 0 : index
    %c0_29 = arith.constant 0 : index
    %60 = vector.load %arg5[%c7, %c0_28, %c0_29] : memref<49x16x256xf32, #tpu.memory_space<vmem>>, vector<1x16x256xf32>
    %61 = vector.shape_cast %60 : vector<1x16x256xf32> to vector<16x256xf32>
    %62 = arith.mulf %59, %61 : vector<16x256xf32>
    %63 = arith.addf %58, %62 : vector<16x256xf32>
    %c34_i32 = arith.constant 34 : i32
    %64 = tpu.dynamic_rotate %22 by %c34_i32 dim 1 : vector<16x256xf32>, i32 -> vector<16x256xf32>
    %c8 = arith.constant 8 : index
    %c0_30 = arith.constant 0 : index
    %c0_31 = arith.constant 0 : index
    %65 = vector.load %arg5[%c8, %c0_30, %c0_31] : memref<49x16x256xf32, #tpu.memory_space<vmem>>, vector<1x16x256xf32>
    %66 = vector.shape_cast %65 : vector<1x16x256xf32> to vector<16x256xf32>
    %67 = arith.mulf %64, %66 : vector<16x256xf32>
    %68 = arith.addf %63, %67 : vector<16x256xf32>
    %c33_i32 = arith.constant 33 : i32
    %69 = tpu.dynamic_rotate %22 by %c33_i32 dim 1 : vector<16x256xf32>, i32 -> vector<16x256xf32>
    %c9 = arith.constant 9 : index
    %c0_32 = arith.constant 0 : index
    %c0_33 = arith.constant 0 : index
    %70 = vector.load %arg5[%c9, %c0_32, %c0_33] : memref<49x16x256xf32, #tpu.memory_space<vmem>>, vector<1x16x256xf32>
    %71 = vector.shape_cast %70 : vector<1x16x256xf32> to vector<16x256xf32>
    %72 = arith.mulf %69, %71 : vector<16x256xf32>
    %73 = arith.addf %68, %72 : vector<16x256xf32>
    %c32_i32 = arith.constant 32 : i32
    %74 = tpu.dynamic_rotate %22 by %c32_i32 dim 1 : vector<16x256xf32>, i32 -> vector<16x256xf32>
    %c10 = arith.constant 10 : index
    %c0_34 = arith.constant 0 : index
    %c0_35 = arith.constant 0 : index
    %75 = vector.load %arg5[%c10, %c0_34, %c0_35] : memref<49x16x256xf32, #tpu.memory_space<vmem>>, vector<1x16x256xf32>
    %76 = vector.shape_cast %75 : vector<1x16x256xf32> to vector<16x256xf32>
    %77 = arith.mulf %74, %76 : vector<16x256xf32>
    %78 = arith.addf %73, %77 : vector<16x256xf32>
    %c31_i32 = arith.constant 31 : i32
    %79 = tpu.dynamic_rotate %22 by %c31_i32 dim 1 : vector<16x256xf32>, i32 -> vector<16x256xf32>
    %c11 = arith.constant 11 : index
    %c0_36 = arith.constant 0 : index
    %c0_37 = arith.constant 0 : index
    %80 = vector.load %arg5[%c11, %c0_36, %c0_37] : memref<49x16x256xf32, #tpu.memory_space<vmem>>, vector<1x16x256xf32>
    %81 = vector.shape_cast %80 : vector<1x16x256xf32> to vector<16x256xf32>
    %82 = arith.mulf %79, %81 : vector<16x256xf32>
    %83 = arith.addf %78, %82 : vector<16x256xf32>
    %c30_i32 = arith.constant 30 : i32
    %84 = tpu.dynamic_rotate %22 by %c30_i32 dim 1 : vector<16x256xf32>, i32 -> vector<16x256xf32>
    %c12 = arith.constant 12 : index
    %c0_38 = arith.constant 0 : index
    %c0_39 = arith.constant 0 : index
    %85 = vector.load %arg5[%c12, %c0_38, %c0_39] : memref<49x16x256xf32, #tpu.memory_space<vmem>>, vector<1x16x256xf32>
    %86 = vector.shape_cast %85 : vector<1x16x256xf32> to vector<16x256xf32>
    %87 = arith.mulf %84, %86 : vector<16x256xf32>
    %88 = arith.addf %83, %87 : vector<16x256xf32>
    %c29_i32 = arith.constant 29 : i32
    %89 = tpu.dynamic_rotate %22 by %c29_i32 dim 1 : vector<16x256xf32>, i32 -> vector<16x256xf32>
    %c13 = arith.constant 13 : index
    %c0_40 = arith.constant 0 : index
    %c0_41 = arith.constant 0 : index
    %90 = vector.load %arg5[%c13, %c0_40, %c0_41] : memref<49x16x256xf32, #tpu.memory_space<vmem>>, vector<1x16x256xf32>
    %91 = vector.shape_cast %90 : vector<1x16x256xf32> to vector<16x256xf32>
    %92 = arith.mulf %89, %91 : vector<16x256xf32>
    %93 = arith.addf %88, %92 : vector<16x256xf32>
    %c19_i32 = arith.constant 19 : i32
    %94 = tpu.dynamic_rotate %22 by %c19_i32 dim 1 : vector<16x256xf32>, i32 -> vector<16x256xf32>
    %c14 = arith.constant 14 : index
    %c0_42 = arith.constant 0 : index
    %c0_43 = arith.constant 0 : index
    %95 = vector.load %arg5[%c14, %c0_42, %c0_43] : memref<49x16x256xf32, #tpu.memory_space<vmem>>, vector<1x16x256xf32>
    %96 = vector.shape_cast %95 : vector<1x16x256xf32> to vector<16x256xf32>
    %97 = arith.mulf %94, %96 : vector<16x256xf32>
    %98 = arith.addf %93, %97 : vector<16x256xf32>
    %c18_i32 = arith.constant 18 : i32
    %99 = tpu.dynamic_rotate %22 by %c18_i32 dim 1 : vector<16x256xf32>, i32 -> vector<16x256xf32>
    %c15 = arith.constant 15 : index
    %c0_44 = arith.constant 0 : index
    %c0_45 = arith.constant 0 : index
    %100 = vector.load %arg5[%c15, %c0_44, %c0_45] : memref<49x16x256xf32, #tpu.memory_space<vmem>>, vector<1x16x256xf32>
    %101 = vector.shape_cast %100 : vector<1x16x256xf32> to vector<16x256xf32>
    %102 = arith.mulf %99, %101 : vector<16x256xf32>
    %103 = arith.addf %98, %102 : vector<16x256xf32>
    %c17_i32 = arith.constant 17 : i32
    %104 = tpu.dynamic_rotate %22 by %c17_i32 dim 1 : vector<16x256xf32>, i32 -> vector<16x256xf32>
    %c16 = arith.constant 16 : index
    %c0_46 = arith.constant 0 : index
    %c0_47 = arith.constant 0 : index
    %105 = vector.load %arg5[%c16, %c0_46, %c0_47] : memref<49x16x256xf32, #tpu.memory_space<vmem>>, vector<1x16x256xf32>
    %106 = vector.shape_cast %105 : vector<1x16x256xf32> to vector<16x256xf32>
    %107 = arith.mulf %104, %106 : vector<16x256xf32>
    %108 = arith.addf %103, %107 : vector<16x256xf32>
    %c16_i32 = arith.constant 16 : i32
    %109 = tpu.dynamic_rotate %22 by %c16_i32 dim 1 : vector<16x256xf32>, i32 -> vector<16x256xf32>
    %c17 = arith.constant 17 : index
    %c0_48 = arith.constant 0 : index
    %c0_49 = arith.constant 0 : index
    %110 = vector.load %arg5[%c17, %c0_48, %c0_49] : memref<49x16x256xf32, #tpu.memory_space<vmem>>, vector<1x16x256xf32>
    %111 = vector.shape_cast %110 : vector<1x16x256xf32> to vector<16x256xf32>
    %112 = arith.mulf %109, %111 : vector<16x256xf32>
    %113 = arith.addf %108, %112 : vector<16x256xf32>
    %c15_i32 = arith.constant 15 : i32
    %114 = tpu.dynamic_rotate %22 by %c15_i32 dim 1 : vector<16x256xf32>, i32 -> vector<16x256xf32>
    %c18 = arith.constant 18 : index
    %c0_50 = arith.constant 0 : index
    %c0_51 = arith.constant 0 : index
    %115 = vector.load %arg5[%c18, %c0_50, %c0_51] : memref<49x16x256xf32, #tpu.memory_space<vmem>>, vector<1x16x256xf32>
    %116 = vector.shape_cast %115 : vector<1x16x256xf32> to vector<16x256xf32>
    %117 = arith.mulf %114, %116 : vector<16x256xf32>
    %118 = arith.addf %113, %117 : vector<16x256xf32>
    %c14_i32 = arith.constant 14 : i32
    %119 = tpu.dynamic_rotate %22 by %c14_i32 dim 1 : vector<16x256xf32>, i32 -> vector<16x256xf32>
    %c19 = arith.constant 19 : index
    %c0_52 = arith.constant 0 : index
    %c0_53 = arith.constant 0 : index
    %120 = vector.load %arg5[%c19, %c0_52, %c0_53] : memref<49x16x256xf32, #tpu.memory_space<vmem>>, vector<1x16x256xf32>
    %121 = vector.shape_cast %120 : vector<1x16x256xf32> to vector<16x256xf32>
    %122 = arith.mulf %119, %121 : vector<16x256xf32>
    %123 = arith.addf %118, %122 : vector<16x256xf32>
    %c13_i32 = arith.constant 13 : i32
    %124 = tpu.dynamic_rotate %22 by %c13_i32 dim 1 : vector<16x256xf32>, i32 -> vector<16x256xf32>
    %c20 = arith.constant 20 : index
    %c0_54 = arith.constant 0 : index
    %c0_55 = arith.constant 0 : index
    %125 = vector.load %arg5[%c20, %c0_54, %c0_55] : memref<49x16x256xf32, #tpu.memory_space<vmem>>, vector<1x16x256xf32>
    %126 = vector.shape_cast %125 : vector<1x16x256xf32> to vector<16x256xf32>
    %127 = arith.mulf %124, %126 : vector<16x256xf32>
    %128 = arith.addf %123, %127 : vector<16x256xf32>
    %c3_i32 = arith.constant 3 : i32
    %129 = tpu.dynamic_rotate %22 by %c3_i32 dim 1 : vector<16x256xf32>, i32 -> vector<16x256xf32>
    %c21 = arith.constant 21 : index
    %c0_56 = arith.constant 0 : index
    %c0_57 = arith.constant 0 : index
    %130 = vector.load %arg5[%c21, %c0_56, %c0_57] : memref<49x16x256xf32, #tpu.memory_space<vmem>>, vector<1x16x256xf32>
    %131 = vector.shape_cast %130 : vector<1x16x256xf32> to vector<16x256xf32>
    %132 = arith.mulf %129, %131 : vector<16x256xf32>
    %133 = arith.addf %128, %132 : vector<16x256xf32>
    %c2_i32 = arith.constant 2 : i32
    %134 = tpu.dynamic_rotate %22 by %c2_i32 dim 1 : vector<16x256xf32>, i32 -> vector<16x256xf32>
    %c22 = arith.constant 22 : index
    %c0_58 = arith.constant 0 : index
    %c0_59 = arith.constant 0 : index
    %135 = vector.load %arg5[%c22, %c0_58, %c0_59] : memref<49x16x256xf32, #tpu.memory_space<vmem>>, vector<1x16x256xf32>
    %136 = vector.shape_cast %135 : vector<1x16x256xf32> to vector<16x256xf32>
    %137 = arith.mulf %134, %136 : vector<16x256xf32>
    %138 = arith.addf %133, %137 : vector<16x256xf32>
    %c1_i32 = arith.constant 1 : i32
    %139 = tpu.dynamic_rotate %22 by %c1_i32 dim 1 : vector<16x256xf32>, i32 -> vector<16x256xf32>
    %c23 = arith.constant 23 : index
    %c0_60 = arith.constant 0 : index
    %c0_61 = arith.constant 0 : index
    %140 = vector.load %arg5[%c23, %c0_60, %c0_61] : memref<49x16x256xf32, #tpu.memory_space<vmem>>, vector<1x16x256xf32>
    %141 = vector.shape_cast %140 : vector<1x16x256xf32> to vector<16x256xf32>
    %142 = arith.mulf %139, %141 : vector<16x256xf32>
    %143 = arith.addf %138, %142 : vector<16x256xf32>
    %c24 = arith.constant 24 : index
    %c0_62 = arith.constant 0 : index
    %c0_63 = arith.constant 0 : index
    %144 = vector.load %arg5[%c24, %c0_62, %c0_63] : memref<49x16x256xf32, #tpu.memory_space<vmem>>, vector<1x16x256xf32>
    %145 = vector.shape_cast %144 : vector<1x16x256xf32> to vector<16x256xf32>
    %146 = arith.mulf %22, %145 : vector<16x256xf32>
    %147 = arith.addf %143, %146 : vector<16x256xf32>
    %c255_i32 = arith.constant 255 : i32
    %148 = tpu.dynamic_rotate %22 by %c255_i32 dim 1 : vector<16x256xf32>, i32 -> vector<16x256xf32>
    %c25 = arith.constant 25 : index
    %c0_64 = arith.constant 0 : index
    %c0_65 = arith.constant 0 : index
    %149 = vector.load %arg5[%c25, %c0_64, %c0_65] : memref<49x16x256xf32, #tpu.memory_space<vmem>>, vector<1x16x256xf32>
    %150 = vector.shape_cast %149 : vector<1x16x256xf32> to vector<16x256xf32>
    %151 = arith.mulf %148, %150 : vector<16x256xf32>
    %152 = arith.addf %147, %151 : vector<16x256xf32>
    %c254_i32 = arith.constant 254 : i32
    %153 = tpu.dynamic_rotate %22 by %c254_i32 dim 1 : vector<16x256xf32>, i32 -> vector<16x256xf32>
    %c26 = arith.constant 26 : index
    %c0_66 = arith.constant 0 : index
    %c0_67 = arith.constant 0 : index
    %154 = vector.load %arg5[%c26, %c0_66, %c0_67] : memref<49x16x256xf32, #tpu.memory_space<vmem>>, vector<1x16x256xf32>
    %155 = vector.shape_cast %154 : vector<1x16x256xf32> to vector<16x256xf32>
    %156 = arith.mulf %153, %155 : vector<16x256xf32>
    %157 = arith.addf %152, %156 : vector<16x256xf32>
    %c253_i32 = arith.constant 253 : i32
    %158 = tpu.dynamic_rotate %22 by %c253_i32 dim 1 : vector<16x256xf32>, i32 -> vector<16x256xf32>
    %c27 = arith.constant 27 : index
    %c0_68 = arith.constant 0 : index
    %c0_69 = arith.constant 0 : index
    %159 = vector.load %arg5[%c27, %c0_68, %c0_69] : memref<49x16x256xf32, #tpu.memory_space<vmem>>, vector<1x16x256xf32>
    %160 = vector.shape_cast %159 : vector<1x16x256xf32> to vector<16x256xf32>
    %161 = arith.mulf %158, %160 : vector<16x256xf32>
    %162 = arith.addf %157, %161 : vector<16x256xf32>
    %c243_i32 = arith.constant 243 : i32
    %163 = tpu.dynamic_rotate %22 by %c243_i32 dim 1 : vector<16x256xf32>, i32 -> vector<16x256xf32>
    %c28 = arith.constant 28 : index
    %c0_70 = arith.constant 0 : index
    %c0_71 = arith.constant 0 : index
    %164 = vector.load %arg5[%c28, %c0_70, %c0_71] : memref<49x16x256xf32, #tpu.memory_space<vmem>>, vector<1x16x256xf32>
    %165 = vector.shape_cast %164 : vector<1x16x256xf32> to vector<16x256xf32>
    %166 = arith.mulf %163, %165 : vector<16x256xf32>
    %167 = arith.addf %162, %166 : vector<16x256xf32>
    %c242_i32 = arith.constant 242 : i32
    %168 = tpu.dynamic_rotate %22 by %c242_i32 dim 1 : vector<16x256xf32>, i32 -> vector<16x256xf32>
    %c29 = arith.constant 29 : index
    %c0_72 = arith.constant 0 : index
    %c0_73 = arith.constant 0 : index
    %169 = vector.load %arg5[%c29, %c0_72, %c0_73] : memref<49x16x256xf32, #tpu.memory_space<vmem>>, vector<1x16x256xf32>
    %170 = vector.shape_cast %169 : vector<1x16x256xf32> to vector<16x256xf32>
    %171 = arith.mulf %168, %170 : vector<16x256xf32>
    %172 = arith.addf %167, %171 : vector<16x256xf32>
    %c241_i32 = arith.constant 241 : i32
    %173 = tpu.dynamic_rotate %22 by %c241_i32 dim 1 : vector<16x256xf32>, i32 -> vector<16x256xf32>
    %c30 = arith.constant 30 : index
    %c0_74 = arith.constant 0 : index
    %c0_75 = arith.constant 0 : index
    %174 = vector.load %arg5[%c30, %c0_74, %c0_75] : memref<49x16x256xf32, #tpu.memory_space<vmem>>, vector<1x16x256xf32>
    %175 = vector.shape_cast %174 : vector<1x16x256xf32> to vector<16x256xf32>
    %176 = arith.mulf %173, %175 : vector<16x256xf32>
    %177 = arith.addf %172, %176 : vector<16x256xf32>
    %c240_i32 = arith.constant 240 : i32
    %178 = tpu.dynamic_rotate %22 by %c240_i32 dim 1 : vector<16x256xf32>, i32 -> vector<16x256xf32>
    %c31 = arith.constant 31 : index
    %c0_76 = arith.constant 0 : index
    %c0_77 = arith.constant 0 : index
    %179 = vector.load %arg5[%c31, %c0_76, %c0_77] : memref<49x16x256xf32, #tpu.memory_space<vmem>>, vector<1x16x256xf32>
    %180 = vector.shape_cast %179 : vector<1x16x256xf32> to vector<16x256xf32>
    %181 = arith.mulf %178, %180 : vector<16x256xf32>
    %182 = arith.addf %177, %181 : vector<16x256xf32>
    %c239_i32 = arith.constant 239 : i32
    %183 = tpu.dynamic_rotate %22 by %c239_i32 dim 1 : vector<16x256xf32>, i32 -> vector<16x256xf32>
    %c32 = arith.constant 32 : index
    %c0_78 = arith.constant 0 : index
    %c0_79 = arith.constant 0 : index
    %184 = vector.load %arg5[%c32, %c0_78, %c0_79] : memref<49x16x256xf32, #tpu.memory_space<vmem>>, vector<1x16x256xf32>
    %185 = vector.shape_cast %184 : vector<1x16x256xf32> to vector<16x256xf32>
    %186 = arith.mulf %183, %185 : vector<16x256xf32>
    %187 = arith.addf %182, %186 : vector<16x256xf32>
    %c238_i32 = arith.constant 238 : i32
    %188 = tpu.dynamic_rotate %22 by %c238_i32 dim 1 : vector<16x256xf32>, i32 -> vector<16x256xf32>
    %c33 = arith.constant 33 : index
    %c0_80 = arith.constant 0 : index
    %c0_81 = arith.constant 0 : index
    %189 = vector.load %arg5[%c33, %c0_80, %c0_81] : memref<49x16x256xf32, #tpu.memory_space<vmem>>, vector<1x16x256xf32>
    %190 = vector.shape_cast %189 : vector<1x16x256xf32> to vector<16x256xf32>
    %191 = arith.mulf %188, %190 : vector<16x256xf32>
    %192 = arith.addf %187, %191 : vector<16x256xf32>
    %c237_i32 = arith.constant 237 : i32
    %193 = tpu.dynamic_rotate %22 by %c237_i32 dim 1 : vector<16x256xf32>, i32 -> vector<16x256xf32>
    %c34 = arith.constant 34 : index
    %c0_82 = arith.constant 0 : index
    %c0_83 = arith.constant 0 : index
    %194 = vector.load %arg5[%c34, %c0_82, %c0_83] : memref<49x16x256xf32, #tpu.memory_space<vmem>>, vector<1x16x256xf32>
    %195 = vector.shape_cast %194 : vector<1x16x256xf32> to vector<16x256xf32>
    %196 = arith.mulf %193, %195 : vector<16x256xf32>
    %197 = arith.addf %192, %196 : vector<16x256xf32>
    %c227_i32 = arith.constant 227 : i32
    %198 = tpu.dynamic_rotate %22 by %c227_i32 dim 1 : vector<16x256xf32>, i32 -> vector<16x256xf32>
    %c35 = arith.constant 35 : index
    %c0_84 = arith.constant 0 : index
    %c0_85 = arith.constant 0 : index
    %199 = vector.load %arg5[%c35, %c0_84, %c0_85] : memref<49x16x256xf32, #tpu.memory_space<vmem>>, vector<1x16x256xf32>
    %200 = vector.shape_cast %199 : vector<1x16x256xf32> to vector<16x256xf32>
    %201 = arith.mulf %198, %200 : vector<16x256xf32>
    %202 = arith.addf %197, %201 : vector<16x256xf32>
    %c226_i32 = arith.constant 226 : i32
    %203 = tpu.dynamic_rotate %22 by %c226_i32 dim 1 : vector<16x256xf32>, i32 -> vector<16x256xf32>
    %c36 = arith.constant 36 : index
    %c0_86 = arith.constant 0 : index
    %c0_87 = arith.constant 0 : index
    %204 = vector.load %arg5[%c36, %c0_86, %c0_87] : memref<49x16x256xf32, #tpu.memory_space<vmem>>, vector<1x16x256xf32>
    %205 = vector.shape_cast %204 : vector<1x16x256xf32> to vector<16x256xf32>
    %206 = arith.mulf %203, %205 : vector<16x256xf32>
    %207 = arith.addf %202, %206 : vector<16x256xf32>
    %c225_i32 = arith.constant 225 : i32
    %208 = tpu.dynamic_rotate %22 by %c225_i32 dim 1 : vector<16x256xf32>, i32 -> vector<16x256xf32>
    %c37 = arith.constant 37 : index
    %c0_88 = arith.constant 0 : index
    %c0_89 = arith.constant 0 : index
    %209 = vector.load %arg5[%c37, %c0_88, %c0_89] : memref<49x16x256xf32, #tpu.memory_space<vmem>>, vector<1x16x256xf32>
    %210 = vector.shape_cast %209 : vector<1x16x256xf32> to vector<16x256xf32>
    %211 = arith.mulf %208, %210 : vector<16x256xf32>
    %212 = arith.addf %207, %211 : vector<16x256xf32>
    %c224_i32 = arith.constant 224 : i32
    %213 = tpu.dynamic_rotate %22 by %c224_i32 dim 1 : vector<16x256xf32>, i32 -> vector<16x256xf32>
    %c38 = arith.constant 38 : index
    %c0_90 = arith.constant 0 : index
    %c0_91 = arith.constant 0 : index
    %214 = vector.load %arg5[%c38, %c0_90, %c0_91] : memref<49x16x256xf32, #tpu.memory_space<vmem>>, vector<1x16x256xf32>
    %215 = vector.shape_cast %214 : vector<1x16x256xf32> to vector<16x256xf32>
    %216 = arith.mulf %213, %215 : vector<16x256xf32>
    %217 = arith.addf %212, %216 : vector<16x256xf32>
    %c223_i32 = arith.constant 223 : i32
    %218 = tpu.dynamic_rotate %22 by %c223_i32 dim 1 : vector<16x256xf32>, i32 -> vector<16x256xf32>
    %c39 = arith.constant 39 : index
    %c0_92 = arith.constant 0 : index
    %c0_93 = arith.constant 0 : index
    %219 = vector.load %arg5[%c39, %c0_92, %c0_93] : memref<49x16x256xf32, #tpu.memory_space<vmem>>, vector<1x16x256xf32>
    %220 = vector.shape_cast %219 : vector<1x16x256xf32> to vector<16x256xf32>
    %221 = arith.mulf %218, %220 : vector<16x256xf32>
    %222 = arith.addf %217, %221 : vector<16x256xf32>
    %c222_i32 = arith.constant 222 : i32
    %223 = tpu.dynamic_rotate %22 by %c222_i32 dim 1 : vector<16x256xf32>, i32 -> vector<16x256xf32>
    %c40 = arith.constant 40 : index
    %c0_94 = arith.constant 0 : index
    %c0_95 = arith.constant 0 : index
    %224 = vector.load %arg5[%c40, %c0_94, %c0_95] : memref<49x16x256xf32, #tpu.memory_space<vmem>>, vector<1x16x256xf32>
    %225 = vector.shape_cast %224 : vector<1x16x256xf32> to vector<16x256xf32>
    %226 = arith.mulf %223, %225 : vector<16x256xf32>
    %227 = arith.addf %222, %226 : vector<16x256xf32>
    %c221_i32 = arith.constant 221 : i32
    %228 = tpu.dynamic_rotate %22 by %c221_i32 dim 1 : vector<16x256xf32>, i32 -> vector<16x256xf32>
    %c41 = arith.constant 41 : index
    %c0_96 = arith.constant 0 : index
    %c0_97 = arith.constant 0 : index
    %229 = vector.load %arg5[%c41, %c0_96, %c0_97] : memref<49x16x256xf32, #tpu.memory_space<vmem>>, vector<1x16x256xf32>
    %230 = vector.shape_cast %229 : vector<1x16x256xf32> to vector<16x256xf32>
    %231 = arith.mulf %228, %230 : vector<16x256xf32>
    %232 = arith.addf %227, %231 : vector<16x256xf32>
    %c211_i32 = arith.constant 211 : i32
    %233 = tpu.dynamic_rotate %22 by %c211_i32 dim 1 : vector<16x256xf32>, i32 -> vector<16x256xf32>
    %c42 = arith.constant 42 : index
    %c0_98 = arith.constant 0 : index
    %c0_99 = arith.constant 0 : index
    %234 = vector.load %arg5[%c42, %c0_98, %c0_99] : memref<49x16x256xf32, #tpu.memory_space<vmem>>, vector<1x16x256xf32>
    %235 = vector.shape_cast %234 : vector<1x16x256xf32> to vector<16x256xf32>
    %236 = arith.mulf %233, %235 : vector<16x256xf32>
    %237 = arith.addf %232, %236 : vector<16x256xf32>
    %c210_i32 = arith.constant 210 : i32
    %238 = tpu.dynamic_rotate %22 by %c210_i32 dim 1 : vector<16x256xf32>, i32 -> vector<16x256xf32>
    %c43 = arith.constant 43 : index
    %c0_100 = arith.constant 0 : index
    %c0_101 = arith.constant 0 : index
    %239 = vector.load %arg5[%c43, %c0_100, %c0_101] : memref<49x16x256xf32, #tpu.memory_space<vmem>>, vector<1x16x256xf32>
    %240 = vector.shape_cast %239 : vector<1x16x256xf32> to vector<16x256xf32>
    %241 = arith.mulf %238, %240 : vector<16x256xf32>
    %242 = arith.addf %237, %241 : vector<16x256xf32>
    %c209_i32 = arith.constant 209 : i32
    %243 = tpu.dynamic_rotate %22 by %c209_i32 dim 1 : vector<16x256xf32>, i32 -> vector<16x256xf32>
    %c44 = arith.constant 44 : index
    %c0_102 = arith.constant 0 : index
    %c0_103 = arith.constant 0 : index
    %244 = vector.load %arg5[%c44, %c0_102, %c0_103] : memref<49x16x256xf32, #tpu.memory_space<vmem>>, vector<1x16x256xf32>
    %245 = vector.shape_cast %244 : vector<1x16x256xf32> to vector<16x256xf32>
    %246 = arith.mulf %243, %245 : vector<16x256xf32>
    %247 = arith.addf %242, %246 : vector<16x256xf32>
    %c208_i32 = arith.constant 208 : i32
    %248 = tpu.dynamic_rotate %22 by %c208_i32 dim 1 : vector<16x256xf32>, i32 -> vector<16x256xf32>
    %c45 = arith.constant 45 : index
    %c0_104 = arith.constant 0 : index
    %c0_105 = arith.constant 0 : index
    %249 = vector.load %arg5[%c45, %c0_104, %c0_105] : memref<49x16x256xf32, #tpu.memory_space<vmem>>, vector<1x16x256xf32>
    %250 = vector.shape_cast %249 : vector<1x16x256xf32> to vector<16x256xf32>
    %251 = arith.mulf %248, %250 : vector<16x256xf32>
    %252 = arith.addf %247, %251 : vector<16x256xf32>
    %c207_i32 = arith.constant 207 : i32
    %253 = tpu.dynamic_rotate %22 by %c207_i32 dim 1 : vector<16x256xf32>, i32 -> vector<16x256xf32>
    %c46 = arith.constant 46 : index
    %c0_106 = arith.constant 0 : index
    %c0_107 = arith.constant 0 : index
    %254 = vector.load %arg5[%c46, %c0_106, %c0_107] : memref<49x16x256xf32, #tpu.memory_space<vmem>>, vector<1x16x256xf32>
    %255 = vector.shape_cast %254 : vector<1x16x256xf32> to vector<16x256xf32>
    %256 = arith.mulf %253, %255 : vector<16x256xf32>
    %257 = arith.addf %252, %256 : vector<16x256xf32>
    %c206_i32 = arith.constant 206 : i32
    %258 = tpu.dynamic_rotate %22 by %c206_i32 dim 1 : vector<16x256xf32>, i32 -> vector<16x256xf32>
    %c47 = arith.constant 47 : index
    %c0_108 = arith.constant 0 : index
    %c0_109 = arith.constant 0 : index
    %259 = vector.load %arg5[%c47, %c0_108, %c0_109] : memref<49x16x256xf32, #tpu.memory_space<vmem>>, vector<1x16x256xf32>
    %260 = vector.shape_cast %259 : vector<1x16x256xf32> to vector<16x256xf32>
    %261 = arith.mulf %258, %260 : vector<16x256xf32>
    %262 = arith.addf %257, %261 : vector<16x256xf32>
    %c205_i32 = arith.constant 205 : i32
    %263 = tpu.dynamic_rotate %22 by %c205_i32 dim 1 : vector<16x256xf32>, i32 -> vector<16x256xf32>
    %c48 = arith.constant 48 : index
    %c0_110 = arith.constant 0 : index
    %c0_111 = arith.constant 0 : index
    %264 = vector.load %arg5[%c48, %c0_110, %c0_111] : memref<49x16x256xf32, #tpu.memory_space<vmem>>, vector<1x16x256xf32>
    %265 = vector.shape_cast %264 : vector<1x16x256xf32> to vector<16x256xf32>
    %266 = arith.mulf %263, %265 : vector<16x256xf32>
    %267 = arith.addf %262, %266 : vector<16x256xf32>
    %c0_112 = arith.constant 0 : index
    %c0_113 = arith.constant 0 : index
    %268 = vector.load %arg6[%c0_112, %c0_113] : memref<16x1xf32, #tpu.memory_space<vmem>>, vector<16x1xf32>
    %269 = vector.broadcast %268 : vector<16x1xf32> to vector<16x256xf32>
    %270 = arith.addf %267, %269 : vector<16x256xf32>
    %271 = arith.addf %270, %22 : vector<16x256xf32>
    %cst_114 = arith.constant 5.000000e-01 : f32
    %272 = vector.broadcast %cst_114 : f32 to vector<16x256xf32>
    %273 = arith.mulf %272, %271 : vector<16x256xf32>
    %cst_115 = arith.constant 4.471500e-02 : f32
    %274 = vector.broadcast %cst_115 : f32 to vector<16x256xf32>
    %275 = arith.mulf %274, %271 : vector<16x256xf32>
    %276 = arith.mulf %275, %271 : vector<16x256xf32>
    %277 = arith.mulf %276, %271 : vector<16x256xf32>
    %278 = arith.addf %271, %277 : vector<16x256xf32>
    %cst_116 = arith.constant 0.797884583 : f32
    %279 = vector.broadcast %cst_116 : f32 to vector<16x256xf32>
    %280 = arith.mulf %279, %278 : vector<16x256xf32>
    %281 = math.tanh %280 : vector<16x256xf32>
    %cst_117 = arith.constant 1.000000e+00 : f32
    %282 = vector.broadcast %cst_117 : f32 to vector<16x256xf32>
    %283 = arith.addf %282, %281 : vector<16x256xf32>
    %284 = arith.mulf %273, %283 : vector<16x256xf32>
    %c0_118 = arith.constant 0 : index
    %c0_119 = arith.constant 0 : index
    %285 = vector.load %arg7[%c0_118, %c0_119] : memref<16x1xf32, #tpu.memory_space<vmem>>, vector<16x1xf32>
    %286 = vector.broadcast %285 : vector<16x1xf32> to vector<16x256xf32>
    %287 = arith.mulf %284, %286 : vector<16x256xf32>
    %c0_120 = arith.constant 0 : index
    %c0_121 = arith.constant 0 : index
    %288 = vector.load %arg8[%c0_120, %c0_121] : memref<16x1xf32, #tpu.memory_space<vmem>>, vector<16x1xf32>
    %289 = vector.broadcast %288 : vector<16x1xf32> to vector<16x256xf32>
    %290 = arith.addf %287, %289 : vector<16x256xf32>
    %c0_122 = arith.constant 0 : index
    %c0_123 = arith.constant 0 : index
    %291 = vector.load %arg9[%c0_122, %c0_123] : memref<16x16xf32, #tpu.memory_space<vmem>>, vector<16x16xf32>
    %cst_124 = arith.constant dense<0.000000e+00> : vector<16x256xf32>
    %292 = tpu.matmul %291, %290, %cst_124 {dimension_numbers = #tpu.dot_dimension_numbers<[1], [0], [0], [1], [0, 0, 1, 1], [], []>} : vector<16x16xf32>, vector<16x256xf32>, vector<16x256xf32> -> vector<16x256xf32>
    %c0_125 = arith.constant 0 : index
    %c0_126 = arith.constant 0 : index
    %293 = vector.load %arg10[%c0_125, %c0_126] : memref<16x1xf32, #tpu.memory_space<vmem>>, vector<16x1xf32>
    %294 = vector.broadcast %293 : vector<16x1xf32> to vector<16x256xf32>
    %295 = arith.addf %292, %294 : vector<16x256xf32>
    %c0_127 = arith.constant 0 : index
    %c0_128 = arith.constant 0 : index
    %296 = vector.load %arg11[%c0_127, %c0_128] : memref<256x10xf32, #tpu.memory_space<vmem>>, vector<256x10xf32>
    %cst_129 = arith.constant dense<0.000000e+00> : vector<16x10xf32>
    %297 = tpu.matmul %295, %296, %cst_129 {dimension_numbers = #tpu.dot_dimension_numbers<[1], [0], [0], [1], [0, 0, 1, 1], [], []>} : vector<16x256xf32>, vector<256x10xf32>, vector<16x10xf32> -> vector<16x10xf32>
    %c0_130 = arith.constant 0 : index
    %c0_131 = arith.constant 0 : index
    %298 = vector.load %arg13[%c0_130, %c0_131] : memref<4x16xf32, #tpu.memory_space<vmem>>, vector<4x16xf32>
    %cst_132 = arith.constant dense<0.000000e+00> : vector<4x10xf32>
    %299 = tpu.matmul %298, %297, %cst_132 {dimension_numbers = #tpu.dot_dimension_numbers<[1], [0], [0], [1], [0, 0, 1, 1], [], []>} : vector<4x16xf32>, vector<16x10xf32>, vector<4x10xf32> -> vector<4x10xf32>
    %c0_133 = arith.constant 0 : index
    %c0_134 = arith.constant 0 : index
    %300 = vector.load %arg14[%c0_133, %c0_134] : memref<4x1xf32, #tpu.memory_space<vmem>>, vector<4x1xf32>
    %301 = vector.broadcast %300 : vector<4x1xf32> to vector<4x10xf32>
    %302 = arith.addf %299, %301 : vector<4x10xf32>
    %cst_135 = arith.constant 5.000000e-01 : f32
    %303 = vector.broadcast %cst_135 : f32 to vector<4x10xf32>
    %304 = arith.mulf %303, %302 : vector<4x10xf32>
    %cst_136 = arith.constant 4.471500e-02 : f32
    %305 = vector.broadcast %cst_136 : f32 to vector<4x10xf32>
    %306 = arith.mulf %305, %302 : vector<4x10xf32>
    %307 = arith.mulf %306, %302 : vector<4x10xf32>
    %308 = arith.mulf %307, %302 : vector<4x10xf32>
    %309 = arith.addf %302, %308 : vector<4x10xf32>
    %cst_137 = arith.constant 0.797884583 : f32
    %310 = vector.broadcast %cst_137 : f32 to vector<4x10xf32>
    %311 = arith.mulf %310, %309 : vector<4x10xf32>
    %312 = math.tanh %311 : vector<4x10xf32>
    %cst_138 = arith.constant 1.000000e+00 : f32
    %313 = vector.broadcast %cst_138 : f32 to vector<4x10xf32>
    %314 = arith.addf %313, %312 : vector<4x10xf32>
    %315 = arith.mulf %304, %314 : vector<4x10xf32>
    %c0_139 = arith.constant 0 : index
    %c0_140 = arith.constant 0 : index
    %316 = vector.load %arg15[%c0_139, %c0_140] : memref<32x4xf32, #tpu.memory_space<vmem>>, vector<32x4xf32>
    %cst_141 = arith.constant dense<0.000000e+00> : vector<32x10xf32>
    %317 = tpu.matmul %316, %315, %cst_141 {dimension_numbers = #tpu.dot_dimension_numbers<[1], [0], [0], [1], [0, 0, 1, 1], [], []>} : vector<32x4xf32>, vector<4x10xf32>, vector<32x10xf32> -> vector<32x10xf32>
    %c0_142 = arith.constant 0 : index
    %c0_143 = arith.constant 0 : index
    %318 = vector.load %arg16[%c0_142, %c0_143] : memref<32x1xf32, #tpu.memory_space<vmem>>, vector<32x1xf32>
    %319 = vector.broadcast %318 : vector<32x1xf32> to vector<32x10xf32>
    %320 = arith.addf %317, %319 : vector<32x10xf32>
    %321 = vector.extract_strided_slice %320 {offsets = [0, 0], sizes = [16, 9], strides = [1, 1]} : vector<32x10xf32> to vector<16x9xf32>
    %322 = vector.extract_strided_slice %320 {offsets = [16, 0], sizes = [16, 9], strides = [1, 1]} : vector<32x10xf32> to vector<16x9xf32>
    %323 = arith.subf %321, %322 : vector<16x9xf32>
    %324 = arith.negf %323 : vector<16x9xf32>
    %325 = math.exp %324 : vector<16x9xf32>
    %cst_144 = arith.constant 1.000000e+00 : f32
    %326 = vector.broadcast %cst_144 : f32 to vector<16x9xf32>
    %327 = arith.addf %326, %325 : vector<16x9xf32>
    %328 = arith.divf %326, %327 : vector<16x9xf32>
    %329 = vector.extract_strided_slice %320 {offsets = [0, 9], sizes = [16, 1], strides = [1, 1]} : vector<32x10xf32> to vector<16x1xf32>
    %330 = vector.extract_strided_slice %320 {offsets = [16, 9], sizes = [16, 1], strides = [1, 1]} : vector<32x10xf32> to vector<16x1xf32>
    %331 = arith.subf %329, %330 : vector<16x1xf32>
    %332 = arith.negf %331 : vector<16x1xf32>
    %333 = math.exp %332 : vector<16x1xf32>
    %cst_145 = arith.constant 1.000000e+00 : f32
    %334 = vector.broadcast %cst_145 : f32 to vector<16x1xf32>
    %335 = arith.addf %334, %333 : vector<16x1xf32>
    %336 = arith.divf %334, %335 : vector<16x1xf32>
    %c0_146 = arith.constant 0 : index
    %c0_147 = arith.constant 0 : index
    %337 = vector.load %arg17[%c0_146, %c0_147] : memref<16x9xf32, #tpu.memory_space<vmem>>, vector<16x9xf32>
    %338 = arith.mulf %328, %337 : vector<16x9xf32>
    %cst_148 = arith.constant 1.000000e+00 : f32
    %339 = vector.broadcast %cst_148 : f32 to vector<16x9xf32>
    %340 = arith.subf %339, %328 : vector<16x9xf32>
    %c0_149 = arith.constant 0 : index
    %c0_150 = arith.constant 0 : index
    %341 = vector.load %arg18[%c0_149, %c0_150] : memref<16x9xf32, #tpu.memory_space<vmem>>, vector<16x9xf32>
    %342 = arith.mulf %340, %341 : vector<16x9xf32>
    %343 = arith.addf %338, %342 : vector<16x9xf32>
    %c0_151 = arith.constant 0 : index
    %c0_152 = arith.constant 0 : index
    %344 = vector.load %arg19[%c0_151, %c0_152] : memref<16x1xf32, #tpu.memory_space<vmem>>, vector<16x1xf32>
    %345 = arith.mulf %336, %344 : vector<16x1xf32>
    %cst_153 = arith.constant 1.000000e+00 : f32
    %346 = vector.broadcast %cst_153 : f32 to vector<16x1xf32>
    %347 = arith.subf %346, %336 : vector<16x1xf32>
    %c0_154 = arith.constant 0 : index
    %c0_155 = arith.constant 0 : index
    %348 = vector.load %arg20[%c0_154, %c0_155] : memref<16x1xf32, #tpu.memory_space<vmem>>, vector<16x1xf32>
    %349 = arith.mulf %347, %348 : vector<16x1xf32>
    %350 = arith.addf %345, %349 : vector<16x1xf32>
    %cst_156 = arith.constant 0.000000e+00 : f32
    %351 = vector.broadcast %cst_156 : f32 to vector<16x256xf32>
    %c17_i32_157 = arith.constant 17 : i32
    %352 = tpu.dynamic_rotate %295 by %c17_i32_157 dim 1 : vector<16x256xf32>, i32 -> vector<16x256xf32>
    %c0_158 = arith.constant 0 : index
    %c0_159 = arith.constant 0 : index
    %353 = vector.load %arg12[%c0_158, %c0_159] : memref<9x256xf32, #tpu.memory_space<vmem>>, vector<1x256xf32>
    %354 = vector.broadcast %353 : vector<1x256xf32> to vector<16x256xf32>
    %355 = arith.mulf %352, %354 : vector<16x256xf32>
    %356 = vector.extract_strided_slice %343 {offsets = [0, 0], sizes = [16, 1], strides = [1, 1]} : vector<16x9xf32> to vector<16x1xf32>
    %357 = vector.broadcast %356 : vector<16x1xf32> to vector<16x256xf32>
    %358 = arith.mulf %355, %357 : vector<16x256xf32>
    %359 = arith.addf %351, %358 : vector<16x256xf32>
    %c16_i32_160 = arith.constant 16 : i32
    %360 = tpu.dynamic_rotate %295 by %c16_i32_160 dim 1 : vector<16x256xf32>, i32 -> vector<16x256xf32>
    %c1_161 = arith.constant 1 : index
    %c0_162 = arith.constant 0 : index
    %361 = vector.load %arg12[%c1_161, %c0_162] : memref<9x256xf32, #tpu.memory_space<vmem>>, vector<1x256xf32>
    %362 = vector.broadcast %361 : vector<1x256xf32> to vector<16x256xf32>
    %363 = arith.mulf %360, %362 : vector<16x256xf32>
    %364 = vector.extract_strided_slice %343 {offsets = [0, 1], sizes = [16, 1], strides = [1, 1]} : vector<16x9xf32> to vector<16x1xf32>
    %365 = vector.broadcast %364 : vector<16x1xf32> to vector<16x256xf32>
    %366 = arith.mulf %363, %365 : vector<16x256xf32>
    %367 = arith.addf %359, %366 : vector<16x256xf32>
    %c15_i32_163 = arith.constant 15 : i32
    %368 = tpu.dynamic_rotate %295 by %c15_i32_163 dim 1 : vector<16x256xf32>, i32 -> vector<16x256xf32>
    %c2_164 = arith.constant 2 : index
    %c0_165 = arith.constant 0 : index
    %369 = vector.load %arg12[%c2_164, %c0_165] : memref<9x256xf32, #tpu.memory_space<vmem>>, vector<1x256xf32>
    %370 = vector.broadcast %369 : vector<1x256xf32> to vector<16x256xf32>
    %371 = arith.mulf %368, %370 : vector<16x256xf32>
    %372 = vector.extract_strided_slice %343 {offsets = [0, 2], sizes = [16, 1], strides = [1, 1]} : vector<16x9xf32> to vector<16x1xf32>
    %373 = vector.broadcast %372 : vector<16x1xf32> to vector<16x256xf32>
    %374 = arith.mulf %371, %373 : vector<16x256xf32>
    %375 = arith.addf %367, %374 : vector<16x256xf32>
    %c1_i32_166 = arith.constant 1 : i32
    %376 = tpu.dynamic_rotate %295 by %c1_i32_166 dim 1 : vector<16x256xf32>, i32 -> vector<16x256xf32>
    %c3_167 = arith.constant 3 : index
    %c0_168 = arith.constant 0 : index
    %377 = vector.load %arg12[%c3_167, %c0_168] : memref<9x256xf32, #tpu.memory_space<vmem>>, vector<1x256xf32>
    %378 = vector.broadcast %377 : vector<1x256xf32> to vector<16x256xf32>
    %379 = arith.mulf %376, %378 : vector<16x256xf32>
    %380 = vector.extract_strided_slice %343 {offsets = [0, 3], sizes = [16, 1], strides = [1, 1]} : vector<16x9xf32> to vector<16x1xf32>
    %381 = vector.broadcast %380 : vector<16x1xf32> to vector<16x256xf32>
    %382 = arith.mulf %379, %381 : vector<16x256xf32>
    %383 = arith.addf %375, %382 : vector<16x256xf32>
    %c4_169 = arith.constant 4 : index
    %c0_170 = arith.constant 0 : index
    %384 = vector.load %arg12[%c4_169, %c0_170] : memref<9x256xf32, #tpu.memory_space<vmem>>, vector<1x256xf32>
    %385 = vector.broadcast %384 : vector<1x256xf32> to vector<16x256xf32>
    %386 = arith.mulf %295, %385 : vector<16x256xf32>
    %387 = vector.extract_strided_slice %343 {offsets = [0, 4], sizes = [16, 1], strides = [1, 1]} : vector<16x9xf32> to vector<16x1xf32>
    %388 = vector.broadcast %387 : vector<16x1xf32> to vector<16x256xf32>
    %389 = arith.mulf %386, %388 : vector<16x256xf32>
    %390 = arith.addf %383, %389 : vector<16x256xf32>
    %c255_i32_171 = arith.constant 255 : i32
    %391 = tpu.dynamic_rotate %295 by %c255_i32_171 dim 1 : vector<16x256xf32>, i32 -> vector<16x256xf32>
    %c5_172 = arith.constant 5 : index
    %c0_173 = arith.constant 0 : index
    %392 = vector.load %arg12[%c5_172, %c0_173] : memref<9x256xf32, #tpu.memory_space<vmem>>, vector<1x256xf32>
    %393 = vector.broadcast %392 : vector<1x256xf32> to vector<16x256xf32>
    %394 = arith.mulf %391, %393 : vector<16x256xf32>
    %395 = vector.extract_strided_slice %343 {offsets = [0, 5], sizes = [16, 1], strides = [1, 1]} : vector<16x9xf32> to vector<16x1xf32>
    %396 = vector.broadcast %395 : vector<16x1xf32> to vector<16x256xf32>
    %397 = arith.mulf %394, %396 : vector<16x256xf32>
    %398 = arith.addf %390, %397 : vector<16x256xf32>
    %c241_i32_174 = arith.constant 241 : i32
    %399 = tpu.dynamic_rotate %295 by %c241_i32_174 dim 1 : vector<16x256xf32>, i32 -> vector<16x256xf32>
    %c6_175 = arith.constant 6 : index
    %c0_176 = arith.constant 0 : index
    %400 = vector.load %arg12[%c6_175, %c0_176] : memref<9x256xf32, #tpu.memory_space<vmem>>, vector<1x256xf32>
    %401 = vector.broadcast %400 : vector<1x256xf32> to vector<16x256xf32>
    %402 = arith.mulf %399, %401 : vector<16x256xf32>
    %403 = vector.extract_strided_slice %343 {offsets = [0, 6], sizes = [16, 1], strides = [1, 1]} : vector<16x9xf32> to vector<16x1xf32>
    %404 = vector.broadcast %403 : vector<16x1xf32> to vector<16x256xf32>
    %405 = arith.mulf %402, %404 : vector<16x256xf32>
    %406 = arith.addf %398, %405 : vector<16x256xf32>
    %c240_i32_177 = arith.constant 240 : i32
    %407 = tpu.dynamic_rotate %295 by %c240_i32_177 dim 1 : vector<16x256xf32>, i32 -> vector<16x256xf32>
    %c7_178 = arith.constant 7 : index
    %c0_179 = arith.constant 0 : index
    %408 = vector.load %arg12[%c7_178, %c0_179] : memref<9x256xf32, #tpu.memory_space<vmem>>, vector<1x256xf32>
    %409 = vector.broadcast %408 : vector<1x256xf32> to vector<16x256xf32>
    %410 = arith.mulf %407, %409 : vector<16x256xf32>
    %411 = vector.extract_strided_slice %343 {offsets = [0, 7], sizes = [16, 1], strides = [1, 1]} : vector<16x9xf32> to vector<16x1xf32>
    %412 = vector.broadcast %411 : vector<16x1xf32> to vector<16x256xf32>
    %413 = arith.mulf %410, %412 : vector<16x256xf32>
    %414 = arith.addf %406, %413 : vector<16x256xf32>
    %c239_i32_180 = arith.constant 239 : i32
    %415 = tpu.dynamic_rotate %295 by %c239_i32_180 dim 1 : vector<16x256xf32>, i32 -> vector<16x256xf32>
    %c8_181 = arith.constant 8 : index
    %c0_182 = arith.constant 0 : index
    %416 = vector.load %arg12[%c8_181, %c0_182] : memref<9x256xf32, #tpu.memory_space<vmem>>, vector<1x256xf32>
    %417 = vector.broadcast %416 : vector<1x256xf32> to vector<16x256xf32>
    %418 = arith.mulf %415, %417 : vector<16x256xf32>
    %419 = vector.extract_strided_slice %343 {offsets = [0, 8], sizes = [16, 1], strides = [1, 1]} : vector<16x9xf32> to vector<16x1xf32>
    %420 = vector.broadcast %419 : vector<16x1xf32> to vector<16x256xf32>
    %421 = arith.mulf %418, %420 : vector<16x256xf32>
    %422 = arith.addf %414, %421 : vector<16x256xf32>
    %423 = vector.broadcast %350 : vector<16x1xf32> to vector<16x256xf32>
    %424 = arith.addf %422, %423 : vector<16x256xf32>
    %cst_183 = arith.constant dense<0.000000e+00> : vector<16xf32>
    %425 = vector.multi_reduction <add>, %424, %cst_183 [1] : vector<16x256xf32> to vector<16xf32>
    %426 = vector.shape_cast %425 : vector<16xf32> to vector<16x1xf32>
    %cst_184 = arith.constant 2.560000e+02 : f32
    %427 = vector.broadcast %cst_184 : f32 to vector<16x1xf32>
    %428 = arith.divf %426, %427 : vector<16x1xf32>
    %c0_185 = arith.constant 0 : index
    %c0_186 = arith.constant 0 : index
    %429 = vector.load %arg21[%c0_185, %c0_186] : memref<16x2xf32, #tpu.memory_space<vmem>>, vector<16x2xf32>
    %430 = vector.broadcast %428 : vector<16x1xf32> to vector<16x2xf32>
    %431 = arith.mulf %429, %430 : vector<16x2xf32>
    %cst_187 = arith.constant dense<0.000000e+00> : vector<2xf32>
    %432 = vector.multi_reduction <add>, %431, %cst_187 [0] : vector<16x2xf32> to vector<2xf32>
    %433 = vector.shape_cast %432 : vector<2xf32> to vector<1x2xf32>
    %cst_188 = arith.constant 0.000000e+00 : f32
    %434 = vector.broadcast %cst_188 : f32 to vector<1x2xf32>
    %435 = arith.maximumf %433, %434 : vector<1x2xf32>
    %c0_189 = arith.constant 0 : index
    %c0_190 = arith.constant 0 : index
    %436 = vector.load %arg22[%c0_189, %c0_190] : memref<16x2xf32, #tpu.memory_space<vmem>>, vector<16x2xf32>
    %437 = vector.broadcast %435 : vector<1x2xf32> to vector<16x2xf32>
    %438 = arith.mulf %436, %437 : vector<16x2xf32>
    %cst_191 = arith.constant dense<0.000000e+00> : vector<16xf32>
    %439 = vector.multi_reduction <add>, %438, %cst_191 [1] : vector<16x2xf32> to vector<16xf32>
    %440 = vector.shape_cast %439 : vector<16xf32> to vector<16x1xf32>
    %441 = arith.negf %440 : vector<16x1xf32>
    %442 = math.exp %441 : vector<16x1xf32>
    %cst_192 = arith.constant 1.000000e+00 : f32
    %443 = vector.broadcast %cst_192 : f32 to vector<16x1xf32>
    %444 = arith.addf %443, %442 : vector<16x1xf32>
    %445 = arith.divf %443, %444 : vector<16x1xf32>
    %446 = vector.broadcast %445 : vector<16x1xf32> to vector<16x256xf32>
    %447 = arith.mulf %424, %446 : vector<16x256xf32>
    %448 = arith.negf %447 : vector<16x256xf32>
    %449 = math.exp %448 : vector<16x256xf32>
    %cst_193 = arith.constant 1.000000e+00 : f32
    %450 = vector.broadcast %cst_193 : f32 to vector<16x256xf32>
    %451 = arith.addf %450, %449 : vector<16x256xf32>
    %452 = arith.divf %450, %451 : vector<16x256xf32>
    %453 = arith.addf %452, %1 : vector<16x256xf32>
    %c0_194 = arith.constant 0 : index
    %c0_195 = arith.constant 0 : index
    %c0_196 = arith.constant 0 : index
    %454 = vector.load %arg23[%c0_194, %c0_195, %c0_196] : memref<1x16x256xf32, #tpu.memory_space<vmem>>, vector<1x16x256xf32>
    %455 = vector.shape_cast %454 : vector<1x16x256xf32> to vector<16x256xf32>
    %456 = vector.shape_cast %453 : vector<16x256xf32> to vector<1x16x256xf32>
    tpu.vector_store %arg23[%c0_194, %c0_195, %c0_196], %456 {strides = array<i32>} : memref<1x16x256xf32, #tpu.memory_space<vmem>>, vector<1x16x256xf32>,
    return
  }
  func.func @transform_0(%arg0: i32) -> (i32, i32, i32) {
    %c0_i32 = arith.constant 0 : i32
    %c0_i32_0 = arith.constant 0 : i32
    %c0_i32_1 = arith.constant 0 : i32
    return %arg0, %c0_i32, %c0_i32_0 : i32, i32, i32
  }
  func.func @transform_1(%arg0: i32) -> (i32, i32) {
    %c0_i32 = arith.constant 0 : i32
    %c0_i32_0 = arith.constant 0 : i32
    %c0_i32_1 = arith.constant 0 : i32
    return %c0_i32, %c0_i32_0 : i32, i32
  }
  func.func @transform_2(%arg0: i32) -> (i32, i32) {
    %c0_i32 = arith.constant 0 : i32
    %c0_i32_0 = arith.constant 0 : i32
    %c0_i32_1 = arith.constant 0 : i32
    return %c0_i32, %c0_i32_0 : i32, i32
  }
  func.func @transform_3(%arg0: i32) -> (i32, i32) {
    %c0_i32 = arith.constant 0 : i32
    %c0_i32_0 = arith.constant 0 : i32
    %c0_i32_1 = arith.constant 0 : i32
    return %c0_i32, %c0_i32_0 : i32, i32
  }
  func.func @transform_4(%arg0: i32) -> (i32, i32, i32) {
    %c0_i32 = arith.constant 0 : i32
    %c0_i32_0 = arith.constant 0 : i32
    %c0_i32_1 = arith.constant 0 : i32
    %c0_i32_2 = arith.constant 0 : i32
    return %c0_i32, %c0_i32_0, %c0_i32_1 : i32, i32, i32
  }
  func.func @transform_5(%arg0: i32) -> (i32, i32) {
    %c0_i32 = arith.constant 0 : i32
    %c0_i32_0 = arith.constant 0 : i32
    %c0_i32_1 = arith.constant 0 : i32
    return %c0_i32, %c0_i32_0 : i32, i32
  }
  func.func @transform_6(%arg0: i32) -> (i32, i32) {
    %c0_i32 = arith.constant 0 : i32
    %c0_i32_0 = arith.constant 0 : i32
    %c0_i32_1 = arith.constant 0 : i32
    return %c0_i32, %c0_i32_0 : i32, i32
  }
  func.func @transform_7(%arg0: i32) -> (i32, i32) {
    %c0_i32 = arith.constant 0 : i32
    %c0_i32_0 = arith.constant 0 : i32
    %c0_i32_1 = arith.constant 0 : i32
    return %c0_i32, %c0_i32_0 : i32, i32
  }
  func.func @transform_8(%arg0: i32) -> (i32, i32) {
    %c0_i32 = arith.constant 0 : i32
    %c0_i32_0 = arith.constant 0 : i32
    %c0_i32_1 = arith.constant 0 : i32
    return %c0_i32, %c0_i32_0 : i32, i32
  }
  func.func @transform_9(%arg0: i32) -> (i32, i32) {
    %c0_i32 = arith.constant 0 : i32
    %c0_i32_0 = arith.constant 0 : i32
    %c0_i32_1 = arith.constant 0 : i32
    return %c0_i32, %c0_i32_0 : i32, i32
  }
  func.func @transform_10(%arg0: i32) -> (i32, i32) {
    %c0_i32 = arith.constant 0 : i32
    %c0_i32_0 = arith.constant 0 : i32
    %c0_i32_1 = arith.constant 0 : i32
    return %c0_i32, %c0_i32_0 : i32, i32
  }
  func.func @transform_11(%arg0: i32) -> (i32, i32) {
    %c0_i32 = arith.constant 0 : i32
    %c0_i32_0 = arith.constant 0 : i32
    %c0_i32_1 = arith.constant 0 : i32
    return %c0_i32, %c0_i32_0 : i32, i32
  }
  func.func @transform_12(%arg0: i32) -> (i32, i32) {
    %c0_i32 = arith.constant 0 : i32
    %c0_i32_0 = arith.constant 0 : i32
    %c0_i32_1 = arith.constant 0 : i32
    return %c0_i32, %c0_i32_0 : i32, i32
  }
  func.func @transform_13(%arg0: i32) -> (i32, i32) {
    %c0_i32 = arith.constant 0 : i32
    %c0_i32_0 = arith.constant 0 : i32
    %c0_i32_1 = arith.constant 0 : i32
    return %c0_i32, %c0_i32_0 : i32, i32
  }
  func.func @transform_14(%arg0: i32) -> (i32, i32) {
    %c0_i32 = arith.constant 0 : i32
    %c0_i32_0 = arith.constant 0 : i32
    %c0_i32_1 = arith.constant 0 : i32
    return %c0_i32, %c0_i32_0 : i32, i32
  }
  func.func @transform_15(%arg0: i32) -> (i32, i32) {
    %c0_i32 = arith.constant 0 : i32
    %c0_i32_0 = arith.constant 0 : i32
    %c0_i32_1 = arith.constant 0 : i32
    return %c0_i32, %c0_i32_0 : i32, i32
  }
  func.func @transform_16(%arg0: i32) -> (i32, i32) {
    %c0_i32 = arith.constant 0 : i32
    %c0_i32_0 = arith.constant 0 : i32
    %c0_i32_1 = arith.constant 0 : i32
    return %c0_i32, %c0_i32_0 : i32, i32
  }
  func.func @transform_17(%arg0: i32) -> (i32, i32) {
    %c0_i32 = arith.constant 0 : i32
    %c0_i32_0 = arith.constant 0 : i32
    %c0_i32_1 = arith.constant 0 : i32
    return %c0_i32, %c0_i32_0 : i32, i32
  }
  func.func @transform_18(%arg0: i32) -> (i32, i32) {
    %c0_i32 = arith.constant 0 : i32
    %c0_i32_0 = arith.constant 0 : i32
    %c0_i32_1 = arith.constant 0 : i32
    return %c0_i32, %c0_i32_0 : i32, i32
  }
  func.func @transform_19(%arg0: i32) -> (i32, i32) {
    %c0_i32 = arith.constant 0 : i32
    %c0_i32_0 = arith.constant 0 : i32
    %c0_i32_1 = arith.constant 0 : i32
    return %c0_i32, %c0_i32_0 : i32, i32
  }
  func.func @transform_20(%arg0: i32) -> (i32, i32) {
    %c0_i32 = arith.constant 0 : i32
    %c0_i32_0 = arith.constant 0 : i32
    %c0_i32_1 = arith.constant 0 : i32
    return %c0_i32, %c0_i32_0 : i32, i32
  }
  func.func @transform_21(%arg0: i32) -> (i32, i32) {
    %c0_i32 = arith.constant 0 : i32
    %c0_i32_0 = arith.constant 0 : i32
    %c0_i32_1 = arith.constant 0 : i32
    return %c0_i32, %c0_i32_0 : i32, i32
  }
  func.func @transform_22(%arg0: i32) -> (i32, i32, i32) {
    %c0_i32 = arith.constant 0 : i32
    %c0_i32_0 = arith.constant 0 : i32
    %c0_i32_1 = arith.constant 0 : i32
    return %arg0, %c0_i32, %c0_i32_0 : i32, i32, i32
  }
}

</mosaic_0001>

<bundles_post_ra>
// kernel: luky_forward.1
= control target key start
LH: loop header
LB: loop body
LE: loop exit
PB: predicated region body
PF: predicated region fallthrough
CT: control target
= control target key end

     0   :  { %s5999_s0 = inlined_call_operand.vmem [shape: f32[2,16,256], index: 0, kind: input, shape index: {}]   ;;  %s6000_s1 = inlined_call_operand.vmem [shape: f32[16,16], index: 1, kind: input, shape index: {}]   ;;  %s6001_s2 = inlined_call_operand.vmem [shape: f32[16,1], index: 2, kind: input, shape index: {}]   ;;  %s6002_s3 = inlined_call_operand.vmem [shape: f32[16,1], index: 3, kind: input, shape index: {}]   ;;  %s6003_s4 = inlined_call_operand.hbm [shape: f32[49,16,256], index: 4, kind: input, shape index: {}]   ;;  %s6004_s5 = inlined_call_operand.vmem [shape: f32[16,1], index: 5, kind: input, shape index: {}]   ;;  %s6005_s6 = inlined_call_operand.vmem [shape: f32[16,1], index: 6, kind: input, shape index: {}]   ;;  %s6006_s7 = inlined_call_operand.vmem [shape: f32[16,1], index: 7, kind: input, shape index: {}]   ;;  %s6007_s8 = inlined_call_operand.vmem [shape: f32[16,16], index: 8, kind: input, shape index: {}]   ;;  %s6008_s9 = inlined_call_operand.vmem [shape: f32[16,1], index: 9, kind: input, shape index: {}]   ;;  %s6009_s10 = inlined_call_operand.vmem [shape: f32[256,10], index: 10, kind: input, shape index: {}]   ;;  %s6010_s11 = inlined_call_operand.vmem [shape: f32[9,256], index: 11, kind: input, shape index: {}]   ;;  %s6011_s12 = inlined_call_operand.vmem [shape: f32[4,16], index: 12, kind: input, shape index: {}]   ;;  %s6012_s13 = inlined_call_operand.vmem [shape: f32[4,1], index: 13, kind: input, shape index: {}]   ;;  %s6013_s14 = inlined_call_operand.vmem [shape: f32[32,4], index: 14, kind: input, shape index: {}]   ;;  %s6014_s15 = inlined_call_operand.vmem [shape: f32[32,1], index: 15, kind: input, shape index: {}]   ;;  %s6015_s16 = inlined_call_operand.vmem [shape: f32[16,9], index: 16, kind: input, shape index: {}]   ;;  %s6016_s17 = inlined_call_operand.vmem [shape: f32[16,9], index: 17, kind: input, shape index: {}]   ;;  %s6017_s18 = inlined_call_operand.vmem [shape: f32[16,1], index: 18, kind: input, shape index: {}]   ;;  %s6018_s19 = inlined_call_operand.vmem [shape: f32[16,1], index: 19, kind: input, shape index: {}]   ;;  %s6019_s20 = inlined_call_operand.vmem [shape: f32[16,2], index: 20, kind: input, shape index: {}]   ;;  %s6020_s21 = inlined_call_operand.vmem [shape: f32[16,2], index: 21, kind: input, shape index: {}]   ;;  %s6021_s22 = inlined_call_operand.vmem [shape: f32[2,16,256], index: 22, kind: output, shape index: {}]  }
   0x1   :  { %6208 = sst [smem:[#allocation96_spill]] %s5999_s0 }
   0x2   :  { %6209 = sst [smem:[#allocation97_spill]] %s6000_s1 }
   0x3   :  { %6210 = sst [smem:[#allocation98_spill]] %s6001_s2 }
   0x4   :  { %6211 = sst [smem:[#allocation99_spill]] %s6002_s3 }
   0x5   :  { %6212 = sst [smem:[#allocation100_spill]] %s6003_s4 }
   0x6   :  { %6213 = sst [smem:[#allocation101_spill]] %s6004_s5 }
   0x7   :  { %6214 = sst [smem:[#allocation102_spill]] %s6005_s6 }
   0x8   :  { %6215 = sst [smem:[#allocation103_spill]] %s6006_s7 }
   0x9   :  { %6216 = sst [smem:[#allocation104_spill]] %s6008_s9 }
   0xa   :  { %6217 = sst [smem:[#allocation105_spill]] %s6012_s13 }
   0xb   :  { %6218 = sst [smem:[#allocation106_spill]] %s6014_s15 }
   0xc   :  { %27 = vsyncpa [#allocation3], 0  ;;  %s3762_s3 = smov 0  }
   0xd LB: > { %6219 = sst [smem:[#allocation5_spill]] %s3580_s3  ;;  %s3768_s28 = sadd.s32 4294967295, %s3580_s3   ;;  %s3580_s3 = sphi %s3762_s3, %s33_s3  }
   0xe   : > { %p3241_p0 = scmp.ge.s32.totalorder %s3580_s3, 1  ;;  %p531_p1 = scmp.lt.s32.totalorder %s3580_s3, 3 }
   0xf   : > { %s3582_s29 = smov [#allocation2]   ;;  %p6028_p3 = scmp.eq.s32.totalorder %s3768_s28, 0 }
  0x10   : > { %s552_s30 = sshll.u32 %s3582_s29, 4  ;;  %p3772_p2 = pnand %p3241_p0, %p531_p1  ;;  %s553_s30 = int_to_ptr.vmem [resolvable:$true] %s552_s30 }
  0x11   : > { %s6222_s5 = sld [smem:[#allocation100_spill]] }
  0x12   : > { %s6220_s4 = scalar_select %p3772_p2, 1, 0 }
  0x13   : > { %p3388_p4 = pneg %p3772_p2 }
  0x15   : > { %p3781_p5 = pnand %p6028_p3, %p3388_p4 }
  0x17   : > { %s3542_s24 = scalar_lea.hbm %s6222_s5, 25088  ;;  %p3544_p7 = pneg %p3781_p5 }
  0x18   : > { %p3543_p6 = scmp.ne.s32.totalorder %s6222_s5, %s3542_s24  ;;  %p3549_p10 = scmp.lt.u32.totalorder %s3542_s24, %s6222_s5 }
  0x1a   : > { %p3545_p8 = pnand %p3544_p7, %p3543_p6 }
  0x1c   : > { %p3546_p9 = pneg %p3545_p8 }
  0x1e   : > { %p3551_p11 = pnand %p3549_p10, %p3546_p9 }
  0x20   : > { %3554 = shalt.err (!%p3551_p11)
}
  0x21   : > { %s3555_s27 = scalar_lea.vmem %s553_s30, 25088  ;;  %p3563_p1 = scmp.lt.s32.totalorder %s553_s30, %s553_s30 }
  0x22   : > { %p3556_p12 = scmp.ne.s32.totalorder %s553_s30, %s3555_s27  ;;  %p3564_p4 = scmp.lt.s32.totalorder %s3555_s27, %s3555_s27 }
  0x24   : > { %p3558_p13 = pnand %p3556_p12, %p3544_p7  ;;  %p3565_p3 = por %p3564_p4, %p3563_p1 }
  0x26   : > { %p3559_p0 = pneg %p3558_p13 }
  0x28   : > { %p3566_p2 = pnand %p3565_p3, %p3559_p0 }
  0x2a   : > { %3569 = shalt.err (!%p3566_p2)
}
  0x2b   : > { %s3583_s29 = smov 256   ;;  %s3584_s23 = smov 16  }
  0x2c   : > { %3391 = dma.hbm_to_vmem [thread:$0]  (!%p3781_p5), %s6222_s5, 25088, %s553_s30, [#allocation3], %s3583_s29, %s3583_s29, %s3584_s23  }
  0x2d   : > { %p6223_p6 = scmp.ne.s32.totalorder %s6220_s4, 0 }
  0x2f   : > { %627 = sbr.rel (%p6223_p6) target bundleno = 2359 (0x937), region = 108 }
  0x36   : > { %p6224_p8 = scmp.eq.s32.totalorder %s3768_s28, 0 }
  0x38   : > { %3575 = dma.done.wait (%p6224_p8), [#allocation3], 25088   ;;  %p6225_p7 = pmov %p6224_p8 }
  0x39   : > { %p689_p2 = scmp.lt.s32.totalorder %s3768_s28, 1  ;;  %v6085_v0 = vmov 0.0   ;;  %v6084_v1 = vmov 0   ;;  %s6226_s24 = sld [smem:[#allocation96_spill]]  ;;  %vm705_vm0 = vcmask 130048  }
  0x3a   : > { %3577 = vsyncadd (%p6225_p7), [#allocation3], 4294942208  ;;  %776 = vmatprep.mubr.f32.mxu1 %v6085_v0  ;;  %3467 = vset.pattern.permute.xlu0 %v6084_v1  ;;  %s6227_s27 = sld [smem:[#allocation98_spill]]  ;;  %s6228_s1 = sld [smem:[#allocation99_spill]] }
  0x3b   : > { %s6493_s28 = smov (!%p689_p2, %s3768_s28), 1  ;;  %3468 = vset.pattern.permute.xlu1 %v6084_v1  ;;  %s6229_s0 = sld [smem:[#allocation97_spill]] }
  0x3c   : > { %s6030_s30 = sshll.u32 %s6493_s28, 5  ;;  %s3587_s5 = smov 51  }
  0x3d   : > { %s3589_s23 = smov 49   ;;  %s3590_s6 = smov 48  }
  0x3e   : > { %s6032_s4 = smov 47   ;;  %s6036_s26 = smov 45  }
  0x3f   : > { %s3820_s25 = scalar_lea.vmem %s6226_s24, %s6030_s30  ;;  %s3588_s30 = smov 50  }
  0x40   : > { %v700_v2 = vld [vmem:[%s3820_s25 + $0x8] sm:$0xff]  ;;  %v702_v3 = vld [vmem:[%s3820_s25 + $0x18] sm:$0xff]  ;;  %v699_v4 = vld [vmem:[%s3820_s25] sm:$0xff]  ;;  %s6034_s24 = smov 46   ;;  %s6038_s2 = smov 35  }
  0x41   : > { %v3341_v5 = vpack.c.bf16 %v702_v3, %v700_v2  ;;  %v701_v6 = vld [vmem:[%s3820_s25 + $0x10] sm:$0xff]  ;;  %v825_v8 = vld [vmem:[%s6227_s27] sm:$0xff]  ;;  %v826_v11 = vld [vmem:[%s6227_s27 + $0x8] sm:$0xff]  ;;  %s6040_s29 = smov 34   ;;  %s6348_s7 = sld [smem:[#allocation103_spill]] }
  0x42   : > { %v3343_v7 = vpack.c.bf16 %v701_v6, %v699_v4  ;;  %v841_v9 = vld [vmem:[%s6228_s1] sm:$0xff]  ;;  %829 = vperm.xlu0 %3467, %v825_v8   ;;  %v842_v12 = vld [vmem:[%s6228_s1 + $0x8] sm:$0xff]  ;;  %s6346_s1 = sld [smem:[#allocation101_spill]]  ;;  %s6351_s9 = sld [smem:[#allocation104_spill]] }
  0x43   : > { %3342 = vmatprep.subr.bf16.mxu1 %v3341_v5  ;;  %v703_v10 = vld [vmem:[%s6229_s0] sm:$0xff]  ;;  %845 = vperm.xlu1 %3468, %v841_v9   ;;  %v704_v13 = vld [vmem:[%s6229_s0 + $0x8] sm:$0xff]  ;;  %s3621_s0 = smov 99   ;;  %s6356_s13 = sld [smem:[#allocation105_spill]] }
  0x44   : > { %3344 = vmatpush1.bf16.msra.mxu1 %v3343_v7  ;;  %s6363_s15 = sld [smem:[#allocation106_spill]]  ;;  %s6481_s27 = smov 127  }
  0x46   : > { %834 = vperm.xlu0 %3467, %v826_v11  }
  0x47   : > { %3250 = vmatmul.mubr.msk.f32.vlgmr.msra.gmra.mrb[0].mxu1 %vm705_vm0, %v703_v10  ;;  %850 = vperm.xlu1 %3468, %v842_v12  }
  0x48   : > { %782 = vmatprep.mubr.f32.mxu1 %v6085_v0 }
  0x4b   : > { %3251 = vmatmul.mubr.msk.f32.gmra.mrb[2].mxu1 %vm705_vm0, %v704_v13 }
  0x4c   : > { %2291 = vmatprep.mubr.f32.mxu1 %v6085_v0 }
  0xc1   : > { %v3852_v31 = vpop.permute.xlu0 %829 }
  0xc2   : > { %v3854_v34 = vpop.permute.xlu1 %845 }
  0xc5   : > { %v3860_v40 = vpop.permute.xlu0 %834 }
  0xc6   : > { %v3865_v42 = vpop.permute.xlu1 %850 }
 0x11a   : > { %v778_v14 = vpop.f32.mrb[0].mxu1 }
 0x11b   : > { %v793_v15 = vmul.f32 0.044715, %v778_v14  ;;  %v3848_v16 = vpop.f32.mrb[1].mxu1  ;;  %v789_v29 = vmul.f32 0.5, %v778_v14 }
 0x11c   : > { %v794_v44 = vmul.f32 0.044715, %v3848_v16  ;;  %v790_v58 = vmul.f32 0.5, %v3848_v16 }
 0x11d   : > { %v797_v17 = vmul.f32 %v793_v15, %v778_v14 }
 0x11e   : > { %v784_v18 = vpop.f32.mrb[2].mxu1  ;;  %v798_v45 = vmul.f32 %v794_v44, %v3848_v16 }
 0x11f   : > { %v801_v19 = vmul.f32 %v797_v17, %v778_v14  ;;  %v795_v20 = vmul.f32 0.044715, %v784_v18  ;;  %v3850_v21 = vpop.f32.mrb[3].mxu1  ;;  %v791_v36 = vmul.f32 0.5, %v784_v18 }
 0x120   : > { %v796_v46 = vmul.f32 0.044715, %v3850_v21  ;;  %v802_v47 = vmul.f32 %v798_v45, %v3848_v16  ;;  %v792_v63 = vmul.f32 0.5, %v3850_v21 }
 0x121   : > { %v805_v22 = vadd.f32 %v801_v19, %v778_v14  ;;  %v799_v23 = vmul.f32 %v795_v20, %v784_v18 }
 0x122   : > { %v800_v48 = vmul.f32 %v796_v46, %v3850_v21  ;;  %v806_v49 = vadd.f32 %v802_v47, %v3848_v16 }
 0x123   : > { %v809_v24 = vmul.f32 0.7978846, %v805_v22  ;;  %v803_v25 = vmul.f32 %v799_v23, %v784_v18 }
 0x124   : > { %v804_v50 = vmul.f32 %v800_v48, %v3850_v21  ;;  %v810_v51 = vmul.f32 0.7978846, %v806_v49 }
 0x125   : > { %3488 = vtanh.f32 %v809_v24  ;;  %v807_v26 = vadd.f32 %v803_v25, %v784_v18 }
 0x126   : > { %v808_v52 = vadd.f32 %v804_v50, %v3850_v21 }
 0x127   : > { %v811_v27 = vmul.f32 0.7978846, %v807_v26 }
 0x128   : > { %v812_v53 = vmul.f32 0.7978846, %v808_v52 }
 0x129   : > { %3490 = vtanh.f32 %v811_v27 }
 0x12a   : > { %3492 = vtanh.f32 %v810_v51 }
 0x12b   : > { %3494 = vtanh.f32 %v812_v53 }
 0x12f   : > { %v3489_v28 = vpop.eup %3488 }
 0x130   : > { %v817_v30 = vadd.f32 1.0, %v3489_v28 }
 0x132   : > { %v821_v32 = vmul.f32 %v817_v30, %v789_v29 }
 0x133   : > { %v3491_v33 = vpop.eup %3490 }
 0x134   : > { %v837_v35 = vmul.f32 %v3852_v31, %v821_v32  ;;  %v819_v37 = vadd.f32 1.0, %v3491_v33  ;;  %v3493_v54 = vpop.eup %3492 }
 0x135   : > { %v818_v55 = vadd.f32 1.0, %v3493_v54  ;;  %v3495_v57 = vpop.eup %3494 }
 0x136   : > { %v3858_v38 = vadd.f32 %v3854_v34, %v837_v35  ;;  %v823_v39 = vmul.f32 %v819_v37, %v791_v36  ;;  %v820_v60 = vadd.f32 1.0, %v3495_v57 }
 0x137   : > { %v822_v59 = vmul.f32 %v818_v55, %v790_v58 }
 0x138   : > { %6230 = vst [vmem:[#allocation6_spill] sm:$0xff] %v3858_v38  ;;  %v839_v41 = vmul.f32 %v3860_v40, %v823_v39  ;;  %857 = vrot.lane.b32.xlu0 %v3858_v38, %s3587_s5  ;;  %v824_v3 = vmul.f32 %v820_v60, %v792_v63 }
 0x139   : > { %v838_v2 = vmul.f32 %v3852_v31, %v822_v59 }
 0x13a   : > { %v3868_v43 = vadd.f32 %v3865_v42, %v839_v41  ;;  %v840_v7 = vmul.f32 %v3860_v40, %v824_v3 }
 0x13b   : > { %v4016_v6 = vadd.f32 %v3854_v34, %v838_v2 }
 0x13c   : > { %6231 = vst [vmem:[#allocation7_spill] sm:$0xff] %v3868_v43  ;;  %884 = vrot.lane.b32.xlu0 %v3858_v38, %s3588_s30  ;;  %859 = vrot.lane.b32.xlu1 %v3868_v43, %s3587_s5  ;;  %v4028_v10 = vadd.f32 %v3865_v42, %v840_v7 }
 0x13d   : > { %6232 = vst [vmem:[#allocation8_spill] sm:$0xff] %v4016_v6 }
 0x13e   : > { %6233 = vst [vmem:[#allocation9_spill] sm:$0xff] %v4028_v10 }
 0x140   : > { %910 = vrot.lane.b32.xlu0 %v3858_v38, %s3589_s23  ;;  %886 = vrot.lane.b32.xlu1 %v3868_v43, %s3588_s30 }
 0x144   : > { %936 = vrot.lane.b32.xlu0 %v3858_v38, %s3590_s6  ;;  %912 = vrot.lane.b32.xlu1 %v3868_v43, %s3589_s23 }
 0x148   : > { %962 = vrot.lane.b32.xlu0 %v3858_v38, %s6032_s4  ;;  %938 = vrot.lane.b32.xlu1 %v3868_v43, %s3590_s6 }
 0x14c   : > { %988 = vrot.lane.b32.xlu0 %v3858_v38, %s6034_s24  ;;  %964 = vrot.lane.b32.xlu1 %v3868_v43, %s6032_s4  ;;  %s6042_s4 = smov 33  }
 0x150   : > { %1014 = vrot.lane.b32.xlu0 %v3858_v38, %s6036_s26  ;;  %990 = vrot.lane.b32.xlu1 %v3868_v43, %s6034_s24  ;;  %s6044_s24 = smov 32  }
 0x154   : > { %1040 = vrot.lane.b32.xlu0 %v3858_v38, %s6038_s2  ;;  %1016 = vrot.lane.b32.xlu1 %v3868_v43, %s6036_s26  ;;  %s6046_s26 = smov 31  }
 0x158   : > { %1066 = vrot.lane.b32.xlu0 %v3858_v38, %s6040_s29  ;;  %1042 = vrot.lane.b32.xlu1 %v3868_v43, %s6038_s2  ;;  %s6048_s2 = smov 30  }
 0x15c   : > { %1092 = vrot.lane.b32.xlu0 %v3858_v38, %s6042_s4  ;;  %1068 = vrot.lane.b32.xlu1 %v3868_v43, %s6040_s29  ;;  %s6050_s29 = smov 29  }
 0x160   : > { %1118 = vrot.lane.b32.xlu0 %v3858_v38, %s6044_s24  ;;  %1094 = vrot.lane.b32.xlu1 %v3868_v43, %s6042_s4  ;;  %s6052_s4 = smov 19  }
 0x164   : > { %1144 = vrot.lane.b32.xlu0 %v3858_v38, %s6046_s26  ;;  %1120 = vrot.lane.b32.xlu1 %v3868_v43, %s6044_s24  ;;  %s6054_s24 = smov 18  }
 0x168   : > { %1170 = vrot.lane.b32.xlu0 %v3858_v38, %s6048_s2  ;;  %1146 = vrot.lane.b32.xlu1 %v3868_v43, %s6046_s26  ;;  %s6056_s26 = smov 17  }
 0x16c   : > { %1196 = vrot.lane.b32.xlu0 %v3858_v38, %s6050_s29  ;;  %1172 = vrot.lane.b32.xlu1 %v3868_v43, %s6048_s2  ;;  %s6070_s2 = smov 16  }
 0x170   : > { %1222 = vrot.lane.b32.xlu0 %v3858_v38, %s6052_s4  ;;  %1198 = vrot.lane.b32.xlu1 %v3868_v43, %s6050_s29  ;;  %s6058_s29 = smov 15  }
 0x174   : > { %1248 = vrot.lane.b32.xlu0 %v3858_v38, %s6054_s24  ;;  %1224 = vrot.lane.b32.xlu1 %v3868_v43, %s6052_s4  ;;  %s6060_s4 = smov 14  }
 0x178   : > { %1274 = vrot.lane.b32.xlu0 %v3858_v38, %s6056_s26  ;;  %1250 = vrot.lane.b32.xlu1 %v3868_v43, %s6054_s24  ;;  %s6062_s24 = smov 13  }
 0x17c   : > { %1300 = vrot.lane.b32.xlu0 %v3858_v38, %s6070_s2  ;;  %1276 = vrot.lane.b32.xlu1 %v3868_v43, %s6056_s26  ;;  %s6064_s26 = smov 3  }
 0x180   : > { %1326 = vrot.lane.b32.xlu0 %v3858_v38, %s6058_s29  ;;  %1302 = vrot.lane.b32.xlu1 %v3868_v43, %s6070_s2  ;;  %s6076_s2 = smov 114  }
 0x184   : > { %1352 = vrot.lane.b32.xlu0 %v3858_v38, %s6060_s4  ;;  %1328 = vrot.lane.b32.xlu1 %v3868_v43, %s6058_s29  ;;  %s6066_s29 = smov 2  }
 0x188   : > { %1378 = vrot.lane.b32.xlu0 %v3858_v38, %s6062_s24  ;;  %1354 = vrot.lane.b32.xlu1 %v3868_v43, %s6060_s4  ;;  %s6068_s4 = smov 1  }
 0x18c   : > { %1404 = vrot.lane.b32.xlu0 %v3858_v38, %s6064_s26  ;;  %1380 = vrot.lane.b32.xlu1 %v3868_v43, %s6062_s24  ;;  %s6102_s24 = smov 127  }
 0x190   : > { %1430 = vrot.lane.b32.xlu0 %v3858_v38, %s6066_s29  ;;  %1406 = vrot.lane.b32.xlu1 %v3868_v43, %s6064_s26  ;;  %s6072_s26 = smov 126  }
 0x194   : > { %1456 = vrot.lane.b32.xlu0 %v3858_v38, %s6068_s4  ;;  %1432 = vrot.lane.b32.xlu1 %v3868_v43, %s6066_s29  ;;  %s3613_s29 = smov 125  }
 0x198   : > { %1495 = vrot.lane.b32.xlu0 %v3858_v38, %s6102_s24  ;;  %1458 = vrot.lane.b32.xlu1 %v3868_v43, %s6068_s4  ;;  %s6074_s4 = smov 115  }
 0x19c   : > { %1521 = vrot.lane.b32.xlu0 %v3858_v38, %s6072_s26  ;;  %1497 = vrot.lane.b32.xlu1 %v3868_v43, %s6102_s24 }
 0x1a0   : > { %1547 = vrot.lane.b32.xlu0 %v3858_v38, %s3613_s29  ;;  %1523 = vrot.lane.b32.xlu1 %v3868_v43, %s6072_s26  ;;  %s6082_s26 = smov 113  }
 0x1a4   : > { %1573 = vrot.lane.b32.xlu0 %v3858_v38, %s6074_s4  ;;  %1549 = vrot.lane.b32.xlu1 %v3868_v43, %s3613_s29 }
 0x1a8   : > { %1599 = vrot.lane.b32.xlu0 %v3858_v38, %s6076_s2  ;;  %1575 = vrot.lane.b32.xlu1 %v3868_v43, %s6074_s4  ;;  %s6080_s4 = smov 112  }
 0x1aa   : > { %v3990_v56 = vpop.permute.xlu0 %857 }
 0x1ac   : > { %1625 = vrot.lane.b32.xlu0 %v3858_v38, %s6082_s26  ;;  %1601 = vrot.lane.b32.xlu1 %v3868_v43, %s6076_s2  ;;  %s6078_s2 = smov 111  }
 0x1ae   : > { %v3997_v61 = vpop.permute.xlu0 %884  ;;  %v3999_v62 = vpop.permute.xlu1 %859 }
 0x1b0   : > { %1651 = vrot.lane.b32.xlu0 %v3858_v38, %s6080_s4  ;;  %1627 = vrot.lane.b32.xlu1 %v3868_v43, %s6082_s26  ;;  %s6282_s26 = smov 2  }
 0x1b2   : > { %v4007_v4 = vpop.permute.xlu0 %910  ;;  %v4009_v5 = vpop.permute.xlu1 %886 }
 0x1b4   : > { %1677 = vrot.lane.b32.xlu0 %v3858_v38, %s6078_s2  ;;  %1653 = vrot.lane.b32.xlu1 %v3868_v43, %s6080_s4  ;;  %s6279_s4 = smov 3  }
 0x1b6   : > { %v4019_v8 = vpop.permute.xlu0 %936  ;;  %v4021_v9 = vpop.permute.xlu1 %912 }
 0x1b8   : > { %861 = vrot.lane.b32.xlu0 %v4016_v6, %s3587_s5  ;;  %1679 = vrot.lane.b32.xlu1 %v3868_v43, %s6078_s2  ;;  %s6276_s2 = smov 13  }
 0x1ba   : > { %v4030_v11 = vpop.permute.xlu0 %962  ;;  %v4032_v12 = vpop.permute.xlu1 %938 }
 0x1bc   : > { %888 = vrot.lane.b32.xlu0 %v4016_v6, %s3588_s30  ;;  %863 = vrot.lane.b32.xlu1 %v4028_v10, %s3587_s5  ;;  %s6234_s5 = smov 47  }
 0x1be   : > { %v4038_v13 = vpop.permute.xlu0 %988  ;;  %v4040_v14 = vpop.permute.xlu1 %964 }
 0x1c0   : > { %914 = vrot.lane.b32.xlu0 %v4016_v6, %s3589_s23  ;;  %890 = vrot.lane.b32.xlu1 %v4028_v10, %s3588_s30  ;;  %s6235_s30 = smov 46  }
 0x1c2   : > { %v4046_v15 = vpop.permute.xlu0 %1014  ;;  %v4048_v16 = vpop.permute.xlu1 %990 }
 0x1c4   : > { %940 = vrot.lane.b32.xlu0 %v4016_v6, %s3590_s6  ;;  %916 = vrot.lane.b32.xlu1 %v4028_v10, %s3589_s23  ;;  %s6236_s23 = smov 45  }
 0x1c6   : > { %v4054_v17 = vpop.permute.xlu0 %1040  ;;  %v4056_v18 = vpop.permute.xlu1 %1016 }
 0x1c8   : > { %966 = vrot.lane.b32.xlu0 %v4016_v6, %s6234_s5  ;;  %942 = vrot.lane.b32.xlu1 %v4028_v10, %s3590_s6  ;;  %s6237_s6 = smov 35  }
 0x1ca   : > { %v4062_v19 = vpop.permute.xlu0 %1066  ;;  %v4064_v20 = vpop.permute.xlu1 %1042 }
 0x1cc   : > { %992 = vrot.lane.b32.xlu0 %v4016_v6, %s6235_s30  ;;  %968 = vrot.lane.b32.xlu1 %v4028_v10, %s6234_s5  ;;  %s6240_s5 = smov 34  }
 0x1ce   : > { %v4070_v21 = vpop.permute.xlu0 %1092  ;;  %v4072_v22 = vpop.permute.xlu1 %1068 }
 0x1d0   : > { %1018 = vrot.lane.b32.xlu0 %v4016_v6, %s6236_s23  ;;  %994 = vrot.lane.b32.xlu1 %v4028_v10, %s6235_s30  ;;  %s6243_s30 = smov 33  }
 0x1d2   : > { %v4078_v23 = vpop.permute.xlu0 %1118  ;;  %v4080_v24 = vpop.permute.xlu1 %1094 }
 0x1d4   : > { %1044 = vrot.lane.b32.xlu0 %v4016_v6, %s6237_s6  ;;  %1020 = vrot.lane.b32.xlu1 %v4028_v10, %s6236_s23  ;;  %s6246_s23 = smov 32  }
 0x1d6   : > { %v4086_v25 = vpop.permute.xlu0 %1144  ;;  %v4088_v26 = vpop.permute.xlu1 %1120 }
 0x1d7   : > { %6238 = vst [vmem:[#allocation10_spill] sm:$0xff] %v4086_v25  ;;  %6239 = vst [vmem:[#allocation11_spill] sm:$0xff] %v4088_v26  ;;  %v951_v26 = vld [vmem:[#allocation2 + $0x68] sm:$0xff] }
 0x1d8   : > { %1070 = vrot.lane.b32.xlu0 %v4016_v6, %s6240_s5  ;;  %1046 = vrot.lane.b32.xlu1 %v4028_v10, %s6237_s6  ;;  %s6249_s6 = smov 31  }
 0x1da   : > { %v4094_v27 = vpop.permute.xlu0 %1170  ;;  %v4096_v28 = vpop.permute.xlu1 %1146 }
 0x1db   : > { %6241 = vst [vmem:[#allocation12_spill] sm:$0xff] %v4094_v27  ;;  %6242 = vst [vmem:[#allocation13_spill] sm:$0xff] %v4096_v28  ;;  %v900_v27 = vld [vmem:[#allocation2 + $0x30] sm:$0xff] }
 0x1dc   : > { %1096 = vrot.lane.b32.xlu0 %v4016_v6, %s6243_s30  ;;  %1072 = vrot.lane.b32.xlu1 %v4028_v10, %s6240_s5  ;;  %s6252_s5 = smov 30  }
 0x1de   : > { %v4102_v29 = vpop.permute.xlu0 %1196  ;;  %v4104_v30 = vpop.permute.xlu1 %1172 }
 0x1df   : > { %6244 = vst [vmem:[#allocation14_spill] sm:$0xff] %v4102_v29  ;;  %6245 = vst [vmem:[#allocation15_spill] sm:$0xff] %v4104_v30  ;;  %v899_v30 = vld [vmem:[#allocation2 + $0x28] sm:$0xff] }
 0x1e0   : > { %1122 = vrot.lane.b32.xlu0 %v4016_v6, %s6246_s23  ;;  %1098 = vrot.lane.b32.xlu1 %v4028_v10, %s6243_s30  ;;  %s6255_s30 = smov 29  }
 0x1e2   : > { %v4110_v31 = vpop.permute.xlu0 %1222  ;;  %v4112_v32 = vpop.permute.xlu1 %1198 }
 0x1e3   : > { %6247 = vst [vmem:[#allocation16_spill] sm:$0xff] %v4110_v31  ;;  %6248 = vst [vmem:[#allocation17_spill] sm:$0xff] %v4112_v32 }
 0x1e4   : > { %1148 = vrot.lane.b32.xlu0 %v4016_v6, %s6249_s6  ;;  %1124 = vrot.lane.b32.xlu1 %v4028_v10, %s6246_s23  ;;  %s6258_s23 = smov 19  }
 0x1e6   : > { %v4118_v33 = vpop.permute.xlu0 %1248  ;;  %v4120_v34 = vpop.permute.xlu1 %1224 }
 0x1e7   : > { %6250 = vst [vmem:[#allocation18_spill] sm:$0xff] %v4118_v33  ;;  %6251 = vst [vmem:[#allocation19_spill] sm:$0xff] %v4120_v34 }
 0x1e8   : > { %1174 = vrot.lane.b32.xlu0 %v4016_v6, %s6252_s5  ;;  %1150 = vrot.lane.b32.xlu1 %v4028_v10, %s6249_s6  ;;  %s6261_s6 = smov 18  }
 0x1ea   : > { %v4126_v35 = vpop.permute.xlu0 %1274  ;;  %v4128_v36 = vpop.permute.xlu1 %1250 }
 0x1eb   : > { %6253 = vst [vmem:[#allocation20_spill] sm:$0xff] %v4126_v35  ;;  %6254 = vst [vmem:[#allocation21_spill] sm:$0xff] %v4128_v36 }
 0x1ec   : > { %1200 = vrot.lane.b32.xlu0 %v4016_v6, %s6255_s30  ;;  %1176 = vrot.lane.b32.xlu1 %v4028_v10, %s6252_s5  ;;  %s6264_s5 = smov 17  }
 0x1ee   : > { %v4134_v37 = vpop.permute.xlu0 %1300  ;;  %v4136_v39 = vpop.permute.xlu1 %1276 }
 0x1ef   : > { %6256 = vst [vmem:[#allocation22_spill] sm:$0xff] %v4134_v37  ;;  %6257 = vst [vmem:[#allocation23_spill] sm:$0xff] %v4136_v39 }
 0x1f0   : > { %1226 = vrot.lane.b32.xlu0 %v4016_v6, %s6258_s23  ;;  %1202 = vrot.lane.b32.xlu1 %v4028_v10, %s6255_s30  ;;  %s6267_s30 = smov 16  }
 0x1f2   : > { %v4142_v40 = vpop.permute.xlu0 %1326  ;;  %v4144_v41 = vpop.permute.xlu1 %1302 }
 0x1f3   : > { %6259 = vst [vmem:[#allocation24_spill] sm:$0xff] %v4142_v40  ;;  %6260 = vst [vmem:[#allocation25_spill] sm:$0xff] %v4144_v41 }
 0x1f4   : > { %1252 = vrot.lane.b32.xlu0 %v4016_v6, %s6261_s6  ;;  %1228 = vrot.lane.b32.xlu1 %v4028_v10, %s6258_s23  ;;  %s6270_s23 = smov 15  }
 0x1f6   : > { %v4150_v42 = vpop.permute.xlu0 %1352  ;;  %v4152_v44 = vpop.permute.xlu1 %1328 }
 0x1f7   : > { %6262 = vst [vmem:[#allocation26_spill] sm:$0xff] %v4150_v42  ;;  %6263 = vst [vmem:[#allocation27_spill] sm:$0xff] %v4152_v44 }
 0x1f8   : > { %1278 = vrot.lane.b32.xlu0 %v4016_v6, %s6264_s5  ;;  %1254 = vrot.lane.b32.xlu1 %v4028_v10, %s6261_s6  ;;  %s6273_s6 = smov 14  }
 0x1fa   : > { %v4158_v45 = vpop.permute.xlu0 %1378  ;;  %v4160_v46 = vpop.permute.xlu1 %1354 }
 0x1fb   : > { %6265 = vst [vmem:[#allocation28_spill] sm:$0xff] %v4158_v45  ;;  %6266 = vst [vmem:[#allocation29_spill] sm:$0xff] %v4160_v46 }
 0x1fc   : > { %1304 = vrot.lane.b32.xlu0 %v4016_v6, %s6267_s30  ;;  %1280 = vrot.lane.b32.xlu1 %v4028_v10, %s6264_s5 }
 0x1fe   : > { %v4166_v47 = vpop.permute.xlu0 %1404  ;;  %v4168_v48 = vpop.permute.xlu1 %1380 }
 0x1ff   : > { %6268 = vst [vmem:[#allocation30_spill] sm:$0xff] %v4166_v47  ;;  %6269 = vst [vmem:[#allocation31_spill] sm:$0xff] %v4168_v48 }
 0x200   : > { %1330 = vrot.lane.b32.xlu0 %v4016_v6, %s6270_s23  ;;  %1306 = vrot.lane.b32.xlu1 %v4028_v10, %s6267_s30 }
 0x202   : > { %v4174_v49 = vpop.permute.xlu0 %1430  ;;  %v4176_v50 = vpop.permute.xlu1 %1406 }
 0x203   : > { %6271 = vst [vmem:[#allocation32_spill] sm:$0xff] %v4174_v49  ;;  %6272 = vst [vmem:[#allocation33_spill] sm:$0xff] %v4176_v50 }
 0x204   : > { %1356 = vrot.lane.b32.xlu0 %v4016_v6, %s6273_s6  ;;  %1332 = vrot.lane.b32.xlu1 %v4028_v10, %s6270_s23 }
 0x206   : > { %v4182_v51 = vpop.permute.xlu0 %1456  ;;  %v4184_v52 = vpop.permute.xlu1 %1432 }
 0x207   : > { %6274 = vst [vmem:[#allocation34_spill] sm:$0xff] %v4182_v51  ;;  %6275 = vst [vmem:[#allocation35_spill] sm:$0xff] %v4184_v52 }
 0x208   : > { %1382 = vrot.lane.b32.xlu0 %v4016_v6, %s6276_s2  ;;  %1358 = vrot.lane.b32.xlu1 %v4028_v10, %s6273_s6  ;;  %s6285_s6 = smov 1  }
 0x20a   : > { %v4190_v53 = vpop.permute.xlu0 %1495  ;;  %v4192_v54 = vpop.permute.xlu1 %1458 }
 0x20b   : > { %6277 = vst [vmem:[#allocation36_spill] sm:$0xff] %v4190_v53  ;;  %6278 = vst [vmem:[#allocation37_spill] sm:$0xff] %v4192_v54 }
 0x20c   : > { %1408 = vrot.lane.b32.xlu0 %v4016_v6, %s6279_s4  ;;  %1384 = vrot.lane.b32.xlu1 %v4028_v10, %s6276_s2  ;;  %s6298_s2 = smov 114  }
 0x20e   : > { %v4198_v55 = vpop.permute.xlu0 %1521  ;;  %v4200_v57 = vpop.permute.xlu1 %1497 }
 0x20f   : > { %6280 = vst [vmem:[#allocation38_spill] sm:$0xff] %v4198_v55  ;;  %6281 = vst [vmem:[#allocation39_spill] sm:$0xff] %v4200_v57 }
 0x210   : > { %1434 = vrot.lane.b32.xlu0 %v4016_v6, %s6282_s26  ;;  %1410 = vrot.lane.b32.xlu1 %v4028_v10, %s6279_s4  ;;  %s6290_s4 = smov 126  }
 0x212   : > { %v4206_v58 = vpop.permute.xlu0 %1547  ;;  %v4208_v59 = vpop.permute.xlu1 %1523 }
 0x213   : > { %6283 = vst [vmem:[#allocation40_spill] sm:$0xff] %v4206_v58  ;;  %6284 = vst [vmem:[#allocation41_spill] sm:$0xff] %v4208_v59 }
 0x214   : > { %1460 = vrot.lane.b32.xlu0 %v4016_v6, %s6285_s6  ;;  %1436 = vrot.lane.b32.xlu1 %v4028_v10, %s6282_s26  ;;  %s6295_s26 = smov 115  }
 0x216   : > { %v4214_v60 = vpop.permute.xlu0 %1573  ;;  %v4216_v63 = vpop.permute.xlu1 %1549 }
 0x217   : > { %6286 = vst [vmem:[#allocation42_spill] sm:$0xff] %v4214_v60  ;;  %6287 = vst [vmem:[#allocation43_spill] sm:$0xff] %v4216_v63 }
 0x218   : > { %1499 = vrot.lane.b32.xlu0 %v4016_v6, %s6102_s24  ;;  %1462 = vrot.lane.b32.xlu1 %v4028_v10, %s6285_s6 }
 0x21a   : > { %v4222_v2 = vpop.permute.xlu0 %1599  ;;  %v4224_v3 = vpop.permute.xlu1 %1575 }
 0x21b   : > { %6288 = vst [vmem:[#allocation44_spill] sm:$0xff] %v4222_v2  ;;  %6289 = vst [vmem:[#allocation45_spill] sm:$0xff] %v4224_v3 }
 0x21c   : > { %1525 = vrot.lane.b32.xlu0 %v4016_v6, %s6290_s4  ;;  %1501 = vrot.lane.b32.xlu1 %v4028_v10, %s6102_s24  ;;  %s3620_s24 = smov 109  }
 0x21e   : > { %v4230_v7 = vpop.permute.xlu0 %1625  ;;  %v4232_v1 = vpop.permute.xlu1 %1601 }
 0x21f   : > { %6291 = vst [vmem:[#allocation46_spill] sm:$0xff] %v4230_v7  ;;  %6292 = vst [vmem:[#allocation47_spill] sm:$0xff] %v4232_v1 }
 0x220   : > { %1551 = vrot.lane.b32.xlu0 %v4016_v6, %s3613_s29  ;;  %1527 = vrot.lane.b32.xlu1 %v4028_v10, %s6290_s4  ;;  %s6300_s4 = smov 113  }
 0x222   : > { %v4238_v0 = vpop.permute.xlu0 %1651  ;;  %v4240_v2 = vpop.permute.xlu1 %1627 }
 0x223   : > { %6293 = vst [vmem:[#allocation48_spill] sm:$0xff] %v4238_v0  ;;  %6294 = vst [vmem:[#allocation49_spill] sm:$0xff] %v4240_v2 }
 0x224   : > { %1577 = vrot.lane.b32.xlu0 %v4016_v6, %s6295_s26  ;;  %1553 = vrot.lane.b32.xlu1 %v4028_v10, %s3613_s29  ;;  %s6301_s29 = smov 112  }
 0x226   : > { %v4246_v3 = vpop.permute.xlu0 %1677  ;;  %v4248_v7 = vpop.permute.xlu1 %1653 }
 0x227   : > { %6296 = vst [vmem:[#allocation50_spill] sm:$0xff] %v4246_v3  ;;  %6297 = vst [vmem:[#allocation51_spill] sm:$0xff] %v4248_v7 }
 0x228   : > { %1603 = vrot.lane.b32.xlu0 %v4016_v6, %s6298_s2  ;;  %1579 = vrot.lane.b32.xlu1 %v4028_v10, %s6295_s26  ;;  %s6302_s26 = smov 111  }
 0x22a   : > { %v4254_v1 = vpop.permute.xlu0 %861  ;;  %v4256_v0 = vpop.permute.xlu1 %1679 }
 0x22b   : > { %6299 = vst [vmem:[#allocation52_spill] sm:$0xff] %v4256_v0 }
 0x22c   : > { %1629 = vrot.lane.b32.xlu0 %v4016_v6, %s6300_s4  ;;  %1605 = vrot.lane.b32.xlu1 %v4028_v10, %s6298_s2  ;;  %s3619_s2 = smov 110  }
 0x22e   : > { %v4262_v2 = vpop.permute.xlu0 %888  ;;  %v4264_v3 = vpop.permute.xlu1 %863 }
 0x230   : > { %1655 = vrot.lane.b32.xlu0 %v4016_v6, %s6301_s29  ;;  %1631 = vrot.lane.b32.xlu1 %v4028_v10, %s6300_s4 }
 0x232   : > { %v4270_v7 = vpop.permute.xlu0 %914  ;;  %v4272_v63 = vpop.permute.xlu1 %890 }
 0x234   : > { %1681 = vrot.lane.b32.xlu0 %v4016_v6, %s6302_s26  ;;  %1657 = vrot.lane.b32.xlu1 %v4028_v10, %s6301_s29 }
 0x236   : > { %v4278_v0 = vpop.permute.xlu0 %940  ;;  %v4280_v60 = vpop.permute.xlu1 %916 }
 0x238   : > { %1703 = vrot.lane.b32.xlu0 %v3858_v38, %s3619_s2  ;;  %1683 = vrot.lane.b32.xlu1 %v4028_v10, %s6302_s26 }
 0x23a   : > { %v4285_v59 = vpop.permute.xlu0 %966  ;;  %v4287_v58 = vpop.permute.xlu1 %942 }
 0x23c   : > { %1707 = vrot.lane.b32.xlu0 %v4016_v6, %s3619_s2  ;;  %1705 = vrot.lane.b32.xlu1 %v3868_v43, %s3619_s2 }
 0x23e   : > { %v4291_v57 = vpop.permute.xlu0 %992  ;;  %v4293_v55 = vpop.permute.xlu1 %968 }
 0x240   : > { %1729 = vrot.lane.b32.xlu0 %v3858_v38, %s3620_s24  ;;  %1709 = vrot.lane.b32.xlu1 %v4028_v10, %s3619_s2  ;;  %s3622_s2 = smov 98  }
 0x242   : > { %v4297_v53 = vpop.permute.xlu0 %1018  ;;  %v4299_v54 = vpop.permute.xlu1 %994 }
 0x244   : > { %1733 = vrot.lane.b32.xlu0 %v4016_v6, %s3620_s24  ;;  %1731 = vrot.lane.b32.xlu1 %v3868_v43, %s3620_s24 }
 0x246   : > { %v4303_v52 = vpop.permute.xlu0 %1044  ;;  %v4305_v50 = vpop.permute.xlu1 %1020 }
 0x248   : > { %1755 = vrot.lane.b32.xlu0 %v3858_v38, %s3621_s0  ;;  %1735 = vrot.lane.b32.xlu1 %v4028_v10, %s3620_s24  ;;  %s3623_s24 = smov 97  }
 0x24a   : > { %v4309_v51 = vpop.permute.xlu0 %1070  ;;  %v4311_v49 = vpop.permute.xlu1 %1046 }
 0x24c   : > { %1759 = vrot.lane.b32.xlu0 %v4016_v6, %s3621_s0  ;;  %1757 = vrot.lane.b32.xlu1 %v3868_v43, %s3621_s0 }
 0x24e   : > { %v4315_v48 = vpop.permute.xlu0 %1096  ;;  %v4317_v47 = vpop.permute.xlu1 %1072 }
 0x250   : > { %1781 = vrot.lane.b32.xlu0 %v3858_v38, %s3622_s2  ;;  %1761 = vrot.lane.b32.xlu1 %v4028_v10, %s3621_s0  ;;  %s3624_s0 = smov 96  }
 0x252   : > { %v4321_v46 = vpop.permute.xlu0 %1122  ;;  %v4323_v45 = vpop.permute.xlu1 %1098 }
 0x254   : > { %1785 = vrot.lane.b32.xlu0 %v4016_v6, %s3622_s2  ;;  %1783 = vrot.lane.b32.xlu1 %v3868_v43, %s3622_s2 }
 0x256   : > { %v4327_v44 = vpop.permute.xlu0 %1148  ;;  %v4329_v42 = vpop.permute.xlu1 %1124 }
 0x257   : > { %6303 = vst [vmem:[#allocation53_spill] sm:$0xff] %v4327_v44  ;;  %6304 = vst [vmem:[#allocation54_spill] sm:$0xff] %v4329_v42 }
 0x258   : > { %1807 = vrot.lane.b32.xlu0 %v3858_v38, %s3623_s24  ;;  %1787 = vrot.lane.b32.xlu1 %v4028_v10, %s3622_s2  ;;  %s3625_s2 = smov 95  }
 0x25a   : > { %v4333_v41 = vpop.permute.xlu0 %1174  ;;  %v4335_v40 = vpop.permute.xlu1 %1150 }
 0x25b   : > { %6305 = vst [vmem:[#allocation55_spill] sm:$0xff] %v4333_v41  ;;  %6306 = vst [vmem:[#allocation56_spill] sm:$0xff] %v4335_v40  ;;  %v924_v40 = vld [vmem:[#allocation2 + $0x40] sm:$0xff] }
 0x25c   : > { %1811 = vrot.lane.b32.xlu0 %v4016_v6, %s3623_s24  ;;  %1809 = vrot.lane.b32.xlu1 %v3868_v43, %s3623_s24 }
 0x25e   : > { %v4339_v39 = vpop.permute.xlu0 %1200  ;;  %v4341_v37 = vpop.permute.xlu1 %1176 }
 0x25f   : > { %6307 = vst [vmem:[#allocation57_spill] sm:$0xff] %v4339_v39  ;;  %6308 = vst [vmem:[#allocation58_spill] sm:$0xff] %v4341_v37 }
 0x260   : > { %1833 = vrot.lane.b32.xlu0 %v3858_v38, %s3624_s0  ;;  %1813 = vrot.lane.b32.xlu1 %v4028_v10, %s3623_s24  ;;  %s3626_s24 = smov 94  }
 0x262   : > { %v4345_v36 = vpop.permute.xlu0 %1226  ;;  %v4347_v35 = vpop.permute.xlu1 %1202 }
 0x263   : > { %6309 = vst [vmem:[#allocation59_spill] sm:$0xff] %v4345_v36  ;;  %6310 = vst [vmem:[#allocation60_spill] sm:$0xff] %v4347_v35 }
 0x264   : > { %1837 = vrot.lane.b32.xlu0 %v4016_v6, %s3624_s0  ;;  %1835 = vrot.lane.b32.xlu1 %v3868_v43, %s3624_s0 }
 0x266   : > { %v4351_v34 = vpop.permute.xlu0 %1252  ;;  %v4353_v33 = vpop.permute.xlu1 %1228 }
 0x267   : > { %6311 = vst [vmem:[#allocation61_spill] sm:$0xff] %v4351_v34  ;;  %6312 = vst [vmem:[#allocation62_spill] sm:$0xff] %v4353_v33 }
 0x268   : > { %1859 = vrot.lane.b32.xlu0 %v3858_v38, %s3625_s2  ;;  %1839 = vrot.lane.b32.xlu1 %v4028_v10, %s3624_s0  ;;  %s3627_s0 = smov 93  }
 0x26a   : > { %v4357_v32 = vpop.permute.xlu0 %1278  ;;  %v4359_v31 = vpop.permute.xlu1 %1254 }
 0x26b   : > { %6313 = vst [vmem:[#allocation63_spill] sm:$0xff] %v4357_v32  ;;  %6314 = vst [vmem:[#allocation64_spill] sm:$0xff] %v4359_v31 }
 0x26c   : > { %1863 = vrot.lane.b32.xlu0 %v4016_v6, %s3625_s2  ;;  %1861 = vrot.lane.b32.xlu1 %v3868_v43, %s3625_s2 }
 0x26e   : > { %v4363_v35 = vpop.permute.xlu0 %1304  ;;  %v4365_v36 = vpop.permute.xlu1 %1280 }
 0x26f   : > { %6315 = vst [vmem:[#allocation65_spill] sm:$0xff] %v4363_v35  ;;  %6316 = vst [vmem:[#allocation66_spill] sm:$0xff] %v4365_v36 }
 0x270   : > { %1885 = vrot.lane.b32.xlu0 %v3858_v38, %s3626_s24  ;;  %1865 = vrot.lane.b32.xlu1 %v4028_v10, %s3625_s2  ;;  %s3628_s2 = smov 83  }
 0x272   : > { %v4369_v33 = vpop.permute.xlu0 %1330  ;;  %v4371_v34 = vpop.permute.xlu1 %1306 }
 0x273   : > { %6317 = vst [vmem:[#allocation67_spill] sm:$0xff] %v4369_v33  ;;  %6318 = vst [vmem:[#allocation68_spill] sm:$0xff] %v4371_v34 }
 0x274   : > { %1889 = vrot.lane.b32.xlu0 %v4016_v6, %s3626_s24  ;;  %1887 = vrot.lane.b32.xlu1 %v3868_v43, %s3626_s24 }
 0x276   : > { %v4375_v31 = vpop.permute.xlu0 %1356  ;;  %v4377_v32 = vpop.permute.xlu1 %1332 }
 0x277   : > { %6319 = vst [vmem:[#allocation69_spill] sm:$0xff] %v4375_v31  ;;  %6320 = vst [vmem:[#allocation70_spill] sm:$0xff] %v4377_v32 }
 0x278   : > { %1911 = vrot.lane.b32.xlu0 %v3858_v38, %s3627_s0  ;;  %1891 = vrot.lane.b32.xlu1 %v4028_v10, %s3626_s24  ;;  %s3629_s24 = smov 82  }
 0x27a   : > { %v4381_v36 = vpop.permute.xlu0 %1382  ;;  %v4383_v35 = vpop.permute.xlu1 %1358 }
 0x27b   : > { %6321 = vst [vmem:[#allocation71_spill] sm:$0xff] %v4381_v36  ;;  %6322 = vst [vmem:[#allocation72_spill] sm:$0xff] %v4383_v35 }
 0x27c   : > { %1915 = vrot.lane.b32.xlu0 %v4016_v6, %s3627_s0  ;;  %1913 = vrot.lane.b32.xlu1 %v3868_v43, %s3627_s0 }
 0x27e   : > { %v4387_v34 = vpop.permute.xlu0 %1408  ;;  %v4389_v33 = vpop.permute.xlu1 %1384 }
 0x27f   : > { %6323 = vst [vmem:[#allocation73_spill] sm:$0xff] %v4387_v34  ;;  %6324 = vst [vmem:[#allocation74_spill] sm:$0xff] %v4389_v33 }
 0x280   : > { %1937 = vrot.lane.b32.xlu0 %v3858_v38, %s3628_s2  ;;  %1917 = vrot.lane.b32.xlu1 %v4028_v10, %s3627_s0  ;;  %s3630_s0 = smov 81  }
 0x282   : > { %v4393_v32 = vpop.permute.xlu0 %1434  ;;  %v4395_v31 = vpop.permute.xlu1 %1410 }
 0x283   : > { %6325 = vst [vmem:[#allocation75_spill] sm:$0xff] %v4393_v32  ;;  %6326 = vst [vmem:[#allocation76_spill] sm:$0xff] %v4395_v31 }
 0x284   : > { %1941 = vrot.lane.b32.xlu0 %v4016_v6, %s3628_s2  ;;  %1939 = vrot.lane.b32.xlu1 %v3868_v43, %s3628_s2 }
 0x286   : > { %v4399_v35 = vpop.permute.xlu0 %1460  ;;  %v4401_v36 = vpop.permute.xlu1 %1436 }
 0x287   : > { %6327 = vst [vmem:[#allocation77_spill] sm:$0xff] %v4399_v35  ;;  %6328 = vst [vmem:[#allocation78_spill] sm:$0xff] %v4401_v36 }
 0x288   : > { %1963 = vrot.lane.b32.xlu0 %v3858_v38, %s3629_s24  ;;  %1943 = vrot.lane.b32.xlu1 %v4028_v10, %s3628_s2  ;;  %s3631_s2 = smov 80  }
 0x28a   : > { %v4405_v33 = vpop.permute.xlu0 %1499  ;;  %v4407_v34 = vpop.permute.xlu1 %1462 }
 0x28b   : > { %6329 = vst [vmem:[#allocation79_spill] sm:$0xff] %v4405_v33  ;;  %6330 = vst [vmem:[#allocation80_spill] sm:$0xff] %v4407_v34 }
 0x28c   : > { %1967 = vrot.lane.b32.xlu0 %v4016_v6, %s3629_s24  ;;  %1965 = vrot.lane.b32.xlu1 %v3868_v43, %s3629_s24 }
 0x28e   : > { %v4411_v31 = vpop.permute.xlu0 %1525  ;;  %v4413_v32 = vpop.permute.xlu1 %1501 }
 0x28f   : > { %6331 = vst [vmem:[#allocation81_spill] sm:$0xff] %v4411_v31  ;;  %6332 = vst [vmem:[#allocation82_spill] sm:$0xff] %v4413_v32  ;;  %v6156_v32 = vlaneseq }
 0x290   : > { %1989 = vrot.lane.b32.xlu0 %v3858_v38, %s3630_s0  ;;  %1969 = vrot.lane.b32.xlu1 %v4028_v10, %s3629_s24  ;;  %s3632_s24 = smov 79  }
 0x292   : > { %v4417_v36 = vpop.permute.xlu0 %1551  ;;  %v4419_v35 = vpop.permute.xlu1 %1527 }
 0x293   : > { %6333 = vst [vmem:[#allocation83_spill] sm:$0xff] %v4417_v36  ;;  %6334 = vst [vmem:[#allocation84_spill] sm:$0xff] %v4419_v35  ;;  %v4435_v35 = vand.u32 127, %v6156_v32 }
 0x294   : > { %1993 = vrot.lane.b32.xlu0 %v4016_v6, %s3630_s0  ;;  %1991 = vrot.lane.b32.xlu1 %v3868_v43, %s3630_s0 }
 0x295   : > { %vm892_vm1 = vcmp.lt.s32.totalorder %v4435_v35, 50  ;;  %vm867_vm2 = vcmp.lt.s32.totalorder %v4435_v35, 51  ;;  %vm918_vm3 = vcmp.lt.s32.totalorder %v4435_v35, 49  ;;  %vm944_vm4 = vcmp.lt.s32.totalorder %v4435_v35, 48 }
 0x296   : > { %v4423_v33 = vpop.permute.xlu0 %1577  ;;  %v4425_v34 = vpop.permute.xlu1 %1553  ;;  %v895_v32 = vsel %vm892_vm1, %v4262_v2, %v3997_v61  ;;  %v870_v36 = vsel %vm867_vm2, %v4254_v1, %v3990_v56  ;;  %v893_v39 = vsel %vm892_vm1, %v3997_v61, %v4262_v2  ;;  %v868_v28 = vsel %vm867_vm2, %v3990_v56, %v4254_v1 }
 0x297   : > { %6335 = vst [vmem:[#allocation85_spill] sm:$0xff] %v4423_v33  ;;  %6336 = vst [vmem:[#allocation86_spill] sm:$0xff] %v4425_v34  ;;  %vm970_vm5 = vcmp.lt.s32.totalorder %v4435_v35, 47  ;;  %vm996_vm6 = vcmp.lt.s32.totalorder %v4435_v35, 46  ;;  %v919_v2 = vsel %vm918_vm3, %v4007_v4, %v4270_v7  ;;  %v896_v41 = vsel %vm892_vm1, %v4272_v63, %v4009_v5 }
 0x298   : > { %2015 = vrot.lane.b32.xlu0 %v3858_v38, %s3631_s2  ;;  %1995 = vrot.lane.b32.xlu1 %v4028_v10, %s3630_s0  ;;  %vm1022_vm7 = vcmp.lt.s32.totalorder %v4435_v35, 45  ;;  %v903_v56 = vmul.f32 %v899_v30, %v893_v39  ;;  %s3633_s0 = smov 78   ;;  %v874_v30 = vld [vmem:[#allocation2 + $0x10] sm:$0xff]  ;;  %v869_v39 = vsel %vm867_vm2, %v3999_v62, %v4264_v3  ;;  %vm1048_vm8 = vcmp.lt.s32.totalorder %v4435_v35, 35 }
 0x299   : > { %vm1074_vm9 = vcmp.lt.s32.totalorder %v4435_v35, 34  ;;  %vm1100_vm10 = vcmp.lt.s32.totalorder %v4435_v35, 33  ;;  %vm1126_vm11 = vcmp.lt.s32.totalorder %v4435_v35, 32  ;;  %vm1152_vm12 = vcmp.lt.s32.totalorder %v4435_v35, 31 }
 0x29a   : > { %v4429_v31 = vpop.permute.xlu0 %1603  ;;  %v4431_v37 = vpop.permute.xlu1 %1579  ;;  %vm1178_vm13 = vcmp.lt.s32.totalorder %v4435_v35, 30  ;;  %vm1204_vm14 = vcmp.lt.s32.totalorder %v4435_v35, 29  ;;  %vm1230_vm15 = vcmp.lt.s32.totalorder %v4435_v35, 19 }
 0x29b   : > { %6337 = vst [vmem:[#allocation87_spill] sm:$0xff] %v4429_v31  ;;  %6338 = vst [vmem:[#allocation88_spill] sm:$0xff] %v4431_v37  ;;  %v898_v37 = vld [vmem:[#allocation2 + $0x20] sm:$0xff] }
 0x29c   : > { %2019 = vrot.lane.b32.xlu0 %v4016_v6, %s3631_s2  ;;  %2017 = vrot.lane.b32.xlu1 %v3868_v43, %s3631_s2  ;;  %v872_v31 = vld [vmem:[#allocation2] sm:$0xff]  ;;  %v902_v29 = vmul.f32 %v898_v37, %v895_v32  ;;  %v925_v37 = vld [vmem:[#allocation2 + $0x48] sm:$0xff] }
 0x29d   : > { %v876_v32 = vmul.f32 %v872_v31, %v870_v36  ;;  %v894_v31 = vsel %vm892_vm1, %v4009_v5, %v4272_v63  ;;  %v950_v36 = vld [vmem:[#allocation2 + $0x60] sm:$0xff]  ;;  %v871_v5 = vsel %vm867_vm2, %v4264_v3, %v3999_v62  ;;  %v904_v63 = vmul.f32 %v900_v27, %v896_v41 }
 0x29e   : > { %v4438_v33 = vpop.permute.xlu0 %1629  ;;  %v4440_v34 = vpop.permute.xlu1 %1605  ;;  %v920_v27 = vsel %vm918_vm3, %v4021_v9, %v4280_v60  ;;  %v976_v41 = vld [vmem:[#allocation2 + $0x80] sm:$0xff]  ;;  %v878_v44 = vmul.f32 %v874_v30, %v871_v5  ;;  %vm1256_vm1 = vcmp.lt.s32.totalorder %v4435_v35, 18  ;;  %vm1282_vm2 = vcmp.lt.s32.totalorder %v4435_v35, 17 }
 0x29f   : > { %6339 = vst [vmem:[#allocation89_spill] sm:$0xff] %v4438_v33  ;;  %6340 = vst [vmem:[#allocation90_spill] sm:$0xff] %v4440_v34 }
 0x2a0   : > { %2041 = vrot.lane.b32.xlu0 %v3858_v38, %s3632_s24  ;;  %2021 = vrot.lane.b32.xlu1 %v4028_v10, %s3631_s2 }
 0x2a2   : > { %v4452_v33 = vpop.permute.xlu0 %1655  ;;  %v4454_v34 = vpop.permute.xlu1 %1631 }
 0x2a3   : > { %6341 = vst [vmem:[#allocation91_spill] sm:$0xff] %v4452_v33  ;;  %6342 = vst [vmem:[#allocation92_spill] sm:$0xff] %v4454_v34  ;;  %v921_v34 = vsel %vm918_vm3, %v4270_v7, %v4007_v4  ;;  %v873_v33 = vld [vmem:[#allocation2 + $0x8] sm:$0xff]  ;;  %v947_v4 = vsel %vm944_vm4, %v4278_v0, %v4019_v8 }
 0x2a4   : > { %2045 = vrot.lane.b32.xlu0 %v4016_v6, %s3632_s24  ;;  %2043 = vrot.lane.b32.xlu1 %v3868_v43, %s3632_s24  ;;  %v928_v42 = vmul.f32 %v924_v40, %v921_v34  ;;  %v877_v7 = vmul.f32 %v873_v33, %v868_v28  ;;  %v875_v34 = vld [vmem:[#allocation2 + $0x18] sm:$0xff]  ;;  %v929_v40 = vmul.f32 %v925_v37, %v919_v2 }
 0x2a5   : > { %v945_v28 = vsel %vm944_vm4, %v4019_v8, %v4278_v0  ;;  %v922_v33 = vsel %vm918_vm3, %v4280_v60, %v4021_v9  ;;  %v927_v37 = vld [vmem:[#allocation2 + $0x58] sm:$0xff]  ;;  %v973_v0 = vsel %vm970_vm5, %v4285_v59, %v4030_v11  ;;  %v879_v25 = vmul.f32 %v875_v34, %v869_v39  ;;  %v952_v60 = vld [vmem:[#allocation2 + $0x70] sm:$0xff] }
 0x2a6   : > { %v4479_v61 = vpop.permute.xlu0 %1681  ;;  %v4490_v1 = vpop.permute.xlu1 %1657  ;;  %v907_v2 = vadd.f32 %v903_v56, %v877_v7  ;;  %v971_v9 = vsel %vm970_vm5, %v4030_v11, %v4285_v59  ;;  %v948_v56 = vsel %vm944_vm4, %v4287_v58, %v4032_v12  ;;  %v946_v11 = vsel %vm944_vm4, %v4032_v12, %v4287_v58  ;;  %v1002_v59 = vld [vmem:[#allocation2 + $0xa0] sm:$0xff]  ;;  %v978_v58 = vld [vmem:[#allocation2 + $0x90] sm:$0xff] }
 0x2a7   : > { %6343 = vst [vmem:[#allocation93_spill] sm:$0xff] %v4479_v61  ;;  %6344 = vst [vmem:[#allocation94_spill] sm:$0xff] %v4490_v1  ;;  %v901_v61 = vld [vmem:[#allocation2 + $0x38] sm:$0xff]  ;;  %v906_v1 = vadd.f32 %v902_v29, %v876_v32  ;;  %v926_v29 = vld [vmem:[#allocation2 + $0x50] sm:$0xff]  ;;  %v954_v32 = vmul.f32 %v950_v36, %v947_v4  ;;  %v999_v7 = vsel %vm996_vm6, %v4291_v57, %v4038_v13  ;;  %vm1308_vm3 = vcmp.lt.s32.totalorder %v4435_v35, 16 }
 0x2a8   : > { %2067 = vrot.lane.b32.xlu0 %v3858_v38, %s3633_s0  ;;  %2047 = vrot.lane.b32.xlu1 %v4028_v10, %s3632_s24  ;;  %v905_v3 = vmul.f32 %v901_v61, %v894_v31  ;;  %v955_v61 = vmul.f32 %v951_v26, %v945_v28  ;;  %v930_v31 = vmul.f32 %v926_v29, %v922_v33  ;;  %v977_v36 = vld [vmem:[#allocation2 + $0x88] sm:$0xff]  ;;  %v2119_v26 = vld [vmem:[%s6346_s1] sm:$0xff]  ;;  %v953_v4 = vld [vmem:[#allocation2 + $0x78] sm:$0xff]  ;;  %vm1334_vm4 = vcmp.lt.s32.totalorder %v4435_v35, 15  ;;  %s6490_s24 = sshll.u32 %s6493_s28, 5 }
 0x2a9   : > { %v933_v34 = vadd.f32 %v929_v40, %v907_v2  ;;  %v908_v39 = vadd.f32 %v904_v63, %v878_v44  ;;  %v981_v33 = vmul.f32 %v977_v36, %v971_v9  ;;  %v997_v12 = vsel %vm996_vm6, %v4038_v13, %v4291_v57  ;;  %v979_v63 = vld [vmem:[#allocation2 + $0x98] sm:$0xff]  ;;  %v1004_v9 = vld [vmem:[#allocation2 + $0xb0] sm:$0xff] }
 0x2aa   : > { %v4521_v62 = vpop.permute.xlu0 %1703  ;;  %v4531_v8 = vpop.permute.xlu1 %1683  ;;  %v909_v5 = vadd.f32 %v905_v3, %v879_v25  ;;  %v957_v44 = vmul.f32 %v953_v4, %v946_v11  ;;  %v1006_v40 = vmul.f32 %v1002_v59, %v999_v7  ;;  %v1005_v4 = vld [vmem:[#allocation2 + $0xb8] sm:$0xff]  ;;  %v998_v11 = vsel %vm996_vm6, %v4048_v16, %v4299_v54  ;;  %v1054_v7 = vld [vmem:[#allocation2 + $0xe0] sm:$0xff] }
 0x2ab   : > { %6345 = vst [vmem:[#allocation95_spill] sm:$0xff] %v4521_v62  ;;  %v932_v62 = vadd.f32 %v928_v42, %v906_v1  ;;  %v931_v42 = vmul.f32 %v927_v37, %v920_v27  ;;  %v980_v1 = vmul.f32 %v976_v41, %v973_v0  ;;  %v956_v37 = vmul.f32 %v952_v60, %v948_v56  ;;  %v1003_v27 = vld [vmem:[#allocation2 + $0xa8] sm:$0xff] }
 0x2ac   : > { %2071 = vrot.lane.b32.xlu0 %v4016_v6, %s3633_s0  ;;  %2069 = vrot.lane.b32.xlu1 %v3868_v43, %s3633_s0  ;;  %v974_v41 = vsel %vm970_vm5, %v4293_v55, %v4040_v14  ;;  %v959_v25 = vadd.f32 %v955_v61, %v933_v34  ;;  %v934_v13 = vadd.f32 %v930_v31, %v908_v39  ;;  %v2120_v61 = vld [vmem:[%s6346_s1 + $0x8] sm:$0xff]  ;;  %s6347_s1 = sld [smem:[#allocation102_spill]] }
 0x2ad   : > { %v958_v28 = vadd.f32 %v954_v32, %v932_v62  ;;  %v972_v62 = vsel %vm970_vm5, %v4040_v14, %v4293_v55  ;;  %v935_v57 = vadd.f32 %v931_v42, %v909_v5  ;;  %v1028_v32 = vld [vmem:[#allocation2 + $0xc0] sm:$0xff]  ;;  %v1025_v0 = vsel %vm1022_vm7, %v4297_v53, %v4046_v15  ;;  %v1029_v55 = vld [vmem:[#allocation2 + $0xc8] sm:$0xff] }
 0x2ae   : > { %v4557_v30 = vpop.permute.xlu0 %1707  ;;  %v4559_v29 = vpop.permute.xlu1 %1705  ;;  %v1007_v36 = vmul.f32 %v1003_v27, %v997_v12  ;;  %v982_v14 = vmul.f32 %v978_v58, %v974_v41  ;;  %v1023_v31 = vsel %vm1022_vm7, %v4046_v15, %v4297_v53  ;;  %v1000_v60 = vsel %vm996_vm6, %v4299_v54, %v4048_v16  ;;  %v1030_v54 = vld [vmem:[#allocation2 + $0xd0] sm:$0xff]  ;;  %v1031_v41 = vld [vmem:[#allocation2 + $0xd8] sm:$0xff] }
 0x2af   : > { %v984_v3 = vadd.f32 %v980_v1, %v958_v28  ;;  %v960_v42 = vadd.f32 %v956_v37, %v934_v13  ;;  %v983_v1 = vmul.f32 %v979_v63, %v972_v62  ;;  %v961_v15 = vadd.f32 %v957_v44, %v935_v57  ;;  %v1055_v28 = vld [vmem:[#allocation2 + $0xe8] sm:$0xff]  ;;  %v1056_v57 = vld [vmem:[#allocation2 + $0xf0] sm:$0xff] }
 0x2b0   : > { %2123 = vperm.xlu0 %3467, %v2119_v26   ;;  %2073 = vrot.lane.b32.xlu1 %v4028_v10, %s3633_s0  ;;  %v985_v26 = vadd.f32 %v981_v33, %v959_v25  ;;  %s3634_s0 = smov 77   ;;  %v1032_v59 = vmul.f32 %v1028_v32, %v1025_v0  ;;  %v1051_v34 = vsel %vm1048_vm8, %v4303_v52, %v4054_v17  ;;  %v1081_v63 = vld [vmem:[#allocation2 + $0x108] sm:$0xff]  ;;  %vm1360_vm5 = vcmp.lt.s32.totalorder %v4435_v35, 14 }
 0x2b1   : > { %v1010_v53 = vadd.f32 %v1006_v40, %v984_v3  ;;  %v1033_v39 = vmul.f32 %v1029_v55, %v1023_v31  ;;  %v1008_v5 = vmul.f32 %v1004_v9, %v1000_v60  ;;  %v1049_v16 = vsel %vm1048_vm8, %v4054_v17, %v4303_v52  ;;  %v1080_v40 = vld [vmem:[#allocation2 + $0x100] sm:$0xff]  ;;  %v1057_v3 = vld [vmem:[#allocation2 + $0xf8] sm:$0xff] }
 0x2b2   : > { %v4580_v2 = vpop.permute.xlu0 %1729  ;;  %v4594_v56 = vpop.permute.xlu1 %1709  ;;  %v1026_v33 = vsel %vm1022_vm7, %v4305_v50, %v4056_v18  ;;  %v1011_v27 = vadd.f32 %v1007_v36, %v985_v26  ;;  %v986_v12 = vadd.f32 %v982_v14, %v960_v42  ;;  %v1009_v58 = vmul.f32 %v1005_v4, %v998_v11  ;;  %v1106_v26 = vld [vmem:[#allocation2 + $0x120] sm:$0xff]  ;;  %v1107_v4 = vld [vmem:[#allocation2 + $0x128] sm:$0xff] }
 0x2b3   : > { %v1024_v25 = vsel %vm1022_vm7, %v4056_v18, %v4305_v50  ;;  %v987_v52 = vadd.f32 %v983_v1, %v961_v15  ;;  %v1058_v44 = vmul.f32 %v1054_v7, %v1051_v34  ;;  %v1075_v62 = vsel %vm1074_vm9, %v4062_v19, %v4309_v51  ;;  %v1082_v15 = vld [vmem:[#allocation2 + $0x110] sm:$0xff] }
 0x2b4   : > { %2093 = vrot.lane.b32.xlu0 %v3858_v38, %s3634_s0  ;;  %2128 = vperm.xlu1 %3468, %v2120_v61   ;;  %v1077_v13 = vsel %vm1074_vm9, %v4309_v51, %v4062_v19  ;;  %v1059_v18 = vmul.f32 %v1055_v28, %v1049_v16  ;;  %v1034_v50 = vmul.f32 %v1030_v54, %v1026_v33  ;;  %v2175_v19 = vld [vmem:[%s6347_s1] sm:$0xff]  ;;  %vm1386_vm6 = vcmp.lt.s32.totalorder %v4435_v35, 13 }
 0x2b5   : > { %v1050_v32 = vsel %vm1048_vm8, %v4064_v20, %v4311_v49  ;;  %v1052_v0 = vsel %vm1048_vm8, %v4311_v49, %v4064_v20  ;;  %v1036_v51 = vadd.f32 %v1032_v59, %v1010_v53  ;;  %v1037_v61 = vadd.f32 %v1033_v39, %v1011_v27  ;;  %v2191_v39 = vld [vmem:[%s6348_s7] sm:$0xff]  ;;  %v2176_v27 = vld [vmem:[%s6347_s1 + $0x8] sm:$0xff] }
 0x2b6   : > { %v4615_v37 = vpop.permute.xlu0 %1733  ;;  %v4621_v17 = vpop.permute.xlu1 %1731  ;;  %v1012_v36 = vadd.f32 %v1008_v5, %v986_v12  ;;  %v1035_v14 = vmul.f32 %v1031_v41, %v1024_v25  ;;  %v1013_v31 = vadd.f32 %v1009_v58, %v987_v52  ;;  %v1084_v9 = vmul.f32 %v1080_v40, %v1077_v13  ;;  %v1083_v5 = vld [vmem:[#allocation2 + $0x118] sm:$0xff]  ;;  %v1132_v16 = vld [vmem:[#allocation2 + $0x140] sm:$0xff]  ;;  %v1133_v41 = vld [vmem:[#allocation2 + $0x148] sm:$0xff] }
 0x2b7   : > { %v1085_v60 = vmul.f32 %v1081_v63, %v1075_v62  ;;  %v1103_v20 = vsel %vm1100_vm10, %v4315_v48, %v4070_v21  ;;  %v1060_v42 = vmul.f32 %v1056_v57, %v1052_v0  ;;  %v1061_v1 = vmul.f32 %v1057_v3, %v1050_v32  ;;  %v6349_v57 = vld [vmem:[#allocation10_spill] sm:$0xff]  ;;  %v6350_v3 = vld [vmem:[#allocation53_spill] sm:$0xff] }
 0x2b8   : > { %2097 = vrot.lane.b32.xlu0 %v4016_v6, %s3634_s0  ;;  %2095 = vrot.lane.b32.xlu1 %v3868_v43, %s3634_s0  ;;  %v1101_v11 = vsel %vm1100_vm10, %v4070_v21, %v4315_v48  ;;  %v1078_v53 = vsel %vm1074_vm9, %v4317_v47, %v4072_v22  ;;  %v1062_v59 = vadd.f32 %v1058_v44, %v1036_v51  ;;  %v2209_v0 = vld [vmem:[%s6351_s9] sm:$0xff]  ;;  %vm1412_vm7 = vcmp.lt.s32.totalorder %v4435_v35, 3 }
 0x2b9   : > { %v1063_v7 = vadd.f32 %v1059_v18, %v1037_v61  ;;  %v1038_v34 = vadd.f32 %v1034_v50, %v1012_v36  ;;  %v1039_v21 = vadd.f32 %v1035_v14, %v1013_v31  ;;  %v1110_v48 = vmul.f32 %v1106_v26, %v1103_v20  ;;  %v1109_v50 = vld [vmem:[#allocation2 + $0x138] sm:$0xff]  ;;  %v1159_v61 = vld [vmem:[#allocation2 + $0x168] sm:$0xff]  ;;  %v6353_v14 = vld [vmem:[#allocation54_spill] sm:$0xff] }
 0x2ba   : > { %v4647_v55 = vpop.permute.xlu0 %1755  ;;  %v4653_v49 = vpop.permute.xlu1 %1735  ;;  %v1076_v28 = vsel %vm1074_vm9, %v4072_v22, %v4317_v47  ;;  %v1129_v54 = vsel %vm1126_vm11, %v4321_v46, %v4078_v23  ;;  %v1111_v12 = vmul.f32 %v1107_v4, %v1101_v11  ;;  %v1086_v58 = vmul.f32 %v1082_v15, %v1078_v53  ;;  %v1108_v47 = vld [vmem:[#allocation2 + $0x130] sm:$0xff] }
 0x2bb   : > { %v1127_v22 = vsel %vm1126_vm11, %v4078_v23, %v4321_v46  ;;  %v1104_v25 = vsel %vm1100_vm10, %v4323_v45, %v4080_v24  ;;  %v1088_v44 = vadd.f32 %v1084_v9, %v1062_v59  ;;  %v1089_v40 = vadd.f32 %v1085_v60, %v1063_v7  ;;  %v1158_v46 = vld [vmem:[#allocation2 + $0x160] sm:$0xff]  ;;  %v2192_v60 = vld [vmem:[%s6348_s7 + $0x8] sm:$0xff]  ;;  %s698_s7 = scalar_lea.vmem %s6021_s22, %s6490_s24 }
 0x2bc   : > { %2179 = vperm.xlu0 %3467, %v2175_v19   ;;  %2099 = vrot.lane.b32.xlu1 %v4028_v10, %s3634_s0  ;;  %v1064_v63 = vadd.f32 %v1060_v42, %v1038_v34  ;;  %v1065_v62 = vadd.f32 %v1061_v1, %v1039_v21  ;;  %v1087_v13 = vmul.f32 %v1083_v5, %v1076_v28  ;;  %v1135_v1 = vld [vmem:[#allocation2 + $0x158] sm:$0xff]  ;;  %v1184_v59 = vld [vmem:[#allocation2 + $0x180] sm:$0xff]  ;;  %v1185_v7 = vld [vmem:[#allocation2 + $0x188] sm:$0xff]  ;;  %vm1438_vm8 = vcmp.lt.s32.totalorder %v4435_v35, 2 }
 0x2bd   : > { %v1136_v18 = vmul.f32 %v1132_v16, %v1129_v54  ;;  %v1102_v23 = vsel %vm1100_vm10, %v4080_v24, %v4323_v45  ;;  %v1155_v32 = vsel %vm1152_vm12, %v6350_v3, %v6349_v57  ;;  %v1137_v19 = vmul.f32 %v1133_v41, %v1127_v22  ;;  %v1134_v24 = vld [vmem:[#allocation2 + $0x150] sm:$0xff]  ;;  %v6352_v45 = vld [vmem:[#allocation11_spill] sm:$0xff] }
 0x2be   : > { %v4677_v33 = vpop.permute.xlu0 %1759  ;;  %v4691_v52 = vpop.permute.xlu1 %1757  ;;  %v1112_v51 = vmul.f32 %v1108_v47, %v1104_v25  ;;  %v1153_v36 = vsel %vm1152_vm12, %v6349_v57, %v6350_v3  ;;  %v1130_v31 = vsel %vm1126_vm11, %v6353_v14, %v6352_v45  ;;  %v1114_v26 = vadd.f32 %v1110_v48, %v1088_v44  ;;  %v6354_v34 = vld [vmem:[#allocation55_spill] sm:$0xff]  ;;  %v1160_v22 = vld [vmem:[#allocation2 + $0x170] sm:$0xff]  ;;  %v6357_v47 = vld [vmem:[#allocation13_spill] sm:$0xff] }
 0x2bf   : > { %v1115_v20 = vadd.f32 %v1111_v12, %v1089_v40  ;;  %v1090_v42 = vadd.f32 %v1086_v58, %v1064_v63  ;;  %v1128_v4 = vsel %vm1126_vm11, %v6352_v45, %v6353_v14  ;;  %v1113_v15 = vmul.f32 %v1109_v50, %v1102_v23  ;;  %v6358_v25 = vld [vmem:[#allocation56_spill] sm:$0xff]  ;;  %v2210_v63 = vld [vmem:[%s6351_s9 + $0x8] sm:$0xff]  ;;  %v1210_v23 = vld [vmem:[#allocation2 + $0x1a0] sm:$0xff]  ;;  %s3635_s9 = smov 9  }
 0x2c0   : > { %2195 = vperm.xlu0 %3467, %v2191_v39   ;;  %2184 = vperm.xlu1 %3468, %v2176_v27   ;;  %v1162_v53 = vmul.f32 %v1158_v46, %v1155_v32  ;;  %v6355_v39 = vld [vmem:[#allocation12_spill] sm:$0xff]  ;;  %v1091_v5 = vadd.f32 %v1087_v13, %v1065_v62  ;;  %v1140_v28 = vadd.f32 %v1136_v18, %v1114_v26  ;;  %v2412_v27 = vld [vmem:[%s6356_s13] sm:$0xf]  ;;  %v1161_v18 = vld [vmem:[#allocation2 + $0x178] sm:$0xff]  ;;  %vm1464_vm9 = vcmp.lt.s32.totalorder %v4435_v35, 1 }
 0x2c1   : > { %v1179_v21 = vsel %vm1178_vm13, %v6355_v39, %v6354_v34  ;;  %v1181_v48 = vsel %vm1178_vm13, %v6354_v34, %v6355_v39  ;;  %v1163_v16 = vmul.f32 %v1159_v61, %v1153_v36  ;;  %v1138_v54 = vmul.f32 %v1134_v24, %v1130_v31  ;;  %v6359_v46 = vld [vmem:[#allocation14_spill] sm:$0xff]  ;;  %v6360_v57 = vld [vmem:[#allocation57_spill] sm:$0xff]  ;;  %v1186_v14 = vld [vmem:[#allocation2 + $0x190] sm:$0xff] }
 0x2c2   : > { %v4713_v9 = vpop.permute.xlu0 %1781  ;;  %v4722_v11 = vpop.permute.xlu1 %1761  ;;  %v1141_v12 = vadd.f32 %v1137_v19, %v1115_v20  ;;  %v1116_v58 = vadd.f32 %v1112_v51, %v1090_v42  ;;  %v1139_v41 = vmul.f32 %v1135_v1, %v1128_v4  ;;  %v1156_v44 = vsel %vm1152_vm12, %v6358_v25, %v6357_v47  ;;  %v1211_v51 = vld [vmem:[#allocation2 + $0x1a8] sm:$0xff]  ;;  %v1187_v4 = vld [vmem:[#allocation2 + $0x198] sm:$0xff] }
 0x2c3   : > { %v1188_v62 = vmul.f32 %v1184_v59, %v1181_v48  ;;  %v1189_v13 = vmul.f32 %v1185_v7, %v1179_v21  ;;  %v1154_v50 = vsel %vm1152_vm12, %v6357_v47, %v6358_v25  ;;  %v1207_v3 = vsel %vm1204_vm14, %v6360_v57, %v6359_v46  ;;  %v6361_v31 = vld [vmem:[#allocation15_spill] sm:$0xff]  ;;  %v6364_v59 = vld [vmem:[#allocation16_spill] sm:$0xff]  ;;  %v2504_v21 = vld [vmem:[%s6363_s15] sm:$0xff] }
 0x2c4   : > { %2213 = vperm.xlu0 %3467, %v2209_v0   ;;  %2200 = vperm.xlu1 %3468, %v2192_v60   ;;  %v1117_v0 = vadd.f32 %v1113_v15, %v1091_v5  ;;  %v1166_v19 = vadd.f32 %v1162_v53, %v1140_v28  ;;  %v1205_v61 = vsel %vm1204_vm14, %v6359_v46, %v6360_v57  ;;  %v6362_v60 = vld [vmem:[#allocation58_spill] sm:$0xff]  ;;  %v2505_v20 = vld [vmem:[%s6363_s15 + $0x8] sm:$0xff]  ;;  %v1213_v47 = vld [vmem:[#allocation2 + $0x1b8] sm:$0xff]  ;;  %vm1503_vm10 = vcmp.lt.s32.totalorder %v4435_v35, 127 }
 0x2c5   : > { %v1167_v36 = vadd.f32 %v1163_v16, %v1141_v12  ;;  %v1142_v24 = vadd.f32 %v1138_v54, %v1116_v58  ;;  %v1164_v45 = vmul.f32 %v1160_v22, %v1156_v44  ;;  %v1182_v26 = vsel %vm1178_vm13, %v6362_v60, %v6361_v31  ;;  %v1236_v53 = vld [vmem:[#allocation2 + $0x1c0] sm:$0xff]  ;;  %v6365_v7 = vld [vmem:[#allocation59_spill] sm:$0xff]  ;;  %v1212_v22 = vld [vmem:[#allocation2 + $0x1b0] sm:$0xff] }
 0x2c6   : > { %v4739_v40 = vpop.permute.xlu0 %1785  ;;  %v4752_v32 = vpop.permute.xlu1 %1783  ;;  %v1165_v42 = vmul.f32 %v1161_v18, %v1154_v50  ;;  %v1214_v1 = vmul.f32 %v1210_v23, %v1207_v3  ;;  %v1180_v15 = vsel %vm1178_vm13, %v6361_v31, %v6362_v60  ;;  %v1233_v34 = vsel %vm1230_vm15, %v6365_v7, %v6364_v59  ;;  %v1237_v12 = vld [vmem:[#allocation2 + $0x1c8] sm:$0xff]  ;;  %v6366_v25 = vld [vmem:[#allocation60_spill] sm:$0xff]  ;;  %v6367_v44 = vld [vmem:[#allocation17_spill] sm:$0xff] }
 0x2c7   : > { %v1143_v48 = vadd.f32 %v1139_v41, %v1117_v0  ;;  %v1192_v5 = vadd.f32 %v1188_v62, %v1166_v19  ;;  %v1193_v28 = vadd.f32 %v1189_v13, %v1167_v36  ;;  %v1215_v16 = vmul.f32 %v1211_v51, %v1205_v61  ;;  %v1262_v50 = vld [vmem:[#allocation2 + $0x1e0] sm:$0xff]  ;;  %v6369_v46 = vld [vmem:[#allocation61_spill] sm:$0xff]  ;;  %v1263_v51 = vld [vmem:[#allocation2 + $0x1e8] sm:$0xff] }
 0x2c8   : > { %2415 = vperm.xlu0 %3467, %v2412_v27   ;;  %2218 = vperm.xlu1 %3468, %v2210_v63   ;;  %v1190_v27 = vmul.f32 %v1186_v14, %v1182_v26  ;;  %v1231_v58 = vsel %vm1230_vm15, %v6364_v59, %v6365_v7  ;;  %v1206_v63 = vsel %vm1204_vm14, %v6367_v44, %v6366_v25  ;;  %v6368_v23 = vld [vmem:[#allocation18_spill] sm:$0xff]  ;;  %v2507_v3 = vld [vmem:[%s6363_s15 + $0x18] sm:$0xff]  ;;  %v1238_v36 = vld [vmem:[#allocation2 + $0x1d0] sm:$0xff]  ;;  %vm1529_vm11 = vcmp.lt.s32.totalorder %v4435_v35, 126 }
 0x2c9   : > { %v1208_v41 = vsel %vm1204_vm14, %v6366_v25, %v6367_v44  ;;  %v1168_v62 = vadd.f32 %v1164_v45, %v1142_v24  ;;  %v1191_v13 = vmul.f32 %v1187_v4, %v1180_v15  ;;  %v1240_v18 = vmul.f32 %v1236_v53, %v1233_v34  ;;  %v6370_v24 = vld [vmem:[#allocation19_spill] sm:$0xff]  ;;  %v6371_v45 = vld [vmem:[#allocation62_spill] sm:$0xff]  ;;  %v2506_v60 = vld [vmem:[%s6363_s15 + $0x10] sm:$0xff] }
 0x2ca   : > { %v4775_v39 = vpop.permute.xlu0 %1807  ;;  %v4780_v54 = vpop.permute.xlu1 %1787  ;;  %v1259_v57 = vsel %vm1256_vm1, %v6369_v46, %v6368_v23  ;;  %v1169_v0 = vadd.f32 %v1165_v42, %v1143_v48  ;;  %v1218_v19 = vadd.f32 %v1214_v1, %v1192_v5  ;;  %v1257_v61 = vsel %vm1256_vm1, %v6368_v23, %v6369_v46  ;;  %v1239_v1 = vld [vmem:[#allocation2 + $0x1d8] sm:$0xff]  ;;  %v6373_v25 = vld [vmem:[#allocation20_spill] sm:$0xff] }
 0x2cb   : > { %v1234_v14 = vsel %vm1230_vm15, %v6371_v45, %v6370_v24  ;;  %v1241_v26 = vmul.f32 %v1237_v12, %v1231_v58  ;;  %v1217_v42 = vmul.f32 %v1213_v47, %v1206_v63  ;;  %v1232_v4 = vsel %vm1230_vm15, %v6370_v24, %v6371_v45  ;;  %v1288_v58 = vld [vmem:[#allocation2 + $0x200] sm:$0xff]  ;;  %v6372_v47 = vld [vmem:[#allocation63_spill] sm:$0xff]  ;;  %v6375_v63 = vld [vmem:[#allocation64_spill] sm:$0xff] }
 0x2cc   : > { %2515 = vperm.xlu0 %3467, %v2505_v20   ;;  %2510 = vperm.xlu1 %3468, %v2504_v21   ;;  %v1216_v20 = vmul.f32 %v1212_v22, %v1208_v41  ;;  %v1219_v53 = vadd.f32 %v1215_v16, %v1193_v28  ;;  %v1194_v59 = vadd.f32 %v1190_v27, %v1168_v62  ;;  %v1289_v22 = vld [vmem:[#allocation2 + $0x208] sm:$0xff]  ;;  %v1264_v16 = vld [vmem:[#allocation2 + $0x1f0] sm:$0xff]  ;;  %v6374_v27 = vld [vmem:[#allocation21_spill] sm:$0xff]  ;;  %vm1555_vm12 = vcmp.lt.s32.totalorder %v4435_v35, 125 }
 0x2cd   : > { %v1266_v7 = vmul.f32 %v1262_v50, %v1259_v57  ;;  %v1195_v34 = vadd.f32 %v1191_v13, %v1169_v0  ;;  %v1244_v21 = vadd.f32 %v1240_v18, %v1218_v19  ;;  %v1267_v48 = vmul.f32 %v1263_v51, %v1257_v61  ;;  %v1265_v23 = vld [vmem:[#allocation2 + $0x1f8] sm:$0xff]  ;;  %v1314_v0 = vld [vmem:[#allocation2 + $0x220] sm:$0xff]  ;;  %v1315_v19 = vld [vmem:[#allocation2 + $0x228] sm:$0xff] }
 0x2ce   : > { %v4810_v31 = vpop.permute.xlu0 %1811  ;;  %v4819_v15 = vpop.permute.xlu1 %1809  ;;  %v1242_v5 = vmul.f32 %v1238_v36, %v1234_v14  ;;  %v1243_v12 = vmul.f32 %v1239_v1, %v1232_v4  ;;  %v1283_v44 = vsel %vm1282_vm2, %v6373_v25, %v6372_v47  ;;  %v1285_v28 = vsel %vm1282_vm2, %v6372_v47, %v6373_v25  ;;  %v6376_v51 = vld [vmem:[#allocation65_spill] sm:$0xff]  ;;  %v6377_v61 = vld [vmem:[#allocation22_spill] sm:$0xff]  ;;  %v1290_v45 = vld [vmem:[#allocation2 + $0x210] sm:$0xff] }
 0x2cf   : > { %v1260_v41 = vsel %vm1256_vm1, %v6375_v63, %v6374_v27  ;;  %v1245_v13 = vadd.f32 %v1241_v26, %v1219_v53  ;;  %v1220_v18 = vadd.f32 %v1216_v20, %v1194_v59  ;;  %v1221_v50 = vadd.f32 %v1217_v42, %v1195_v34  ;;  %v6378_v14 = vld [vmem:[#allocation23_spill] sm:$0xff]  ;;  %v1291_v4 = vld [vmem:[#allocation2 + $0x218] sm:$0xff] }
 0x2d0   : > { %2525 = vperm.xlu0 %3467, %v2507_v3   ;;  %2520 = vperm.xlu1 %3468, %v2506_v60   ;;  %v1258_v46 = vsel %vm1256_vm1, %v6374_v27, %v6375_v63  ;;  %v1270_v3 = vadd.f32 %v1266_v7, %v1244_v21  ;;  %v1309_v36 = vsel %vm1308_vm3, %v6377_v61, %v6376_v51  ;;  %v6379_v60 = vld [vmem:[#allocation66_spill] sm:$0xff]  ;;  %vm1581_vm13 = vcmp.lt.s32.totalorder %v4435_v35, 115 }
 0x2d1   : > { %v1311_v24 = vsel %vm1308_vm3, %v6376_v51, %v6377_v61  ;;  %v1286_v26 = vsel %vm1282_vm2, %v6379_v60, %v6378_v14  ;;  %v1292_v20 = vmul.f32 %v1288_v58, %v1285_v28  ;;  %v1293_v42 = vmul.f32 %v1289_v22, %v1283_v44  ;;  %v1340_v58 = vld [vmem:[#allocation2 + $0x240] sm:$0xff]  ;;  %v6380_v22 = vld [vmem:[#allocation24_spill] sm:$0xff]  ;;  %v6381_v44 = vld [vmem:[#allocation67_spill] sm:$0xff] }
 0x2d2   : > { %v4835_v62 = vpop.permute.xlu0 %1833  ;;  %v4841_v57 = vpop.permute.xlu1 %1813  ;;  %v1268_v1 = vmul.f32 %v1264_v16, %v1260_v41  ;;  %v1284_v53 = vsel %vm1282_vm2, %v6378_v14, %v6379_v60  ;;  %v1271_v59 = vadd.f32 %v1267_v48, %v1245_v13  ;;  %v1246_v7 = vadd.f32 %v1242_v5, %v1220_v18  ;;  %v1341_v51 = vld [vmem:[#allocation2 + $0x248] sm:$0xff]  ;;  %v1316_v5 = vld [vmem:[#allocation2 + $0x230] sm:$0xff]  ;;  %v6384_v18 = vld [vmem:[#allocation25_spill] sm:$0xff] }
 0x2d3   : > { %v1247_v34 = vadd.f32 %v1243_v12, %v1221_v50  ;;  %v1269_v21 = vmul.f32 %v1265_v23, %v1258_v46  ;;  %v1318_v25 = vmul.f32 %v1314_v0, %v1311_v24  ;;  %v1319_v27 = vmul.f32 %v1315_v19, %v1309_v36  ;;  %v1317_v12 = vld [vmem:[#allocation2 + $0x238] sm:$0xff]  ;;  %v6383_v13 = vld [vmem:[#allocation68_spill] sm:$0xff]  ;;  %v1366_v24 = vld [vmem:[#allocation2 + $0x260] sm:$0xff] }
 0x2d4   : > { %v1294_v63 = vmul.f32 %v1290_v45, %v1286_v26  ;;  %v1337_v28 = vsel %vm1334_vm4, %v6381_v44, %v6380_v22  ;;  %v1295_v41 = vmul.f32 %v1291_v4, %v1284_v53  ;;  %v1335_v48 = vsel %vm1334_vm4, %v6380_v22, %v6381_v44  ;;  %v1367_v45 = vld [vmem:[#allocation2 + $0x268] sm:$0xff]  ;;  %v6385_v14 = vld [vmem:[#allocation69_spill] sm:$0xff]  ;;  %v6386_v60 = vld [vmem:[#allocation26_spill] sm:$0xff] }
 0x2d5   : > { %v1310_v50 = vsel %vm1308_vm3, %v6384_v18, %v6383_v13  ;;  %v1312_v23 = vsel %vm1308_vm3, %v6383_v13, %v6384_v18  ;;  %v1296_v46 = vadd.f32 %v1292_v20, %v1270_v3  ;;  %v1297_v0 = vadd.f32 %v1293_v42, %v1271_v59  ;;  %v6387_v59 = vld [vmem:[#allocation27_spill] sm:$0xff] }
 0x2d6   : > { %v4860_v47 = vpop.permute.xlu0 %1837  ;;  %v4866_v16 = vpop.permute.xlu1 %1835  ;;  %v1272_v19 = vadd.f32 %v1268_v1, %v1246_v7  ;;  %v1273_v61 = vadd.f32 %v1269_v21, %v1247_v34  ;;  %v1344_v36 = vmul.f32 %v1340_v58, %v1337_v28  ;;  %v1361_v26 = vsel %vm1360_vm5, %v6386_v60, %v6385_v14  ;;  %v1342_v1 = vld [vmem:[#allocation2 + $0x250] sm:$0xff]  ;;  %v6388_v7 = vld [vmem:[#allocation70_spill] sm:$0xff] }
 0x2d7   : > { %6382 = vst [vmem:[#allocation10_spill] sm:$0xff] %v4866_v16  ;;  %v1363_v4 = vsel %vm1360_vm5, %v6385_v14, %v6386_v60  ;;  %v1345_v3 = vmul.f32 %v1341_v51, %v1335_v48  ;;  %v1320_v20 = vmul.f32 %v1316_v5, %v1312_v23  ;;  %v1321_v42 = vmul.f32 %v1317_v12, %v1310_v50  ;;  %v1343_v14 = vld [vmem:[#allocation2 + $0x258] sm:$0xff]  ;;  %v1392_v48 = vld [vmem:[#allocation2 + $0x280] sm:$0xff]  ;;  %v6390_v5 = vld [vmem:[#allocation28_spill] sm:$0xff] }
 0x2d8   : > { %v1338_v34 = vsel %vm1334_vm4, %v6388_v7, %v6387_v59  ;;  %v1322_v58 = vadd.f32 %v1318_v25, %v1296_v46  ;;  %v1323_v22 = vadd.f32 %v1319_v27, %v1297_v0  ;;  %v1298_v44 = vadd.f32 %v1294_v63, %v1272_v19  ;;  %v6391_v12 = vld [vmem:[#allocation71_spill] sm:$0xff]  ;;  %v1368_v19 = vld [vmem:[#allocation2 + $0x270] sm:$0xff] }
 0x2d9   : > { %v1299_v28 = vadd.f32 %v1295_v41, %v1273_v61  ;;  %v1370_v13 = vmul.f32 %v1366_v24, %v1363_v4  ;;  %v1371_v18 = vmul.f32 %v1367_v45, %v1361_v26  ;;  %v1336_v51 = vsel %vm1334_vm4, %v6387_v59, %v6388_v7  ;;  %v1393_v25 = vld [vmem:[#allocation2 + $0x288] sm:$0xff]  ;;  %v6392_v61 = vld [vmem:[#allocation29_spill] sm:$0xff]  ;;  %v6393_v24 = vld [vmem:[#allocation72_spill] sm:$0xff] }
 0x2da   : > { %v4889_v53 = vpop.permute.xlu0 %1859  ;;  %v4895_v21 = vpop.permute.xlu1 %1839  ;;  %v1389_v50 = vsel %vm1386_vm6, %v6391_v12, %v6390_v5  ;;  %v1348_v23 = vadd.f32 %v1344_v36, %v1322_v58  ;;  %v1346_v60 = vmul.f32 %v1342_v1, %v1338_v34  ;;  %v1387_v27 = vsel %vm1386_vm6, %v6390_v5, %v6391_v12  ;;  %v1369_v1 = vld [vmem:[#allocation2 + $0x278] sm:$0xff]  ;;  %v1418_v7 = vld [vmem:[#allocation2 + $0x2a0] sm:$0xff]  ;;  %v6397_v5 = vld [vmem:[#allocation31_spill] sm:$0xff] }
 0x2db   : > { %6389 = vst [vmem:[#allocation53_spill] sm:$0xff] %v4895_v21  ;;  %v1349_v41 = vadd.f32 %v1345_v3, %v1323_v22  ;;  %v1324_v46 = vadd.f32 %v1320_v20, %v1298_v44  ;;  %v1325_v0 = vadd.f32 %v1321_v42, %v1299_v28  ;;  %v1364_v36 = vsel %vm1360_vm5, %v6393_v24, %v6392_v61  ;;  %v6395_v3 = vld [vmem:[#allocation30_spill] sm:$0xff]  ;;  %v6396_v20 = vld [vmem:[#allocation73_spill] sm:$0xff]  ;;  %v1419_v44 = vld [vmem:[#allocation2 + $0x2a8] sm:$0xff] }
 0x2dc   : > { %v1347_v26 = vmul.f32 %v1343_v14, %v1336_v51  ;;  %v1396_v4 = vmul.f32 %v1392_v48, %v1389_v50  ;;  %v1362_v59 = vsel %vm1360_vm5, %v6392_v61, %v6393_v24  ;;  %v1415_v42 = vsel %vm1412_vm7, %v6396_v20, %v6395_v3  ;;  %v1394_v48 = vld [vmem:[#allocation2 + $0x290] sm:$0xff]  ;;  %v6398_v12 = vld [vmem:[#allocation74_spill] sm:$0xff] }
 0x2dd   : > { %v1374_v34 = vadd.f32 %v1370_v13, %v1348_v23  ;;  %v1375_v58 = vadd.f32 %v1371_v18, %v1349_v41  ;;  %v1397_v22 = vmul.f32 %v1393_v25, %v1387_v27  ;;  %v1413_v28 = vsel %vm1412_vm7, %v6395_v3, %v6396_v20  ;;  %v1444_v61 = vld [vmem:[#allocation2 + $0x2c0] sm:$0xff]  ;;  %v6399_v24 = vld [vmem:[#allocation32_spill] sm:$0xff]  ;;  %v1395_v27 = vld [vmem:[#allocation2 + $0x298] sm:$0xff] }
 0x2de   : > { %v4910_v63 = vpop.permute.xlu0 %1863  ;;  %v4916_v45 = vpop.permute.xlu1 %1861  ;;  %v1350_v14 = vadd.f32 %v1346_v60, %v1324_v46  ;;  %v1372_v51 = vmul.f32 %v1368_v19, %v1364_v36  ;;  %v1390_v50 = vsel %vm1386_vm6, %v6398_v12, %v6397_v5  ;;  %v1373_v23 = vmul.f32 %v1369_v1, %v1362_v59  ;;  %v1445_v41 = vld [vmem:[#allocation2 + $0x2c8] sm:$0xff]  ;;  %v6403_v1 = vld [vmem:[#allocation34_spill] sm:$0xff]  ;;  %v6404_v59 = vld [vmem:[#allocation77_spill] sm:$0xff] }
 0x2df   : > { %6394 = vst [vmem:[#allocation11_spill] sm:$0xff] %v4916_v45  ;;  %v6400_v45 = vld [vmem:[#allocation75_spill] sm:$0xff]  ;;  %v1422_v25 = vmul.f32 %v1418_v7, %v1415_v42  ;;  %v1388_v60 = vsel %vm1386_vm6, %v6397_v5, %v6398_v12  ;;  %v1351_v36 = vadd.f32 %v1347_v26, %v1325_v0  ;;  %v1400_v3 = vadd.f32 %v1396_v4, %v1374_v34  ;;  %v1420_v0 = vld [vmem:[#allocation2 + $0x2b0] sm:$0xff]  ;;  %v1421_v26 = vld [vmem:[#allocation2 + $0x2b8] sm:$0xff] }
 0x2e0   : > { %v1441_v13 = vsel %vm1438_vm8, %v6400_v45, %v6399_v24  ;;  %v1439_v46 = vsel %vm1438_vm8, %v6399_v24, %v6400_v45  ;;  %v1423_v20 = vmul.f32 %v1419_v44, %v1413_v28  ;;  %v1467_v7 = vsel %vm1464_vm9, %v6404_v59, %v6403_v1  ;;  %v1471_v12 = vld [vmem:[#allocation2 + $0x2e8] sm:$0xff]  ;;  %v6405_v4 = vld [vmem:[#allocation76_spill] sm:$0xff]  ;;  %v6406_v34 = vld [vmem:[#allocation33_spill] sm:$0xff] }
 0x2e1   : > { %v1401_v42 = vadd.f32 %v1397_v22, %v1375_v58  ;;  %v1398_v16 = vmul.f32 %v1394_v48, %v1390_v50  ;;  %v1448_v5 = vmul.f32 %v1444_v61, %v1441_v13  ;;  %v1465_v45 = vsel %vm1464_vm9, %v6403_v1, %v6404_v59  ;;  %v6409_v1 = vld [vmem:[#allocation78_spill] sm:$0xff]  ;;  %v6410_v59 = vld [vmem:[#allocation35_spill] sm:$0xff] }
 0x2e2   : > { %v4938_v18 = vpop.permute.xlu0 %1885  ;;  %v4948_v19 = vpop.permute.xlu1 %1865  ;;  %v1399_v24 = vmul.f32 %v1395_v27, %v1388_v60  ;;  %v1414_v44 = vsel %vm1412_vm7, %v6406_v34, %v6405_v4  ;;  %v1416_v58 = vsel %vm1412_vm7, %v6405_v4, %v6406_v34  ;;  %v1376_v28 = vadd.f32 %v1372_v51, %v1350_v14 }
 0x2e3   : > { %6401 = vst [vmem:[#allocation54_spill] sm:$0xff] %v4938_v18  ;;  %6402 = vst [vmem:[#allocation55_spill] sm:$0xff] %v4948_v19  ;;  %v1470_v18 = vld [vmem:[#allocation2 + $0x2e0] sm:$0xff]  ;;  %v1449_v19 = vmul.f32 %v1445_v41, %v1439_v46  ;;  %v1377_v48 = vadd.f32 %v1373_v23, %v1351_v36  ;;  %v1426_v50 = vadd.f32 %v1422_v25, %v1400_v3  ;;  %v1446_v41 = vld [vmem:[#allocation2 + $0x2d0] sm:$0xff]  ;;  %vm1607_vm14 = vcmp.lt.s32.totalorder %v4435_v35, 114 }
 0x2e4   : > { %v1474_v61 = vmul.f32 %v1470_v18, %v1467_v7  ;;  %v1427_v27 = vadd.f32 %v1423_v20, %v1401_v42  ;;  %v1475_v60 = vmul.f32 %v1471_v12, %v1465_v45  ;;  %v1447_v46 = vld [vmem:[#allocation2 + $0x2d8] sm:$0xff]  ;;  %v1440_v21 = vsel %vm1438_vm8, %v6410_v59, %v6409_v1  ;;  %v1483_v18 = vld [vmem:[#allocation2 + $0x300] sm:$0xff]  ;;  %v1472_v20 = vld [vmem:[#allocation2 + $0x2f0] sm:$0xff] }
 0x2e5   : > { %v1442_v4 = vsel %vm1438_vm8, %v6409_v1, %v6410_v59  ;;  %v1452_v14 = vadd.f32 %v1448_v5, %v1426_v50  ;;  %v1424_v51 = vmul.f32 %v1420_v0, %v1416_v58  ;;  %v1425_v23 = vmul.f32 %v1421_v26, %v1414_v44  ;;  %v6411_v7 = vld [vmem:[#allocation37_spill] sm:$0xff]  ;;  %v6412_v42 = vld [vmem:[#allocation80_spill] sm:$0xff]  ;;  %v1484_v5 = vld [vmem:[#allocation2 + $0x308] sm:$0xff] }
 0x2e6   : > { %v4966_v22 = vpop.permute.xlu0 %1889  ;;  %v4968_v13 = vpop.permute.xlu1 %1887  ;;  %v1402_v25 = vadd.f32 %v1398_v16, %v1376_v28  ;;  %v1403_v36 = vadd.f32 %v1399_v24, %v1377_v48  ;;  %v1453_v3 = vadd.f32 %v1449_v19, %v1427_v27  ;;  %v1468_v12 = vsel %vm1464_vm9, %v6412_v42, %v6411_v7  ;;  %v1473_v0 = vld [vmem:[#allocation2 + $0x2f8] sm:$0xff]  ;;  %v1485_v44 = vld [vmem:[#allocation2 + $0x310] sm:$0xff]  ;;  %v1509_v48 = vld [vmem:[#allocation2 + $0x320] sm:$0xff] }
 0x2e7   : > { %6407 = vst [vmem:[#allocation12_spill] sm:$0xff] %v4966_v22  ;;  %6408 = vst [vmem:[#allocation13_spill] sm:$0xff] %v4968_v13  ;;  %v1478_v34 = vadd.f32 %v1474_v61, %v1452_v14  ;;  %v1450_v13 = vmul.f32 %v1446_v41, %v1442_v4  ;;  %v1451_v1 = vmul.f32 %v1447_v46, %v1440_v21  ;;  %v1510_v50 = vld [vmem:[#allocation2 + $0x328] sm:$0xff]  ;;  %v6416_v27 = vld [vmem:[#allocation36_spill] sm:$0xff]  ;;  %vm1633_vm15 = vcmp.lt.s32.totalorder %v4435_v35, 113 }
 0x2e8   : > { %v1466_v16 = vsel %vm1464_vm9, %v6411_v7, %v6412_v42  ;;  %v1479_v19 = vadd.f32 %v1475_v60, %v1453_v3  ;;  %v1487_v26 = vmul.f32 %v1483_v18, %v3858_v38  ;;  %v1428_v58 = vadd.f32 %v1424_v51, %v1402_v25  ;;  %v6415_v61 = vld [vmem:[#allocation79_spill] sm:$0xff]  ;;  %v1486_v46 = vld [vmem:[#allocation2 + $0x318] sm:$0xff]  ;;  %v2320_v51 = vld [vmem:[%s6009_s10 + $0x80] sm:$0xff] }
 0x2e9   : > { %v1429_v28 = vadd.f32 %v1425_v23, %v1403_v36  ;;  %v1504_v21 = vsel %vm1503_vm10, %v6416_v27, %v6415_v61  ;;  %v1476_v41 = vmul.f32 %v1472_v20, %v1468_v12  ;;  %v1488_v59 = vmul.f32 %v1484_v5, %v4016_v6  ;;  %v2321_v23 = vld [vmem:[%s6009_s10 + $0x88] sm:$0xff]  ;;  %v2304_v18 = vld [vmem:[%s6009_s10] sm:$0xff]  ;;  %v2322_v12 = vld [vmem:[%s6009_s10 + $0x90] sm:$0xff] }
 0x2ea   : > { %v4983_v45 = vpop.permute.xlu0 %1911  ;;  %v4989_v24 = vpop.permute.xlu1 %1891  ;;  %v1506_v60 = vsel %vm1503_vm10, %v6415_v61, %v6416_v27  ;;  %v1477_v4 = vmul.f32 %v1473_v0, %v1466_v16  ;;  %v1454_v25 = vadd.f32 %v1450_v13, %v1428_v58  ;;  %v1491_v3 = vadd.f32 %v1487_v26, %v1478_v34  ;;  %v2305_v42 = vld [vmem:[%s6009_s10 + $0x8] sm:$0xff]  ;;  %v2323_v5 = vld [vmem:[%s6009_s10 + $0x98] sm:$0xff]  ;;  %v2306_v16 = vld [vmem:[%s6009_s10 + $0x10] sm:$0xff] }
 0x2eb   : > { %6413 = vst [vmem:[#allocation56_spill] sm:$0xff] %v4983_v45  ;;  %6414 = vst [vmem:[#allocation14_spill] sm:$0xff] %v4989_v24  ;;  %v1455_v36 = vadd.f32 %v1451_v1, %v1429_v28  ;;  %v1489_v20 = vmul.f32 %v1485_v44, %v3868_v43  ;;  %v1492_v0 = vadd.f32 %v1488_v59, %v1479_v19  ;;  %v2307_v26 = vld [vmem:[%s6009_s10 + $0x18] sm:$0xff]  ;;  %v1535_v28 = vld [vmem:[#allocation2 + $0x340] sm:$0xff]  ;;  %vm1659_vm1 = vcmp.lt.s32.totalorder %v4435_v35, 112 }
 0x2ec   : > { %v1513_v13 = vmul.f32 %v1509_v48, %v1504_v21  ;;  %v3349_v1 = vpack.c.bf16 %v2321_v23, %v2320_v51  ;;  %v3351_v34 = vpack.c.bf16 %v2305_v42, %v2304_v18  ;;  %v1514_v44 = vmul.f32 %v1510_v50, %v1506_v60  ;;  %v6419_v61 = vld [vmem:[#allocation81_spill] sm:$0xff]  ;;  %v6420_v27 = vld [vmem:[#allocation38_spill] sm:$0xff]  ;;  %v2325_v21 = vld [vmem:[%s6009_s10 + $0xa8] sm:$0xff] }
 0x2ed   : > { %v1480_v58 = vadd.f32 %v1476_v41, %v1454_v25  ;;  %v1530_v43 = vsel %vm1529_vm11, %v6420_v27, %v6419_v61  ;;  %v3353_v19 = vpack.c.bf16 %v2323_v5, %v2322_v12  ;;  %v2324_v48 = vld [vmem:[%s6009_s10 + $0xa0] sm:$0xff]  ;;  %v1481_v59 = vadd.f32 %v1477_v4, %v1455_v36  ;;  %v1536_v51 = vld [vmem:[#allocation2 + $0x348] sm:$0xff]  ;;  %v1511_v23 = vld [vmem:[#allocation2 + $0x330] sm:$0xff] }
 0x2ee   : > { %v5002_v14 = vpop.permute.xlu0 %1915  ;;  %v5014_v7 = vpop.permute.xlu1 %1913  ;;  %v1532_v50 = vsel %vm1529_vm11, %v6419_v61, %v6420_v27  ;;  %v1490_v41 = vmul.f32 %v1486_v46, %v4028_v10  ;;  %3350 = vmatprep.subr.bf16.mxu0 %v3349_v1  ;;  %v6422_v18 = vld [vmem:[#allocation82_spill] sm:$0xff]  ;;  %v6423_v25 = vld [vmem:[#allocation39_spill] sm:$0xff]  ;;  %v3355_v36 = vpack.c.bf16 %v2307_v26, %v2306_v16  ;;  %v1539_v46 = vmul.f32 %v1535_v28, %v1530_v43  ;;  %v1512_v12 = vld [vmem:[#allocation2 + $0x338] sm:$0xff] }
 0x2ef   : > { %6417 = vst [vmem:[#allocation57_spill] sm:$0xff] %v5002_v14  ;;  %6418 = vst [vmem:[#allocation15_spill] sm:$0xff] %v5014_v7  ;;  %v1505_v42 = vsel %vm1503_vm10, %v6423_v25, %v6422_v18  ;;  %3352 = vmatpush3.bf16.msra.mxu0 %v3351_v34  ;;  %v1507_v5 = vsel %vm1503_vm10, %v6422_v18, %v6423_v25  ;;  %v3357_v1 = vpack.c.bf16 %v2325_v21, %v2324_v48  ;;  %v2308_v61 = vld [vmem:[%s6009_s10 + $0x20] sm:$0xff]  ;;  %v2309_v34 = vld [vmem:[%s6009_s10 + $0x28] sm:$0xff] }
 0x2f0   : > { %3354 = vmatprep.subr.bf16.mxu0 %v3353_v19  ;;  %v1517_v16 = vadd.f32 %v1513_v13, %v1491_v3  ;;  %v1518_v43 = vadd.f32 %v1514_v44, %v1492_v0  ;;  %v1540_v26 = vmul.f32 %v1536_v51, %v1532_v50  ;;  %v1493_v28 = vadd.f32 %v1489_v20, %v1480_v58  ;;  %v1561_v27 = vld [vmem:[#allocation2 + $0x360] sm:$0xff]  ;;  %v2326_v18 = vld [vmem:[%s6009_s10 + $0xb0] sm:$0xff]  ;;  %v2327_v19 = vld [vmem:[%s6009_s10 + $0xb8] sm:$0xff] }
 0x2f1   : > { %v1494_v48 = vadd.f32 %v1490_v41, %v1481_v59  ;;  %v1515_v21 = vmul.f32 %v1511_v23, %v1505_v42  ;;  %v1562_v25 = vld [vmem:[#allocation2 + $0x368] sm:$0xff]  ;;  %v6426_v6 = vld [vmem:[#allocation40_spill] sm:$0xff]  ;;  %v2656_v44 = vld [vmem:[%s6017_s18] sm:$0xff]  ;;  %v1516_v58 = vmul.f32 %v1512_v12, %v1507_v5  ;;  %v3359_v38 = vpack.c.bf16 %v2309_v34, %v2308_v61 }
 0x2f2   : > { %v5047_v60 = vpop.permute.xlu0 %1937  ;;  %v5055_v4 = vpop.permute.xlu1 %1917  ;;  %v6425_v10 = vld [vmem:[#allocation83_spill] sm:$0xff]  ;;  %v1537_v59 = vld [vmem:[#allocation2 + $0x350] sm:$0xff]  ;;  %v1538_v51 = vld [vmem:[#allocation2 + $0x358] sm:$0xff]  ;;  %v1543_v7 = vadd.f32 %v1539_v46, %v1517_v16  ;;  %v1544_v46 = vadd.f32 %v1540_v26, %v1518_v43  ;;  %2660 = vrot.lane.b32.xlu1 %v2656_v44, %s3635_s9  ;;  %vm1685_vm5 = vcmp.lt.s32.totalorder %v4435_v35, 111  ;;  %vm1711_vm6 = vcmp.lt.s32.totalorder %v4435_v35, 110 }
 0x2f3   : > { %6421 = vst [vmem:[#allocation58_spill] sm:$0xff] %v5047_v60  ;;  %6424 = vst [vmem:[#allocation16_spill] sm:$0xff] %v5055_v4  ;;  %v1556_v3 = vsel %vm1555_vm12, %v6426_v6, %v6425_v10  ;;  %v1558_v20 = vsel %vm1555_vm12, %v6425_v10, %v6426_v6  ;;  %v2657_v13 = vld [vmem:[%s6017_s18 + $0x8] sm:$0xff]  ;;  %v6428_v50 = vld [vmem:[#allocation84_spill] sm:$0xff]  ;;  %3356 = vmatpush3.bf16.msra.mxu0 %v3355_v36  ;;  %vm1737_vm7 = vcmp.lt.s32.totalorder %v4435_v35, 109  ;;  %vm1763_vm8 = vcmp.lt.s32.totalorder %v4435_v35, 99 }
 0x2f4   : > { %v6429_v41 = vld [vmem:[#allocation41_spill] sm:$0xff]  ;;  %v1587_v10 = vld [vmem:[#allocation2 + $0x380] sm:$0xff]  ;;  %v1588_v4 = vld [vmem:[#allocation2 + $0x388] sm:$0xff]  ;;  %3358 = vmatprep.subr.bf16.mxu0 %v3357_v1  ;;  %2662 = vrot.lane.b32.xlu0 %v2657_v13, %s3635_s9  ;;  %v1565_v61 = vmul.f32 %v1561_v27, %v1556_v3  ;;  %v1566_v34 = vmul.f32 %v1562_v25, %v1558_v20 }
 0x2f5   : > { %v1531_v23 = vsel %vm1529_vm11, %v6429_v41, %v6428_v50  ;;  %v1533_v6 = vsel %vm1529_vm11, %v6428_v50, %v6429_v41  ;;  %v6431_v12 = vld [vmem:[#allocation85_spill] sm:$0xff]  ;;  %v6432_v5 = vld [vmem:[#allocation42_spill] sm:$0xff]  ;;  %v2310_v50 = vld [vmem:[%s6009_s10 + $0x30] sm:$0xff]  ;;  %vm1789_vm11 = vcmp.lt.s32.totalorder %v4435_v35, 98 }
 0x2f6   : > { %v5082_v0 = vpop.permute.xlu0 %1941  ;;  %v5098_v42 = vpop.permute.xlu1 %1939  ;;  %v1582_v60 = vsel %vm1581_vm13, %v6432_v5, %v6431_v12  ;;  %v2311_v36 = vld [vmem:[%s6009_s10 + $0x38] sm:$0xff]  ;;  %v1584_v1 = vsel %vm1581_vm13, %v6431_v12, %v6432_v5  ;;  %v2328_v16 = vld [vmem:[%s6009_s10 + $0xc0] sm:$0xff]  ;;  %v2669_v43 = vld [vmem:[%s6018_s19 + $0x8] sm:$0xff]  ;;  %v1541_v26 = vmul.f32 %v1537_v59, %v1531_v23  ;;  %v1542_v27 = vmul.f32 %v1538_v51, %v1533_v6 }
 0x2f7   : > { %6427 = vst [vmem:[#allocation59_spill] sm:$0xff] %v5082_v0  ;;  %6430 = vst [vmem:[#allocation60_spill] sm:$0xff] %v5098_v42  ;;  %v3361_v0 = vpack.c.bf16 %v2327_v19, %v2326_v18  ;;  %v2329_v18 = vld [vmem:[%s6009_s10 + $0xc8] sm:$0xff]  ;;  %v1563_v19 = vld [vmem:[#allocation2 + $0x370] sm:$0xff]  ;;  %v1519_v59 = vadd.f32 %v1515_v21, %v1493_v28  ;;  %v1520_v51 = vadd.f32 %v1516_v58, %v1494_v48  ;;  %3360 = vmatpush3.bf16.msra.mxu0 %v3359_v38 }
 0x2f8   : > { %v1564_v25 = vld [vmem:[#allocation2 + $0x378] sm:$0xff]  ;;  %v6433_v3 = vld [vmem:[#allocation86_spill] sm:$0xff]  ;;  %v6434_v20 = vld [vmem:[#allocation43_spill] sm:$0xff]  ;;  %v1591_v23 = vmul.f32 %v1587_v10, %v1582_v60  ;;  %v3363_v42 = vpack.c.bf16 %v2311_v36, %v2310_v50  ;;  %v1592_v24 = vmul.f32 %v1588_v4, %v1584_v1  ;;  %2674 = vrot.lane.b32.xlu0 %v2669_v43, %s3635_s9  ;;  %v1569_v1 = vadd.f32 %v1565_v61, %v1543_v7 }
 0x2f9   : > { %v1557_v13 = vsel %vm1555_vm12, %v6434_v20, %v6433_v3  ;;  %v1559_v41 = vsel %vm1555_vm12, %v6433_v3, %v6434_v20  ;;  %v2668_v44 = vld [vmem:[%s6018_s19] sm:$0xff]  ;;  %v1614_v45 = vld [vmem:[#allocation2 + $0x3a8] sm:$0xff]  ;;  %v6437_v22 = vld [vmem:[#allocation44_spill] sm:$0xff]  ;;  %3362 = vmatprep.subr.bf16.mxu0 %v3361_v0  ;;  %v3365_v20 = vpack.c.bf16 %v2329_v18, %v2328_v16  ;;  %v1570_v16 = vadd.f32 %v1566_v34, %v1544_v46 }
 0x2fa   : > { %v5134_v12 = vpop.permute.xlu0 %1963  ;;  %v1613_v6 = vld [vmem:[#allocation2 + $0x3a0] sm:$0xff]  ;;  %v5139_v5 = vpop.permute.xlu1 %1943  ;;  %v6436_v14 = vld [vmem:[#allocation87_spill] sm:$0xff]  ;;  %v1567_v4 = vmul.f32 %v1563_v19, %v1557_v13  ;;  %v1568_v28 = vmul.f32 %v1564_v25, %v1559_v41  ;;  %v1589_v21 = vld [vmem:[#allocation2 + $0x390] sm:$0xff]  ;;  %2672 = vrot.lane.b32.xlu1 %v2668_v44, %s3635_s9  ;;  %v1545_v18 = vadd.f32 %v1541_v26, %v1519_v59  ;;  %vm1815_vm12 = vcmp.lt.s32.totalorder %v4435_v35, 97 }
 0x2fb   : > { %6435 = vst [vmem:[#allocation17_spill] sm:$0xff] %v5139_v5  ;;  %v1608_v3 = vsel %vm1607_vm14, %v6437_v22, %v6436_v14  ;;  %v2312_v60 = vld [vmem:[%s6009_s10 + $0x40] sm:$0xff]  ;;  %v2313_v38 = vld [vmem:[%s6009_s10 + $0x48] sm:$0xff]  ;;  %v1610_v48 = vsel %vm1607_vm14, %v6436_v14, %v6437_v22  ;;  %v6438_v0 = vld [vmem:[#allocation88_spill] sm:$0xff]  ;;  %v1546_v22 = vadd.f32 %v1542_v27, %v1520_v51  ;;  %3364 = vmatpush3.bf16.msra.mxu0 %v3363_v42 }
 0x2fc   : > { %v6439_v58 = vld [vmem:[#allocation45_spill] sm:$0xff]  ;;  %v2330_v50 = vld [vmem:[%s6009_s10 + $0xd0] sm:$0xff]  ;;  %v1617_v43 = vmul.f32 %v1613_v6, %v1608_v3  ;;  %v1639_v13 = vld [vmem:[#allocation2 + $0x3c0] sm:$0xff]  ;;  %v3367_v61 = vpack.c.bf16 %v2313_v38, %v2312_v60  ;;  %v1618_v34 = vmul.f32 %v1614_v45, %v1610_v48  ;;  %3366 = vmatprep.subr.bf16.mxu0 %v3365_v20  ;;  %v1595_v42 = vadd.f32 %v1591_v23, %v1569_v1 }
 0x2fd   : > { %v1583_v10 = vsel %vm1581_vm13, %v6439_v58, %v6438_v0  ;;  %v2331_v36 = vld [vmem:[%s6009_s10 + $0xd8] sm:$0xff]  ;;  %v1585_v25 = vsel %vm1581_vm13, %v6438_v0, %v6439_v58  ;;  %v6441_v5 = vld [vmem:[#allocation46_spill] sm:$0xff]  ;;  %v1640_v27 = vld [vmem:[#allocation2 + $0x3c8] sm:$0xff]  ;;  %v1596_v3 = vadd.f32 %v1592_v24, %v1570_v16  ;;  %v1571_v45 = vadd.f32 %v1567_v4, %v1545_v18 }
 0x2fe   : > { %v5169_v14 = vpop.permute.xlu0 %1967  ;;  %v1590_v19 = vld [vmem:[#allocation2 + $0x398] sm:$0xff]  ;;  %v5179_v46 = vpop.permute.xlu1 %1965  ;;  %v1593_v26 = vmul.f32 %v1589_v21, %v1583_v10  ;;  %v3369_v59 = vpack.c.bf16 %v2331_v36, %v2330_v50  ;;  %v2314_v51 = vld [vmem:[%s6009_s10 + $0x50] sm:$0xff]  ;;  %v1572_v60 = vadd.f32 %v1568_v28, %v1546_v22  ;;  %v2333_v20 = vld [vmem:[%s6009_s10 + $0xe8] sm:$0xff]  ;;  %vm1841_vm13 = vcmp.lt.s32.totalorder %v4435_v35, 96 }
 0x2ff   : > { %v6440_v41 = vld [vmem:[#allocation89_spill] sm:$0xff]  ;;  %6442 = vst [vmem:[#allocation18_spill] sm:$0xff] %v5179_v46  ;;  %v1594_v38 = vmul.f32 %v1590_v19, %v1585_v25  ;;  %v1615_v21 = vld [vmem:[#allocation2 + $0x3b0] sm:$0xff]  ;;  %v6443_v58 = vld [vmem:[#allocation90_spill] sm:$0xff]  ;;  %3368 = vmatpush3.bf16.msra.mxu0 %v3367_v61 }
 0x300   : > { %v1634_v7 = vsel %vm1633_vm15, %v6441_v5, %v6440_v41  ;;  %v1636_v44 = vsel %vm1633_vm15, %v6440_v41, %v6441_v5  ;;  %v2315_v6 = vld [vmem:[%s6009_s10 + $0x58] sm:$0xff]  ;;  %v2332_v5 = vld [vmem:[%s6009_s10 + $0xe0] sm:$0xff]  ;;  %v6444_v10 = vld [vmem:[#allocation47_spill] sm:$0xff]  ;;  %v1622_v41 = vadd.f32 %v1618_v34, %v1596_v3  ;;  %3370 = vmatprep.subr.bf16.mxu0 %v3369_v59 }
 0x301   : > { %v1643_v48 = vmul.f32 %v1639_v13, %v1634_v7  ;;  %v1616_v0 = vld [vmem:[#allocation2 + $0x3b8] sm:$0xff]  ;;  %v1609_v24 = vsel %vm1607_vm14, %v6444_v10, %v6443_v58  ;;  %v1611_v23 = vsel %vm1607_vm14, %v6443_v58, %v6444_v10  ;;  %v1644_v28 = vmul.f32 %v1640_v27, %v1636_v44  ;;  %v1665_v50 = vld [vmem:[#allocation2 + $0x3e0] sm:$0xff]  ;;  %v1666_v36 = vld [vmem:[#allocation2 + $0x3e8] sm:$0xff] }
 0x302   : > { %v5206_v4 = vpop.permute.xlu0 %1989  ;;  %v6446_v1 = vld [vmem:[#allocation91_spill] sm:$0xff]  ;;  %v6447_v16 = vld [vmem:[#allocation48_spill] sm:$0xff]  ;;  %v5216_v19 = vpop.permute.xlu1 %1969  ;;  %v3371_v25 = vpack.c.bf16 %v2315_v6, %v2314_v51  ;;  %v1621_v13 = vadd.f32 %v1617_v43, %v1595_v42  ;;  %v1597_v7 = vadd.f32 %v1593_v26, %v1571_v45  ;;  %v3373_v27 = vpack.c.bf16 %v2333_v20, %v2332_v5  ;;  %v2316_v44 = vld [vmem:[%s6009_s10 + $0x60] sm:$0xff] }
 0x303   : > { %6445 = vst [vmem:[#allocation61_spill] sm:$0xff] %v5206_v4  ;;  %v1660_v18 = vsel %vm1659_vm1, %v6447_v16, %v6446_v1  ;;  %v1662_v22 = vsel %vm1659_vm1, %v6446_v1, %v6447_v16  ;;  %6448 = vst [vmem:[#allocation19_spill] sm:$0xff] %v5216_v19  ;;  %v2317_v58 = vld [vmem:[%s6009_s10 + $0x68] sm:$0xff]  ;;  %v1619_v10 = vmul.f32 %v1615_v21, %v1609_v24  ;;  %v1641_v16 = vld [vmem:[#allocation2 + $0x3d0] sm:$0xff]  ;;  %vm1867_vm14 = vcmp.lt.s32.totalorder %v4435_v35, 95 }
 0x304   : > { %v1620_v1 = vmul.f32 %v1616_v0, %v1611_v23  ;;  %v1642_v61 = vld [vmem:[#allocation2 + $0x3d8] sm:$0xff]  ;;  %v6449_v51 = vld [vmem:[#allocation92_spill] sm:$0xff]  ;;  %v1669_v59 = vmul.f32 %v1665_v50, %v1660_v18  ;;  %v1670_v6 = vmul.f32 %v1666_v36, %v1662_v22  ;;  %v1691_v42 = vld [vmem:[#allocation2 + $0x400] sm:$0xff]  ;;  %v1598_v0 = vadd.f32 %v1594_v38, %v1572_v60  ;;  %3372 = vmatpush3.bf16.msra.mxu0 %v3371_v25 }
 0x305   : > { %v6450_v43 = vld [vmem:[#allocation49_spill] sm:$0xff]  ;;  %v1692_v3 = vld [vmem:[#allocation2 + $0x408] sm:$0xff]  ;;  %v6452_v5 = vld [vmem:[#allocation50_spill] sm:$0xff]  ;;  %v1647_v24 = vadd.f32 %v1643_v48, %v1621_v13  ;;  %v1648_v23 = vadd.f32 %v1644_v28, %v1622_v41  ;;  %v3375_v36 = vpack.c.bf16 %v2317_v58, %v2316_v44  ;;  %3374 = vmatprep.subr.bf16.mxu0 %v3373_v27  ;;  %v1623_v58 = vadd.f32 %v1619_v10, %v1597_v7 }
 0x306   : > { %v1635_v34 = vsel %vm1633_vm15, %v6450_v43, %v6449_v51  ;;  %v1637_v26 = vsel %vm1633_vm15, %v6449_v51, %v6450_v43  ;;  %v6451_v45 = vld [vmem:[#allocation93_spill] sm:$0xff]  ;;  %v5242_v51 = vpop.permute.xlu0 %1993  ;;  %v5244_v50 = vpop.permute.xlu1 %1991  ;;  %v1667_v43 = vld [vmem:[#allocation2 + $0x3f0] sm:$0xff]  ;;  %v6453_v19 = vld [vmem:[#allocation94_spill] sm:$0xff] }
 0x307   : > { %v1686_v20 = vsel %vm1685_vm5, %v6452_v5, %v6451_v45  ;;  %v1688_v21 = vsel %vm1685_vm5, %v6451_v45, %v6452_v5  ;;  %v1645_v18 = vmul.f32 %v1641_v16, %v1635_v34  ;;  %v1646_v22 = vmul.f32 %v1642_v61, %v1637_v26  ;;  %v1668_v46 = vld [vmem:[#allocation2 + $0x3f8] sm:$0xff]  ;;  %v6454_v4 = vld [vmem:[#allocation51_spill] sm:$0xff]  ;;  %v1717_v28 = vld [vmem:[#allocation2 + $0x420] sm:$0xff] }
 0x308   : > { %v1661_v45 = vsel %vm1659_vm1, %v6454_v4, %v6453_v19  ;;  %v1663_v60 = vsel %vm1659_vm1, %v6453_v19, %v6454_v4  ;;  %v1695_v38 = vmul.f32 %v1691_v42, %v1686_v20  ;;  %v1696_v48 = vmul.f32 %v1692_v3, %v1688_v21  ;;  %v1718_v25 = vld [vmem:[#allocation2 + $0x428] sm:$0xff]  ;;  %v1693_v27 = vld [vmem:[#allocation2 + $0x410] sm:$0xff]  ;;  %v1694_v26 = vld [vmem:[#allocation2 + $0x418] sm:$0xff]  ;;  %3376 = vmatpush3.bf16.msra.mxu0 %v3375_v36 }
 0x309   : > { %v6455_v13 = vld [vmem:[#allocation95_spill] sm:$0xff]  ;;  %v1624_v16 = vadd.f32 %v1620_v1, %v1598_v0  ;;  %v1673_v61 = vadd.f32 %v1669_v59, %v1647_v24  ;;  %v1674_v34 = vadd.f32 %v1670_v6, %v1648_v23  ;;  %v1671_v4 = vmul.f32 %v1667_v43, %v1661_v45  ;;  %v6456_v42 = vld [vmem:[#allocation52_spill] sm:$0xff]  ;;  %v1743_v1 = vld [vmem:[#allocation2 + $0x440] sm:$0xff] }
 0x30a   : > { %v1712_v41 = vsel %vm1711_vm6, %v6455_v13, %v4557_v30  ;;  %v1714_v44 = vsel %vm1711_vm6, %v4557_v30, %v6455_v13  ;;  %v1672_v19 = vmul.f32 %v1668_v46, %v1663_v60  ;;  %v1687_v3 = vsel %vm1685_vm5, %v6456_v42, %v4531_v8  ;;  %v1744_v59 = vld [vmem:[#allocation2 + $0x448] sm:$0xff]  ;;  %v5279_v5 = vpop.permute.xlu1 %1995  ;;  %v5282_v24 = vpop.permute.xlu0 %2015  ;;  %v1719_v43 = vld [vmem:[#allocation2 + $0x430] sm:$0xff]  ;;  %v1720_v45 = vld [vmem:[#allocation2 + $0x438] sm:$0xff] }
 0x30b   : > { %v1689_v30 = vsel %vm1685_vm5, %v4531_v8, %v6456_v42  ;;  %v1721_v7 = vmul.f32 %v1717_v28, %v1712_v41  ;;  %v1722_v10 = vmul.f32 %v1718_v25, %v1714_v44  ;;  %v1738_v46 = vsel %vm1737_vm7, %v4580_v2, %v4615_v37 }
 0x30c   : > { %v1740_v6 = vsel %vm1737_vm7, %v4615_v37, %v4580_v2  ;;  %v1649_v20 = vadd.f32 %v1645_v18, %v1623_v58  ;;  %v1650_v21 = vadd.f32 %v1646_v22, %v1624_v16  ;;  %v1699_v8 = vadd.f32 %v1695_v38, %v1673_v61  ;;  %v1769_v22 = vld [vmem:[#allocation2 + $0x460] sm:$0xff]  ;;  %v1770_v38 = vld [vmem:[#allocation2 + $0x468] sm:$0xff]  ;;  %v1745_v58 = vld [vmem:[#allocation2 + $0x450] sm:$0xff] }
 0x30d   : > { %v1700_v0 = vadd.f32 %v1696_v48, %v1674_v34  ;;  %v1697_v23 = vmul.f32 %v1693_v27, %v1687_v3  ;;  %v1698_v36 = vmul.f32 %v1694_v26, %v1689_v30  ;;  %v1713_v60 = vsel %vm1711_vm6, %v4559_v29, %v4594_v56  ;;  %v1746_v16 = vld [vmem:[#allocation2 + $0x458] sm:$0xff] }
 0x30e   : > { %v1715_v2 = vsel %vm1711_vm6, %v4594_v56, %v4559_v29  ;;  %v1747_v37 = vmul.f32 %v1743_v1, %v1738_v46  ;;  %v1748_v18 = vmul.f32 %v1744_v59, %v1740_v6  ;;  %v1764_v48 = vsel %vm1763_vm8, %v4647_v55, %v4677_v33  ;;  %v5317_v42 = vpop.permute.xlu1 %2017  ;;  %v1771_v59 = vld [vmem:[#allocation2 + $0x470] sm:$0xff]  ;;  %v1772_v46 = vld [vmem:[#allocation2 + $0x478] sm:$0xff] }
 0x30f   : > { %v1766_v28 = vsel %vm1763_vm8, %v4677_v33, %v4647_v55  ;;  %v1675_v25 = vadd.f32 %v1671_v4, %v1649_v20  ;;  %v1676_v13 = vadd.f32 %v1672_v19, %v1650_v21  ;;  %v1725_v41 = vadd.f32 %v1721_v7, %v1699_v8  ;;  %v1795_v4 = vld [vmem:[#allocation2 + $0x480] sm:$0xff]  ;;  %v1796_v19 = vld [vmem:[#allocation2 + $0x488] sm:$0xff] }
 0x310   : > { %v1726_v44 = vadd.f32 %v1722_v10, %v1700_v0  ;;  %v1723_v29 = vmul.f32 %v1719_v43, %v1713_v60  ;;  %v1724_v56 = vmul.f32 %v1720_v45, %v1715_v2  ;;  %v1739_v61 = vsel %vm1737_vm7, %v4621_v17, %v4653_v49  ;;  %v1821_v21 = vld [vmem:[#allocation2 + $0x4a0] sm:$0xff]  ;;  %v1822_v8 = vld [vmem:[#allocation2 + $0x4a8] sm:$0xff]  ;;  %v1797_v2 = vld [vmem:[#allocation2 + $0x490] sm:$0xff] }
 0x311   : > { %v1741_v55 = vsel %vm1737_vm7, %v4653_v49, %v4621_v17  ;;  %v1773_v33 = vmul.f32 %v1769_v22, %v1764_v48  ;;  %v1774_v34 = vmul.f32 %v1770_v38, %v1766_v28  ;;  %v1790_v27 = vsel %vm1789_vm11, %v4713_v9, %v4739_v40  ;;  %v5320_v49 = vpop.permute.xlu0 %2019  ;;  %v1847_v38 = vld [vmem:[#allocation2 + $0x4c0] sm:$0xff]  ;;  %v1848_v48 = vld [vmem:[#allocation2 + $0x4c8] sm:$0xff] }
 0x312   : > { %v1792_v26 = vsel %vm1789_vm11, %v4739_v40, %v4713_v9  ;;  %v1701_v3 = vadd.f32 %v1697_v23, %v1675_v25  ;;  %v1702_v30 = vadd.f32 %v1698_v36, %v1676_v13  ;;  %v1751_v7 = vadd.f32 %v1747_v37, %v1725_v41  ;;  %v1798_v37 = vld [vmem:[#allocation2 + $0x498] sm:$0xff]  ;;  %v5355_v13 = vpop.permute.xlu1 %2021 }
 0x313   : > { %v1752_v17 = vadd.f32 %v1748_v18, %v1726_v44  ;;  %vm1893_vm6 = vcmp.lt.s32.totalorder %v4435_v35, 94  ;;  %v1749_v10 = vmul.f32 %v1745_v58, %v1739_v61  ;;  %v1750_v1 = vmul.f32 %v1746_v16, %v1741_v55  ;;  %v1823_v16 = vld [vmem:[#allocation2 + $0x4b0] sm:$0xff]  ;;  %v1824_v61 = vld [vmem:[#allocation2 + $0x4b8] sm:$0xff] }
 0x314   : > { %v1765_v6 = vsel %vm1763_vm8, %v4691_v52, %v4722_v11  ;;  %v1767_v9 = vsel %vm1763_vm8, %v4722_v11, %v4691_v52  ;;  %v1799_v40 = vmul.f32 %v1795_v4, %v1790_v27  ;;  %v1800_v20 = vmul.f32 %v1796_v19, %v1792_v26  ;;  %v1874_v4 = vld [vmem:[#allocation2 + $0x4e8] sm:$0xff] }
 0x315   : > { %v1816_v0 = vsel %vm1815_vm12, %v4775_v39, %v4810_v31  ;;  %v1818_v23 = vsel %vm1815_vm12, %v4810_v31, %v4775_v39  ;;  %v1727_v36 = vadd.f32 %v1723_v29, %v1701_v3  ;;  %v1728_v43 = vadd.f32 %v1724_v56, %v1702_v30 }
 0x316   : > { %v1777_v45 = vadd.f32 %v1773_v33, %v1751_v7  ;;  %v1778_v60 = vadd.f32 %v1774_v34, %v1752_v17  ;;  %vm1919_vm7 = vcmp.lt.s32.totalorder %v4435_v35, 93  ;;  %v1775_v52 = vmul.f32 %v1771_v59, %v1765_v6  ;;  %v1873_v34 = vld [vmem:[#allocation2 + $0x4e0] sm:$0xff]  ;;  %v1849_v17 = vld [vmem:[#allocation2 + $0x4d0] sm:$0xff] }
 0x317   : > { %v1776_v11 = vmul.f32 %v1772_v46, %v1767_v9  ;;  %v1791_v18 = vsel %vm1789_vm11, %v4752_v32, %v4780_v54  ;;  %v1793_v39 = vsel %vm1789_vm11, %v4780_v54, %v4752_v32  ;;  %v1825_v31 = vmul.f32 %v1821_v21, %v1816_v0  ;;  %v5358_v54 = vpop.permute.xlu0 %2041  ;;  %v6458_v59 = vld [vmem:[#allocation10_spill] sm:$0xff] }
 0x318   : > { %v1826_v22 = vmul.f32 %v1822_v8, %v1818_v23  ;;  %v1842_v28 = vsel %vm1841_vm13, %v4835_v62, %v4860_v47  ;;  %v1844_v25 = vsel %vm1841_vm13, %v4860_v47, %v4835_v62  ;;  %v1753_v41 = vadd.f32 %v1749_v10, %v1727_v36  ;;  %v1850_v10 = vld [vmem:[#allocation2 + $0x4d8] sm:$0xff]  ;;  %v1899_v9 = vld [vmem:[#allocation2 + $0x500] sm:$0xff]  ;;  %v5393_v23 = vpop.permute.xlu1 %2043 }
 0x319   : > { %v1754_v44 = vadd.f32 %v1750_v1, %v1728_v43  ;;  %v1803_v29 = vadd.f32 %v1799_v40, %v1777_v45  ;;  %v1804_v32 = vadd.f32 %v1800_v20, %v1778_v60  ;;  %vm1945_vm8 = vcmp.lt.s32.totalorder %v4435_v35, 83  ;;  %v6457_v1 = vld [vmem:[#allocation53_spill] sm:$0xff]  ;;  %v1900_v40 = vld [vmem:[#allocation2 + $0x508] sm:$0xff]  ;;  %v6459_v20 = vld [vmem:[#allocation12_spill] sm:$0xff] }
 0x31a   : > { %v1801_v56 = vmul.f32 %v1797_v2, %v1791_v18  ;;  %v1802_v58 = vmul.f32 %v1798_v37, %v1793_v39  ;;  %v1817_v55 = vsel %vm1815_vm12, %v4819_v15, %v4841_v57  ;;  %v1819_v62 = vsel %vm1815_vm12, %v4841_v57, %v4819_v15  ;;  %v6460_v21 = vld [vmem:[#allocation54_spill] sm:$0xff]  ;;  %v1875_v37 = vld [vmem:[#allocation2 + $0x4f0] sm:$0xff]  ;;  %v1876_v18 = vld [vmem:[#allocation2 + $0x4f8] sm:$0xff] }
 0x31b   : > { %v1851_v47 = vmul.f32 %v1847_v38, %v1842_v28  ;;  %v1852_v33 = vmul.f32 %v1848_v48, %v1844_v25  ;;  %v1868_v19 = vsel %vm1867_vm14, %v4889_v53, %v4910_v63  ;;  %v1870_v27 = vsel %vm1867_vm14, %v4910_v63, %v4889_v53  ;;  %v6461_v39 = vld [vmem:[#allocation55_spill] sm:$0xff]  ;;  %v1925_v25 = vld [vmem:[#allocation2 + $0x520] sm:$0xff] }
 0x31c   : > { %v1779_v26 = vadd.f32 %v1775_v52, %v1753_v41  ;;  %v1780_v3 = vadd.f32 %v1776_v11, %v1754_v44  ;;  %v1829_v30 = vadd.f32 %v1825_v31, %v1803_v29  ;;  %v1830_v7 = vadd.f32 %v1826_v22, %v1804_v32  ;;  %v5396_v52 = vpop.permute.xlu0 %2045  ;;  %v6462_v31 = vld [vmem:[#allocation11_spill] sm:$0xff]  ;;  %v6463_v44 = vld [vmem:[#allocation57_spill] sm:$0xff]  ;;  %v6464_v29 = vld [vmem:[#allocation56_spill] sm:$0xff] }
 0x31d   : > { %vm1971_vm11 = vcmp.lt.s32.totalorder %v4435_v35, 82  ;;  %v1827_v15 = vmul.f32 %v1823_v16, %v1817_v55  ;;  %v1828_v57 = vmul.f32 %v1824_v61, %v1819_v62  ;;  %v1843_v46 = vsel %vm1841_vm13, %v6458_v59, %v6457_v1  ;;  %v1926_v41 = vld [vmem:[#allocation2 + $0x528] sm:$0xff] }
 0x31e   : > { %v1845_v53 = vsel %vm1841_vm13, %v6457_v1, %v6458_v59  ;;  %v1877_v63 = vmul.f32 %v1873_v34, %v1868_v19  ;;  %v1878_v6 = vmul.f32 %v1874_v4, %v1870_v27  ;;  %v1894_v8 = vsel %vm1893_vm6, %v6460_v21, %v6459_v20  ;;  %v1902_v34 = vld [vmem:[#allocation2 + $0x518] sm:$0xff]  ;;  %v6465_v4 = vld [vmem:[#allocation14_spill] sm:$0xff]  ;;  %v5431_v59 = vpop.permute.xlu1 %2047 }
 0x31f   : > { %v1896_v0 = vsel %vm1893_vm6, %v6459_v20, %v6460_v21  ;;  %v1805_v36 = vadd.f32 %v1801_v56, %v1779_v26  ;;  %v1806_v43 = vadd.f32 %v1802_v58, %v1780_v3  ;;  %v1855_v45 = vadd.f32 %v1851_v47, %v1829_v30  ;;  %v6466_v19 = vld [vmem:[#allocation13_spill] sm:$0xff]  ;;  %v1927_v21 = vld [vmem:[#allocation2 + $0x530] sm:$0xff] }
 0x320   : > { %v1856_v60 = vadd.f32 %v1852_v33, %v1830_v7  ;;  %vm1997_vm12 = vcmp.lt.s32.totalorder %v4435_v35, 81  ;;  %v1853_v11 = vmul.f32 %v1849_v17, %v1843_v46  ;;  %v1854_v2 = vmul.f32 %v1850_v10, %v1845_v53  ;;  %v1901_v33 = vld [vmem:[#allocation2 + $0x510] sm:$0xff]  ;;  %v1951_v7 = vld [vmem:[#allocation2 + $0x540] sm:$0xff] }
 0x321   : > { %v1869_v22 = vsel %vm1867_vm14, %v6462_v31, %v6461_v39  ;;  %v1871_v38 = vsel %vm1867_vm14, %v6461_v39, %v6462_v31  ;;  %v1903_v48 = vmul.f32 %v1899_v9, %v1894_v8  ;;  %v1904_v28 = vmul.f32 %v1900_v40, %v1896_v0  ;;  %v6468_v17 = vld [vmem:[#allocation58_spill] sm:$0xff]  ;;  %v5434_v9 = vpop.permute.xlu0 %2067  ;;  %v1928_v8 = vld [vmem:[#allocation2 + $0x538] sm:$0xff]  ;;  %v6469_v0 = vld [vmem:[#allocation16_spill] sm:$0xff] }
 0x322   : > { %v1920_v32 = vsel %vm1919_vm7, %v6464_v29, %v6463_v44  ;;  %v1922_v56 = vsel %vm1919_vm7, %v6463_v44, %v6464_v29  ;;  %v1831_v58 = vadd.f32 %v1827_v15, %v1805_v36  ;;  %v1832_v16 = vadd.f32 %v1828_v57, %v1806_v43  ;;  %v1952_v15 = vld [vmem:[#allocation2 + $0x548] sm:$0xff]  ;;  %v1954_v44 = vld [vmem:[#allocation2 + $0x558] sm:$0xff] }
 0x323   : > { %v1881_v61 = vadd.f32 %v1877_v63, %v1855_v45  ;;  %v1882_v55 = vadd.f32 %v1878_v6, %v1856_v60  ;;  %vm2023_vm13 = vcmp.lt.s32.totalorder %v4435_v35, 80  ;;  %v1879_v62 = vmul.f32 %v1875_v37, %v1869_v22  ;;  %v6467_v57 = vld [vmem:[#allocation59_spill] sm:$0xff]  ;;  %v6471_v29 = vld [vmem:[#allocation17_spill] sm:$0xff] }
 0x324   : > { %v1880_v47 = vmul.f32 %v1876_v18, %v1871_v38  ;;  %v1895_v27 = vsel %vm1893_vm6, %v6466_v19, %v6465_v4  ;;  %v1897_v26 = vsel %vm1893_vm6, %v6465_v4, %v6466_v19  ;;  %v1929_v3 = vmul.f32 %v1925_v25, %v1920_v32  ;;  %v6470_v36 = vld [vmem:[#allocation15_spill] sm:$0xff]  ;;  %v6472_v32 = vld [vmem:[#allocation60_spill] sm:$0xff] }
 0x325   : > { %v1930_v30 = vmul.f32 %v1926_v41, %v1922_v56  ;;  %v1946_v10 = vsel %vm1945_vm8, %v6468_v17, %v6467_v57  ;;  %v1948_v1 = vsel %vm1945_vm8, %v6467_v57, %v6468_v17  ;;  %v1857_v46 = vadd.f32 %v1853_v11, %v1831_v58  ;;  %v1978_v37 = vld [vmem:[#allocation2 + $0x568] sm:$0xff]  ;;  %v1953_v41 = vld [vmem:[#allocation2 + $0x550] sm:$0xff]  ;;  %v6475_v17 = vld [vmem:[#allocation18_spill] sm:$0xff] }
 0x326   : > { %v1858_v53 = vadd.f32 %v1854_v2, %v1832_v16  ;;  %v1907_v63 = vadd.f32 %v1903_v48, %v1881_v61  ;;  %v1908_v6 = vadd.f32 %v1904_v28, %v1882_v55  ;;  %vm2049_vm14 = vcmp.lt.s32.totalorder %v4435_v35, 79  ;;  %v1977_v2 = vld [vmem:[#allocation2 + $0x560] sm:$0xff]  ;;  %v2004_v61 = vld [vmem:[#allocation2 + $0x588] sm:$0xff]  ;;  %v6473_v55 = vld [vmem:[#allocation61_spill] sm:$0xff] }
 0x327   : > { %v1905_v40 = vmul.f32 %v1901_v33, %v1895_v27  ;;  %v1906_v20 = vmul.f32 %v1902_v34, %v1897_v26  ;;  %v1921_v43 = vsel %vm1919_vm7, %v6470_v36, %v6469_v0  ;;  %v1923_v45 = vsel %vm1919_vm7, %v6469_v0, %v6470_v36  ;;  %v2003_v16 = vld [vmem:[#allocation2 + $0x580] sm:$0xff]  ;;  %v5469_v33 = vpop.permute.xlu1 %2069  ;;  %v2072_v26 = vpop.permute.xlu0 %2071  ;;  %v6474_v57 = vld [vmem:[#allocation19_spill] sm:$0xff] }
 0x328   : > { %v1955_v60 = vmul.f32 %v1951_v7, %v1946_v10  ;;  %v1956_v11 = vmul.f32 %v1952_v15, %v1948_v1  ;;  %v1972_v18 = vsel %vm1971_vm11, %v5134_v12, %v5169_v14  ;;  %v1974_v39 = vsel %vm1971_vm11, %v5169_v14, %v5134_v12  ;;  %v1979_v7 = vld [vmem:[#allocation2 + $0x570] sm:$0xff]  ;;  %v1980_v15 = vld [vmem:[#allocation2 + $0x578] sm:$0xff] }
 0x329   : > { %vm2075_vm6 = vcmp.lt.s32.totalorder %v4435_v35, 78  ;;  %v1883_v31 = vadd.f32 %v1879_v62, %v1857_v46  ;;  %v1884_v22 = vadd.f32 %v1880_v47, %v1858_v53  ;;  %v1933_v38 = vadd.f32 %v1929_v3, %v1907_v63  ;;  %v2029_v53 = vld [vmem:[#allocation2 + $0x5a0] sm:$0xff]  ;;  %v2030_v63 = vld [vmem:[#allocation2 + $0x5a8] sm:$0xff] }
 0x32a   : > { %v1934_v48 = vadd.f32 %v1930_v30, %v1908_v6  ;;  %v1931_v28 = vmul.f32 %v1927_v21, %v1921_v43  ;;  %v1932_v25 = vmul.f32 %v1928_v8, %v1923_v45  ;;  %v1947_v56 = vsel %vm1945_vm8, %v6472_v32, %v6471_v29  ;;  %v2005_v45 = vld [vmem:[#allocation2 + $0x590] sm:$0xff] }
 0x32b   : > { %v1949_v12 = vsel %vm1945_vm8, %v6471_v29, %v6472_v32  ;;  %v1981_v14 = vmul.f32 %v1977_v2, %v1972_v18  ;;  %v1982_v58 = vmul.f32 %v1978_v37, %v1974_v39  ;;  %v1998_v62 = vsel %vm1997_vm12, %v6473_v55, %v5242_v51  ;;  %v2055_v18 = vld [vmem:[#allocation2 + $0x5c0] sm:$0xff]  ;;  %v2056_v39 = vld [vmem:[#allocation2 + $0x5c8] sm:$0xff] }
 0x32c   : > { %v2000_v47 = vsel %vm1997_vm12, %v5242_v51, %v6473_v55  ;;  %v1909_v34 = vadd.f32 %v1905_v40, %v1883_v31  ;;  %v1910_v4 = vadd.f32 %v1906_v20, %v1884_v22  ;;  %v1959_v19 = vadd.f32 %v1955_v60, %v1933_v38  ;;  %v2006_v60 = vld [vmem:[#allocation2 + $0x598] sm:$0xff]  ;;  %v2074_v38 = vpop.permute.xlu1 %2073  ;;  %v2082_v29 = vld [vmem:[#allocation2 + $0x5e8] sm:$0xff] }
 0x32d   : > { %v1960_v27 = vadd.f32 %v1956_v11, %v1934_v48  ;;  %v1957_v3 = vmul.f32 %v1953_v41, %v1947_v56  ;;  %v1958_v30 = vmul.f32 %v1954_v44, %v1949_v12  ;;  %v1973_v10 = vsel %vm1971_vm11, %v6475_v17, %v6474_v57  ;;  %v2081_v44 = vld [vmem:[#allocation2 + $0x5e0] sm:$0xff]  ;;  %v2031_v12 = vld [vmem:[#allocation2 + $0x5b0] sm:$0xff] }
 0x32e   : > { %v1975_v51 = vsel %vm1971_vm11, %v6474_v57, %v6475_v17  ;;  %v2007_v1 = vmul.f32 %v2003_v16, %v1998_v62  ;;  %v2008_v46 = vmul.f32 %v2004_v61, %v2000_v47  ;;  %v2024_v6 = vsel %vm2023_vm13, %v5282_v24, %v5320_v49  ;;  %v2107_v57 = vld [vmem:[#allocation2 + $0x600] sm:$0xff]  ;;  %v2108_v17 = vld [vmem:[#allocation2 + $0x608] sm:$0xff] }
 0x32f   : > { %v2026_v40 = vsel %vm2023_vm13, %v5320_v49, %v5282_v24  ;;  %vm2101_vm7 = vcmp.lt.s32.totalorder %v4435_v35, 77  ;;  %v1935_v20 = vadd.f32 %v1931_v28, %v1909_v34  ;;  %v1936_v21 = vadd.f32 %v1932_v25, %v1910_v4  ;;  %v5496_v49 = vpop.permute.xlu0 %2123  ;;  %v2057_v4 = vld [vmem:[#allocation2 + $0x5d0] sm:$0xff] }
 0x330   : > { %v1985_v8 = vadd.f32 %v1981_v14, %v1959_v19  ;;  %v1986_v0 = vadd.f32 %v1982_v58, %v1960_v27  ;;  %v1983_v36 = vmul.f32 %v1979_v7, %v1973_v10  ;;  %v1984_v43 = vmul.f32 %v1980_v15, %v1975_v51  ;;  %v2032_v14 = vld [vmem:[#allocation2 + $0x5b8] sm:$0xff] }
 0x331   : > { %v1999_v11 = vsel %vm1997_vm12, %v5244_v50, %v5279_v5  ;;  %v2001_v24 = vsel %vm1997_vm12, %v5279_v5, %v5244_v50  ;;  %v2033_v2 = vmul.f32 %v2029_v53, %v2024_v6  ;;  %v2034_v37 = vmul.f32 %v2030_v63, %v2026_v40  ;;  %v2058_v19 = vld [vmem:[#allocation2 + $0x5d8] sm:$0xff] }
 0x332   : > { %v2050_v31 = vsel %vm2049_vm14, %v5358_v54, %v5396_v52  ;;  %v2052_v22 = vsel %vm2049_vm14, %v5396_v52, %v5358_v54  ;;  %v1961_v48 = vadd.f32 %v1957_v3, %v1935_v20  ;;  %v1962_v28 = vadd.f32 %v1958_v30, %v1936_v21 }
 0x333   : > { %v2011_v50 = vadd.f32 %v2007_v1, %v1985_v8  ;;  %v2012_v5 = vadd.f32 %v2008_v46, %v1986_v0  ;;  %v2009_v25 = vmul.f32 %v2005_v45, %v1999_v11  ;;  %v2010_v41 = vmul.f32 %v2006_v60, %v2001_v24  ;;  %v2094_v61 = vpop.permute.xlu0 %2093  ;;  %v2083_v1 = vld [vmem:[#allocation2 + $0x5f0] sm:$0xff]  ;;  %v2084_v46 = vld [vmem:[#allocation2 + $0x5f8] sm:$0xff] }
 0x334   : > { %v2076_v32 = vsel %vm2075_vm6, %v5434_v9, %v2072_v26  ;;  %v2078_v56 = vsel %vm2075_vm6, %v2072_v26, %v5434_v9  ;;  %v2025_v54 = vsel %vm2023_vm13, %v5317_v42, %v5355_v13  ;;  %v2027_v52 = vsel %vm2023_vm13, %v5355_v13, %v5317_v42  ;;  %v2129_v9 = vpop.permute.xlu1 %2128 }
 0x335   : > { %v2059_v58 = vmul.f32 %v2055_v18, %v2050_v31  ;;  %v2060_v16 = vmul.f32 %v2056_v39, %v2052_v22  ;;  %v1987_v55 = vadd.f32 %v1983_v36, %v1961_v48  ;;  %v1988_v62 = vadd.f32 %v1984_v43, %v1962_v28  ;;  %v2110_v18 = vld [vmem:[#allocation2 + $0x618] sm:$0xff] }
 0x336   : > { %v2037_v47 = vadd.f32 %v2033_v2, %v2011_v50  ;;  %v2038_v34 = vadd.f32 %v2034_v37, %v2012_v5  ;;  %v2051_v27 = vsel %vm2049_vm14, %v5393_v23, %v5431_v59  ;;  %v2053_v42 = vsel %vm2049_vm14, %v5431_v59, %v5393_v23  ;;  %v2109_v37 = vld [vmem:[#allocation2 + $0x610] sm:$0xff] }
 0x337   : > { %v2085_v13 = vmul.f32 %v2081_v44, %v2076_v32  ;;  %v2086_v26 = vmul.f32 %v2082_v29, %v2078_v56  ;;  %v2013_v3 = vadd.f32 %v2009_v25, %v1987_v55  ;;  %v2014_v30 = vadd.f32 %v2010_v41, %v1988_v62  ;;  %v2098_v59 = vpop.permute.xlu0 %2097  ;;  %v6476_v29 = vld [vmem:[#allocation6_spill] sm:$0xff]  ;;  %v6477_v56 = vld [vmem:[#allocation8_spill] sm:$0xff]  ;;  %v6478_v62 = vld [vmem:[#allocation7_spill] sm:$0xff] }
 0x338   : > { %v2035_v7 = vmul.f32 %v2031_v12, %v2025_v54  ;;  %v2036_v15 = vmul.f32 %v2032_v14, %v2027_v52  ;;  %v2063_v10 = vadd.f32 %v2059_v58, %v2037_v47  ;;  %v2064_v51 = vadd.f32 %v2060_v16, %v2038_v34  ;;  %v2096_v21 = vpop.permute.xlu1 %2095  ;;  %v6479_v34 = vld [vmem:[#allocation9_spill] sm:$0xff] }
 0x339   : > { %v2077_v53 = vsel %vm2075_vm6, %v5469_v33, %v2074_v38  ;;  %v2079_v23 = vsel %vm2075_vm6, %v2074_v38, %v5469_v33  ;;  %v2061_v63 = vmul.f32 %v2057_v4, %v2051_v27  ;;  %v2062_v6 = vmul.f32 %v2058_v19, %v2053_v42 }
 0x33a   : > { %v2102_v40 = vsel %vm2101_vm7, %v2094_v61, %v2098_v59  ;;  %v2104_v20 = vsel %vm2101_vm7, %v2098_v59, %v2094_v61  ;;  %v2089_v8 = vadd.f32 %v2085_v13, %v2063_v10  ;;  %v2090_v0 = vadd.f32 %v2086_v26, %v2064_v51 }
 0x33b   : > { %v2111_v36 = vmul.f32 %v2107_v57, %v2102_v40  ;;  %v2112_v43 = vmul.f32 %v2108_v17, %v2104_v20  ;;  %v2039_v45 = vadd.f32 %v2035_v7, %v2013_v3  ;;  %v2040_v60 = vadd.f32 %v2036_v15, %v2014_v30 }
 0x33c   : > { %v2087_v11 = vmul.f32 %v2083_v1, %v2077_v53  ;;  %v2088_v24 = vmul.f32 %v2084_v46, %v2079_v23  ;;  %v2100_v22 = vpop.permute.xlu1 %2099  ;;  %vm3637_vm8 = vmmov 0   ;;  %vm2528_vm11 = vcmask 31744  }
 0x33d   : > { %v2115_v2 = vadd.f32 %v2111_v36, %v2089_v8  ;;  %v2116_v33 = vadd.f32 %v2112_v43, %v2090_v0  ;;  %v2065_v39 = vadd.f32 %v2061_v63, %v2039_v45  ;;  %v2066_v31 = vadd.f32 %v2062_v6, %v2040_v60  ;;  %v2180_v8 = vpop.permute.xlu0 %2179 }
 0x33e   : > { %v2103_v28 = vsel %vm2101_vm7, %v2096_v21, %v2100_v22  ;;  %v2105_v50 = vsel %vm2101_vm7, %v2100_v22, %v2096_v21 }
 0x33f   : > { %v2131_v38 = vadd.f32 %v5496_v49, %v2115_v2  ;;  %v2132_v48 = vadd.f32 %v5496_v49, %v2116_v33  ;;  %v2091_v5 = vadd.f32 %v2087_v11, %v2065_v39  ;;  %v2092_v25 = vadd.f32 %v2088_v24, %v2066_v31 }
 0x340   : > { %v2113_v41 = vmul.f32 %v2109_v37, %v2103_v28  ;;  %v2114_v44 = vmul.f32 %v2110_v18, %v2105_v50  ;;  %v2185_v36 = vpop.permute.xlu1 %2184 }
 0x341   : > { %v2135_v32 = vadd.f32 %v2131_v38, %v6476_v29  ;;  %v2136_v12 = vadd.f32 %v2132_v48, %v6477_v56  ;;  %v2196_v31 = vpop.permute.xlu0 %2195  ;;  %v6480_v29 = vmov 0.0   ;;  %v2334_v56 = vld [vmem:[%s6009_s10 + $0xf0] sm:$0xff] }
 0x342   : > { %v2117_v14 = vadd.f32 %v2113_v41, %v2091_v5  ;;  %v2118_v54 = vadd.f32 %v2114_v44, %v2092_v25  ;;  %v2207_v44 = vld [vmem:[%s6007_s8] sm:$0xff] }
 0x343   : > { %v2143_v52 = vmul.f32 0.044715, %v2135_v32  ;;  %v2144_v58 = vmul.f32 0.044715, %v2136_v12  ;;  %v2139_v63 = vmul.f32 0.5, %v2135_v32  ;;  %v2140_v40 = vmul.f32 0.5, %v2136_v12 }
 0x344   : > { %v2133_v16 = vadd.f32 %v2129_v9, %v2117_v14  ;;  %v2134_v49 = vadd.f32 %v2129_v9, %v2118_v54  ;;  %v2201_v38 = vpop.permute.xlu1 %2200  ;;  %v2318_v54 = vld [vmem:[%s6009_s10 + $0x70] sm:$0xff] }
 0x345   : > { %v2147_v61 = vmul.f32 %v2143_v52, %v2135_v32  ;;  %v2148_v55 = vmul.f32 %v2144_v58, %v2136_v12  ;;  %v2319_v52 = vld [vmem:[%s6009_s10 + $0x78] sm:$0xff] }
 0x346   : > { %v2137_v47 = vadd.f32 %v2133_v16, %v6478_v62  ;;  %v2138_v4 = vadd.f32 %v2134_v49, %v6479_v34  ;;  %v3379_v58 = vpack.c.bf16 %v2319_v52, %v2318_v54  ;;  %v2214_v16 = vpop.permute.xlu0 %2213 }
 0x347   : > { %v2151_v19 = vmul.f32 %v2147_v61, %v2135_v32  ;;  %v2152_v27 = vmul.f32 %v2148_v55, %v2136_v12 }
 0x348   : > { %v2145_v42 = vmul.f32 0.044715, %v2137_v47  ;;  %v2146_v13 = vmul.f32 0.044715, %v2138_v4  ;;  %v2141_v45 = vmul.f32 0.5, %v2137_v47  ;;  %v2142_v11 = vmul.f32 0.5, %v2138_v4  ;;  %v2219_v34 = vpop.permute.xlu1 %2218 }
 0x349   : > { %v2155_v26 = vadd.f32 %v2151_v19, %v2135_v32  ;;  %v2156_v3 = vadd.f32 %v2152_v27, %v2136_v12  ;;  %v2208_v32 = vld [vmem:[%s6007_s8 + $0x8] sm:$0xff]  ;;  %v2335_v12 = vld [vmem:[%s6009_s10 + $0xf8] sm:$0xff] }
 0x34a   : > { %v2149_v30 = vmul.f32 %v2145_v42, %v2137_v47  ;;  %v2150_v7 = vmul.f32 %v2146_v13, %v2138_v4  ;;  %v3377_v14 = vpack.c.bf16 %v2335_v12, %v2334_v56  ;;  %v3636_v13 = vmov 0.0|0.0  }
 0x34b   : > { %v2159_v15 = vmul.f32 0.7978846, %v2155_v26  ;;  %v2160_v57 = vmul.f32 0.7978846, %v2156_v3 }
 0x34c   : > { %v2153_v17 = vmul.f32 %v2149_v30, %v2137_v47  ;;  %v2154_v10 = vmul.f32 %v2150_v7, %v2138_v4  ;;  %3378 = vmatprep.subr.bf16.mxu0 %v3377_v14  ;;  %v5645_v42 = vpop.permute.xlu1 %2510 }
 0x34d   : > { %3496 = vtanh.f32 %v2159_v15  ;;  %3380 = vmatpush3.bf16.msra.mxu0 %v3379_v58 }
 0x34e   : > { %3498 = vtanh.f32 %v2160_v57  ;;  %v2157_v9 = vadd.f32 %v2153_v17, %v2137_v47  ;;  %v2158_v51 = vadd.f32 %v2154_v10, %v2138_v4 }
 0x350   : > { %v2161_v1 = vmul.f32 0.7978846, %v2157_v9  ;;  %v2162_v46 = vmul.f32 0.7978846, %v2158_v51  ;;  %v2521_v26 = vpop.permute.xlu1 %2520 }
 0x352   : > { %3500 = vtanh.f32 %v2161_v1 }
 0x353   : > { %3502 = vtanh.f32 %v2162_v46 }
 0x357   : > { %v3497_v53 = vpop.eup %3496 }
 0x358   : > { %v3499_v23 = vpop.eup %3498  ;;  %v2167_v59 = vadd.f32 1.0, %v3497_v53 }
 0x359   : > { %v2168_v6 = vadd.f32 1.0, %v3499_v23 }
 0x35a   : > { %v2171_v20 = vmul.f32 %v2167_v59, %v2139_v63 }
 0x35b   : > { %v2172_v0 = vmul.f32 %v2168_v6, %v2140_v40 }
 0x35c   : > { %v3501_v21 = vpop.eup %3500  ;;  %v2187_v2 = vmul.f32 %v2180_v8, %v2171_v20 }
 0x35d   : > { %v3503_v43 = vpop.eup %3502  ;;  %v2169_v60 = vadd.f32 1.0, %v3501_v21  ;;  %v2188_v37 = vmul.f32 %v2180_v8, %v2172_v0  ;;  %v2411_v0 = vld [vmem:[%s6011_s12] sm:$0xf] }
 0x35e   : > { %v2170_v24 = vadd.f32 1.0, %v3503_v43  ;;  %v2203_v48 = vadd.f32 %v2196_v31, %v2187_v2  ;;  %v2416_v43 = vpop.permute.xlu0 %2415 }
 0x35f   : > { %v2173_v33 = vmul.f32 %v2169_v60, %v2141_v45  ;;  %v2204_v50 = vadd.f32 %v2196_v31, %v2188_v37 }
 0x360   : > { %v2174_v18 = vmul.f32 %v2170_v24, %v2142_v11 }
 0x361   : > { %v2189_v39 = vmul.f32 %v2185_v36, %v2173_v33 }
 0x362   : > { %v2190_v22 = vmul.f32 %v2185_v36, %v2174_v18  ;;  %v2500_v36 = vld [vmem:[%s6013_s14] sm:$0xff] }
 0x363   : > { %v2205_v28 = vadd.f32 %v2201_v38, %v2189_v39 }
 0x364   : > { %v2206_v5 = vadd.f32 %v2201_v38, %v2190_v22  ;;  %v5648_v3 = vpop.permute.xlu1 %2660 }
 0x365   : > { %v3347_v25 = vpack.c.bf16 %v2205_v28, %v2203_v48  ;;  %v2501_v48 = vld [vmem:[%s6013_s14 + $0x8] sm:$0xff]  ;;  %v2502_v28 = vld [vmem:[%s6013_s14 + $0x10] sm:$0xff] }
 0x366   : > { %v3345_v41 = vpack.c.bf16 %v2206_v5, %v2204_v50  ;;  %v2503_v50 = vld [vmem:[%s6013_s14 + $0x18] sm:$0xff]  ;;  %v3638_v5 = vmov 2  }
 0x367   : > { %3470 = vset.pattern.permute.xlu1 %v3638_v5 }
 0x368   : > { %3346 = vmatprep.subr.bf16.mxu1 %v3345_v41 }
 0x369   : > { %3348 = vmatpush1.bf16.msra.mxu1 %v3347_v25  ;;  %v2516_v25 = vpop.permute.xlu0 %2515 }
 0x36a   : > { %3381 = vmatprep.subr.bf16.mxu1 %v3636_v13 }
 0x36c   : > { %3252 = vmatmul.mubr.msk.f32.vlgmr.msra.gmra.mrb[4].mxu1 %vm705_vm0, %v2207_v44  ;;  %v5650_v30 = vpop.permute.xlu1 %2672 }
 0x36d   : > { %2297 = vmatprep.mubr.f32.mxu1 %v6480_v29 }
 0x370   : > { %3253 = vmatmul.mubr.msk.f32.gmra.mrb[6].mxu1 %vm705_vm0, %v2208_v32 }
 0x371   : > { %3330 = vmatprep.mubr.msk.f32.mxu1 %vm3637_vm8, %v6480_v29  ;;  %v2526_v29 = vpop.permute.xlu0 %2525 }
 0x43f   : > { %v2293_v49 = vpop.f32.mrb[4].mxu1 }
 0x440   : > { %v5569_v61 = vadd.f32 %v2293_v49, %v2214_v16  ;;  %v2295_v55 = vpop.f32.mrb[5].mxu1 }
 0x441   : > { %v5571_v62 = vadd.f32 %v2295_v55, %v2214_v16 }
 0x442   : > { %2773 = vrot.lane.b32.xlu1 %v5569_v61, %s6270_s23  ;;  %2682 = vrot.lane.b32.xlu0 %v5569_v61, %s6264_s5 }
 0x443   : > { %v2299_v47 = vpop.f32.mrb[6].mxu1  ;;  %2400 = vmatprep.mubr.f32.mxu0 %v5571_v62 }
 0x444   : > { %v2301_v4 = vpop.f32.mrb[7].mxu1  ;;  %2401 = vmatmul.mubr.f32.vlgmr.msra.gmra.mrb[0].mxu0 %v5569_v61  ;;  %v5581_v27 = vadd.f32 %v2299_v47, %v2219_v34 }
 0x445   : > { %v5579_v19 = vadd.f32 %v2301_v4, %v2219_v34 }
 0x446   : > { %2818 = vrot.lane.b32.xlu1 %v5569_v61, %s6285_s6  ;;  %2728 = vrot.lane.b32.xlu0 %v5569_v61, %s6267_s30 }
 0x447   : > { %2405 = vmatprep.mubr.f32.mxu0 %v5579_v19 }
 0x448   : > { %2406 = vmatmul.mubr.f32.gmra.mrb[2].mxu0 %v5581_v27 }
 0x44a   : > { %2896 = vrot.lane.b32.xlu1 %v5569_v61, %s6481_s27  ;;  %3031 = vrot.lane.b32.xlu0 %v5569_v61, %s6302_s26 }
 0x44e   : > { %2941 = vrot.lane.b32.xlu1 %v5569_v61, %s6300_s4  ;;  %2686 = vrot.lane.b32.xlu0 %v5571_v62, %s6264_s5 }
 0x452   : > { %2986 = vrot.lane.b32.xlu1 %v5569_v61, %s6301_s29  ;;  %2732 = vrot.lane.b32.xlu0 %v5571_v62, %s6267_s30 }
 0x456   : > { %2777 = vrot.lane.b32.xlu1 %v5571_v62, %s6270_s23  ;;  %2822 = vrot.lane.b32.xlu0 %v5571_v62, %s6285_s6 }
 0x45a   : > { %2945 = vrot.lane.b32.xlu1 %v5571_v62, %s6300_s4  ;;  %2900 = vrot.lane.b32.xlu0 %v5571_v62, %s6481_s27 }
 0x45e   : > { %2684 = vrot.lane.b32.xlu1 %v5581_v27, %s6264_s5  ;;  %2990 = vrot.lane.b32.xlu0 %v5571_v62, %s6301_s29 }
 0x462   : > { %2730 = vrot.lane.b32.xlu1 %v5581_v27, %s6267_s30  ;;  %3035 = vrot.lane.b32.xlu0 %v5571_v62, %s6302_s26 }
 0x466   : > { %2820 = vrot.lane.b32.xlu1 %v5581_v27, %s6285_s6  ;;  %2775 = vrot.lane.b32.xlu0 %v5581_v27, %s6270_s23 }
 0x46a   : > { %2898 = vrot.lane.b32.xlu1 %v5581_v27, %s6481_s27  ;;  %2943 = vrot.lane.b32.xlu0 %v5581_v27, %s6300_s4 }
 0x46e   : > { %2988 = vrot.lane.b32.xlu1 %v5581_v27, %s6301_s29  ;;  %2779 = vrot.lane.b32.xlu0 %v5579_v19, %s6270_s23 }
 0x472   : > { %3033 = vrot.lane.b32.xlu1 %v5581_v27, %s6302_s26  ;;  %2947 = vrot.lane.b32.xlu0 %v5579_v19, %s6300_s4 }
 0x476   : > { %2688 = vrot.lane.b32.xlu1 %v5579_v19, %s6264_s5 }
 0x47a   : > { %2734 = vrot.lane.b32.xlu1 %v5579_v19, %s6267_s30 }
 0x47e   : > { %2824 = vrot.lane.b32.xlu1 %v5579_v19, %s6285_s6 }
 0x482   : > { %2902 = vrot.lane.b32.xlu1 %v5579_v19, %s6481_s27 }
 0x486   : > { %2992 = vrot.lane.b32.xlu1 %v5579_v19, %s6301_s29 }
 0x48a   : > { %3037 = vrot.lane.b32.xlu1 %v5579_v19, %s6302_s26 }
 0x4b4   : > { %v2774_v7 = vpop.permute.xlu1 %2773 }
 0x4b8   : > { %v5652_v15 = vpop.permute.xlu1 %2818 }
 0x4bc   : > { %v5654_v57 = vpop.permute.xlu1 %2896 }
 0x4c0   : > { %v2942_v17 = vpop.permute.xlu1 %2941 }
 0x4c4   : > { %v5656_v10 = vpop.permute.xlu1 %2986 }
 0x4c8   : > { %v2778_v9 = vpop.permute.xlu1 %2777 }
 0x4c9   : > { %v5660_v51 = vsel %vm1334_vm4, %v2774_v7, %v2778_v9  ;;  %v5664_v1 = vsel %vm1334_vm4, %v2778_v9, %v2774_v7  ;;  %v2645_v7 = vld [vmem:[%s6015_s16 + $0x8] sm:$0xff] }
 0x4cc   : > { %v2946_v46 = vpop.permute.xlu1 %2945 }
 0x4cd   : > { %v5668_v53 = vsel %vm1633_vm15, %v2942_v17, %v2946_v46  ;;  %v5672_v23 = vsel %vm1633_vm15, %v2946_v46, %v2942_v17 }
 0x517   : > { %v3312_v59 = vpop.f32.mrb[0].mxu0 }
 0x518   : > { %v3313_v63 = vpop.f32.mrb[1].mxu0 }
 0x519   : > { %v3314_v6 = vadd.f32 %v3313_v63, %v3312_v59  ;;  %v3639_v63 = vmov 3  }
 0x51b   : > { %v3315_v40 = vpop.f32.mrb[2].mxu0 }
 0x51c   : > { %v3316_v20 = vpop.f32.mrb[3].mxu0 }
 0x51d   : > { %v3317_v21 = vadd.f32 %v3316_v20, %v3315_v40  ;;  %v3641_v20 = vmov 5  }
 0x51f   : > { %v3382_v8 = vpack.c.bf16 %v3317_v21, %v3314_v6  ;;  %v3640_v6 = vmov 1   ;;  %v3642_v21 = vmov 4  }
 0x521   : > { %3383 = vmatpush3.bf16.msra.mxu1 %v3382_v8 }
 0x524   : > { %3331 = vmatmul.mubr.msk.f32.vlgmr.msra.gmra.mrb[8].mxu1 %vm705_vm0, %v2411_v0  ;;  %vm2541_vm0 = vcmask 1043456   ;;  %v2650_v0 = vld [vmem:[%s6016_s17] sm:$0xff] }
 0x525   : > { %3335 = vmatprep.mubr.msk.f32.mxu1 %vm2528_vm11, %v2500_v36  ;;  %v2644_v36 = vld [vmem:[%s6015_s16] sm:$0xff] }
 0x5f7   : > { %v2487_v45 = vpop.f32.mrb[8].mxu1 }
 0x5f8   : > { %v2488_v60 = vadd.f32 %v2487_v45, %v2416_v43  ;;  %v3332_v11 = vpop.f32.mrb[9].mxu1  ;;  %v3643_v45 = vmov 7  }
 0x5fa   : > { %v2492_v24 = vmul.f32 0.044715, %v2488_v60  ;;  %v2491_v31 = vmul.f32 0.5, %v2488_v60 }
 0x5fc   : > { %v2493_v2 = vmul.f32 %v2492_v24, %v2488_v60 }
 0x5fe   : > { %v2494_v33 = vmul.f32 %v2493_v2, %v2488_v60  ;;  %v6482_v2 = vmov 0  }
 0x600   : > { %v2495_v37 = vadd.f32 %v2494_v33, %v2488_v60  ;;  %v3644_v60 = vmov 6   ;;  %v3645_v33 = vmov 8  }
 0x602   : > { %v2496_v18 = vmul.f32 0.7978846, %v2495_v37 }
 0x604   : > { %3504 = vtanh.f32 %v2496_v18 }
 0x60e   : > { %v3505_v39 = vpop.eup %3504 }
 0x60f   : > { %v2498_v22 = vadd.f32 1.0, %v3505_v39  ;;  %v2663_v39 = vpop.permute.xlu0 %2662 }
 0x611   : > { %v2499_v38 = vmul.f32 %v2498_v22, %v2491_v31  ;;  %v3646_v22 = vmov 9  }
 0x613   : > { %3333 = vmatprep.subr.msk.mxu1 %vm2541_vm0, %v2499_v38 }
 0x614   : > { %3334 = vmatpush3.msk.msra.mxu1 %vm2541_vm0, %v2499_v38  ;;  %v2675_v38 = vpop.permute.xlu0 %2674 }
 0x615   : > { %3336 = vmatmul.mubr.msk.f32.vlgmr.msra.gmra.mrb[10].mxu1 %vm2528_vm11, %v2501_v48 }
 0x616   : > { %3338 = vmatprep.mubr.msk.f32.mxu1 %vm2528_vm11, %v2502_v28 }
 0x619   : > { %3339 = vmatmul.mubr.msk.f32.gmra.mrb[12].mxu1 %vm2528_vm11, %v2503_v50 }
 0x6e8   : > { %v3337_v41 = vpop.f32.mrb[10].mxu1 }
 0x6e9   : > { %v2611_v44 = vpop.f32.mrb[11].mxu1  ;;  %v2617_v56 = vadd.f32 %v3337_v41, %v2516_v25 }
 0x6ea   : > { %v2612_v54 = vadd.f32 %v2611_v44, %v5645_v42  ;;  %v2651_v42 = vld [vmem:[%s6016_s17 + $0x8] sm:$0xff] }
 0x6ec   : > { %v3340_v32 = vpop.f32.mrb[12].mxu1 }
 0x6ed   : > { %v2627_v12 = vadd.f32 %v3340_v32, %v2526_v29  ;;  %v2621_v14 = vpop.f32.mrb[13].mxu1 }
 0x6ee   : > { %v2622_v52 = vadd.f32 %v2621_v14, %v2521_v26 }
 0x6ef   : > { %v2631_v58 = vsub.f32 %v2617_v56, %v2627_v12 }
 0x6f0   : > { %v2630_v16 = vsub.f32 %v2612_v54, %v2622_v52 }
 0x6f1   : > { %v3261_v49 = vmul.f32 -1.442695, %v2631_v58 }
 0x6f2   : > { %v3260_v55 = vmul.f32 -1.442695, %v2630_v16 }
 0x6f3   : > { %3506 = vpow2.f32 %v3261_v49 }
 0x6f4   : > { %3508 = vpow2.f32 %v3260_v55 }
 0x6fd   : > { %v3507_v47 = vpop.eup %3506 }
 0x6fe   : > { %v2639_v34 = vadd.f32 1.0, %v3507_v47  ;;  %v3509_v4 = vpop.eup %3508 }
 0x6ff   : > { %v2638_v26 = vadd.f32 1.0, %v3509_v4 }
 0x700   : > { %3510 = vrcp.f32 %v2639_v34 }
 0x701   : > { %3512 = vrcp.f32 %v2638_v26  ;;  %v6486_v26 = vlaneseq }
 0x70a   : > { %v5696_v13 = vpop.eup %3510 }
 0x70b   : > { %v2649_v17 = vsub.f32 1.0, %v5696_v13  ;;  %v2647_v9 = vmul.f32 %v5696_v13, %v2645_v7  ;;  %v3513_v40 = vpop.eup %3512  ;;  %v2667_v28 = vmul.f32 %v5696_v13, %v2663_v39  ;;  %v3264_v39 = vld [vmem:[%s6010_s11 + $0x3] ss:$8 sm:$0x3] }
 0x70c   : > { %v2648_v8 = vsub.f32 1.0, %v3513_v40  ;;  %v2646_v11 = vmul.f32 %v3513_v40, %v2644_v36  ;;  %v2666_v18 = vmul.f32 %v3513_v40, %v5648_v3  ;;  %v2685_v3 = vpop.permute.xlu1 %2684  ;;  %v2694_v40 = vld [vmem:[%s6010_s11] ss:$8 sm:$0x3] }
 0x70d   : > { %v2653_v46 = vmul.f32 %v2651_v42, %v2649_v17  ;;  %v2679_v48 = vmul.f32 %v2675_v38, %v2649_v17  ;;  %v2697_v17 = vshrl.u32 %v6486_v26, 7 }
 0x70e   : > { %v2652_v43 = vmul.f32 %v2650_v0, %v2648_v8  ;;  %v2678_v37 = vmul.f32 %v5650_v30, %v2648_v8  ;;  %v5717_v30 = vpop.permute.xlu0 %2682 }
 0x70f   : > { %v2655_v59 = vadd.f32 %v2653_v46, %v2647_v9  ;;  %v2681_v50 = vadd.f32 %v2679_v48, %v2667_v28  ;;  %v5746_v9 = vsub.s32 0, %v2697_v17  ;;  %v5748_v46 = vsub.s32 1, %v2697_v17 }
 0x710   : > { %v2654_v24 = vadd.f32 %v2652_v43, %v2646_v11  ;;  %v2680_v31 = vadd.f32 %v2678_v37, %v2666_v18  ;;  %v2731_v41 = vpop.permute.xlu1 %2730 }
 0x711   : > { %2807 = vperm.xlu1 %3470, %v2655_v59   ;;  %2717 = vperm.xlu0 %3467, %v2655_v59   ;;  %v5775_v11 = vrot.slane %v2694_v40, %v5746_v9 }
 0x714   : > { %v2821_v29 = vpop.permute.xlu1 %2820 }
 0x715   : > { %3471 = vset.pattern.permute.xlu1 %v3639_v63  ;;  %3469 = vset.pattern.permute.xlu0 %v3640_v6 }
 0x716   : > { %2852 = vperm.xlu1 %3471, %v2655_v59   ;;  %2762 = vperm.xlu0 %3469, %v2655_v59  }
 0x718   : > { %v5727_v56 = vpop.permute.xlu1 %2898 }
 0x71a   : > { %3473 = vset.pattern.permute.xlu1 %v3641_v20  ;;  %3472 = vset.pattern.permute.xlu0 %v3642_v21 }
 0x71b   : > { %2930 = vperm.xlu1 %3473, %v2655_v59   ;;  %2885 = vperm.xlu0 %3472, %v2655_v59  }
 0x71c   : > { %v5731_v14 = vpop.permute.xlu1 %2988 }
 0x71f   : > { %3475 = vset.pattern.permute.xlu1 %v3643_v45  ;;  %3474 = vset.pattern.permute.xlu0 %v3644_v60 }
 0x720   : > { %3020 = vperm.xlu1 %3475, %v2655_v59   ;;  %2975 = vperm.xlu0 %3474, %v2655_v59   ;;  %v5735_v52 = vpop.permute.xlu1 %3033 }
 0x721   : > { %6484 = vst [vmem:[#allocation63_spill] sm:$0xff] %v5735_v52 }
 0x724   : > { %3477 = vset.pattern.permute.xlu1 %v6482_v2  ;;  %3476 = vset.pattern.permute.xlu0 %v3645_v33  ;;  %v2689_v16 = vpop.permute.xlu1 %2688 }
 0x725   : > { %3065 = vperm.xlu0 %3476, %v2655_v59   ;;  %2712 = vperm.xlu1 %3477, %v2654_v24   ;;  %v2691_v8 = vsel %vm1282_vm2, %v2685_v3, %v2689_v16  ;;  %v2693_v0 = vsel %vm1282_vm2, %v2689_v16, %v2685_v3 }
 0x726   : > { %v2708_v28 = vmul.f32 %v5775_v11, %v2693_v0 }
 0x728   : > { %v2735_v55 = vpop.permute.xlu1 %2734 }
 0x729   : > { %3480 = vset.pattern.permute.xlu0 %v3639_v63  ;;  %3478 = vset.pattern.permute.xlu1 %v3640_v6  ;;  %v3265_v6 = vld [vmem:[%s6010_s11 + $0x4] ss:$8 sm:$0x3]  ;;  %v2737_v2 = vsel %vm1308_vm3, %v2731_v41, %v2735_v55 }
 0x72a   : > { %2848 = vperm.xlu0 %3480, %v2654_v24   ;;  %2758 = vperm.xlu1 %3478, %v2654_v24  }
 0x72c   : > { %v2825_v34 = vpop.permute.xlu1 %2824 }
 0x72d   : > { %v2827_v16 = vsel %vm1464_vm9, %v2821_v29, %v2825_v34 }
 0x72e   : > { %3482 = vset.pattern.permute.xlu0 %v3641_v20  ;;  %3479 = vset.pattern.permute.xlu1 %v3638_v5  ;;  %v5719_v5 = vpop.permute.xlu0 %2728  ;;  %v3262_v20 = vld [vmem:[%s6010_s11 + $0x1] ss:$8 sm:$0x3] }
 0x72f   : > { %2926 = vperm.xlu0 %3482, %v2654_v24   ;;  %2803 = vperm.xlu1 %3479, %v2654_v24   ;;  %v5785_v37 = vrot.slane %v3262_v20, %v5746_v9  ;;  %v5788_v18 = vrot.slane %v3262_v20, %v5748_v46  ;;  %v3266_v20 = vld [vmem:[%s6010_s11 + $0x5] ss:$8 sm:$0x3] }
 0x730   : > { %v2903_v13 = vpop.permute.xlu1 %2902  ;;  %v5829_v52 = vrot.slane %v3266_v20, %v5746_v9 }
 0x732   : > { %v5721_v25 = vpop.permute.xlu0 %3031 }
 0x733   : > { %3484 = vset.pattern.permute.xlu0 %v3643_v45  ;;  %3481 = vset.pattern.permute.xlu1 %v3642_v21  ;;  %6483 = vst [vmem:[#allocation62_spill] sm:$0xff] %v5721_v25  ;;  %v3263_v21 = vld [vmem:[%s6010_s11 + $0x2] ss:$8 sm:$0x3]  ;;  %v5769_v45 = vrot.slane %v3265_v6, %v5746_v9 }
 0x734   : > { %3016 = vperm.xlu0 %3484, %v2654_v24   ;;  %2881 = vperm.xlu1 %3481, %v2654_v24   ;;  %v5743_v42 = vpop.permute.xlu1 %2992  ;;  %v5798_v38 = vrot.slane %v3263_v21, %v5746_v9  ;;  %v5801_v48 = vrot.slane %v3263_v21, %v5748_v46 }
 0x736   : > { %v5723_v44 = vpop.permute.xlu0 %2686 }
 0x738   : > { %3486 = vset.pattern.permute.xlu0 %v3646_v22  ;;  %3483 = vset.pattern.permute.xlu1 %v3644_v60  ;;  %v5750_v63 = vpop.permute.xlu1 %3037  ;;  %v5772_v60 = vrot.slane %v3265_v6, %v5748_v46 }
 0x739   : > { %3078 = vperm.xlu0 %3486, %v2680_v31   ;;  %2971 = vperm.xlu1 %3483, %v2654_v24  }
 0x73a   : > { %v5725_v32 = vpop.permute.xlu0 %2732 }
 0x73d   : > { %3485 = vset.pattern.permute.xlu1 %v3645_v33  ;;  %v2739_v33 = vsel %vm1308_vm3, %v2735_v55, %v2731_v41  ;;  %v2756_v41 = vmul.f32 %v5788_v18, %v2737_v2  ;;  %v2829_v55 = vsel %vm1464_vm9, %v2825_v34, %v2821_v29 }
 0x73e   : > { %3061 = vperm.xlu1 %3485, %v2654_v24   ;;  %v5729_v12 = vpop.permute.xlu0 %2822  ;;  %v5778_v24 = vrot.slane %v2694_v40, %v5748_v46  ;;  %v2755_v3 = vmul.f32 %v5785_v37, %v2739_v33  ;;  %v2878_v33 = vmul.f32 %v5769_v45, %v5581_v27  ;;  %v2907_v27 = vsel %vm1503_vm10, %v2903_v13, %v5727_v56 }
 0x742   : > { %3487 = vset.pattern.permute.xlu1 %v3646_v22  ;;  %v5733_v54 = vpop.permute.xlu0 %2900 }
 0x743   : > { %3083 = vperm.xlu1 %3487, %v2681_v50   ;;  %v2709_v50 = vmul.f32 %v5778_v24, %v2691_v8 }
 0x746   : > { %v5737_v58 = vpop.permute.xlu0 %2990 }
 0x74a   : > { %v5739_v49 = vpop.permute.xlu0 %3035 }
 0x74b   : > { %6485 = vst [vmem:[#allocation20_spill] sm:$0xff] %v5739_v49 }
 0x74e   : > { %v2776_v47 = vpop.permute.xlu0 %2775 }
 0x752   : > { %v5741_v4 = vpop.permute.xlu0 %2943 }
 0x756   : > { %v2780_v7 = vpop.permute.xlu0 %2779 }
 0x757   : > { %v2782_v31 = vsel %vm1334_vm4, %v2776_v47, %v2780_v7  ;;  %v2784_v22 = vsel %vm1334_vm4, %v2780_v7, %v2776_v47  ;;  %v5812_v47 = vrot.slane %v3264_v39, %v5746_v9  ;;  %v5815_v7 = vrot.slane %v3264_v39, %v5748_v46 }
 0x758   : > { %v2800_v26 = vmul.f32 %v5798_v38, %v2784_v22  ;;  %v2801_v17 = vmul.f32 %v5801_v48, %v2782_v31  ;;  %v2879_v39 = vmul.f32 %v5772_v60, %v5579_v19  ;;  %v3267_v19 = vld [vmem:[%s6010_s11 + $0x6] ss:$8 sm:$0x3] }
 0x759   : > { %v2845_v34 = vmul.f32 %v5812_v47, %v2829_v55  ;;  %v2846_v2 = vmul.f32 %v5815_v7, %v2827_v16 }
 0x75a   : > { %v2948_v59 = vpop.permute.xlu0 %2947 }
 0x790   : > { %v2808_v36 = vpop.permute.xlu1 %2807  ;;  %v2718_v43 = vpop.permute.xlu0 %2717 }
 0x791   : > { %v2722_v21 = vmul.f32 %v2718_v43, %v2708_v28  ;;  %v2723_v8 = vmul.f32 %v2718_v43, %v2709_v50  ;;  %v2812_v31 = vmul.f32 %v2808_v36, %v2800_v26  ;;  %v2813_v22 = vmul.f32 %v2808_v36, %v2801_v17 }
 0x792   : > { %v5832_v43 = vrot.slane %v3266_v20, %v5748_v46  ;;  %v2905_v28 = vsel %vm1503_vm10, %v5727_v56, %v2903_v13  ;;  %v2950_v26 = vsel %vm1633_vm15, %v5741_v4, %v2948_v59  ;;  %v2952_v17 = vsel %vm1633_vm15, %v2948_v59, %v5741_v4 }
 0x793   : > { %v2923_v13 = vmul.f32 %v5829_v52, %v2905_v28 }
 0x794   : > { %v2924_v20 = vmul.f32 %v5832_v43, %v2907_v27 }
 0x795   : > { %v2853_v6 = vpop.permute.xlu1 %2852  ;;  %v2763_v40 = vpop.permute.xlu0 %2762 }
 0x796   : > { %v2767_v0 = vmul.f32 %v2763_v40, %v2755_v3  ;;  %v2768_v29 = vmul.f32 %v2763_v40, %v2756_v41  ;;  %v2857_v36 = vmul.f32 %v2853_v6, %v2845_v34  ;;  %v2858_v50 = vmul.f32 %v2853_v6, %v2846_v2 }
 0x798   : > { %v2771_v25 = vadd.f32 %v2767_v0, %v2722_v21  ;;  %v2772_v49 = vadd.f32 %v2768_v29, %v2723_v8  ;;  %v3268_v8 = vld [vmem:[%s6010_s11 + $0x7] ss:$8 sm:$0x3] }
 0x799   : > { %v5871_v28 = vrot.slane %v3268_v8, %v5746_v9  ;;  %v5874_v27 = vrot.slane %v3268_v8, %v5748_v46  ;;  %v2692_v8 = vsel %vm1282_vm2, %v5723_v44, %v5717_v30 }
 0x79a   : > { %v2816_v3 = vadd.f32 %v2812_v31, %v2771_v25  ;;  %v2817_v41 = vadd.f32 %v2813_v22, %v2772_v49  ;;  %v2931_v16 = vpop.permute.xlu1 %2930  ;;  %v2886_v55 = vpop.permute.xlu0 %2885  ;;  %v5852_v25 = vrot.slane %v3267_v19, %v5746_v9  ;;  %v5855_v49 = vrot.slane %v3267_v19, %v5748_v46 }
 0x79b   : > { %v2890_v40 = vmul.f32 %v2886_v55, %v2878_v33  ;;  %v2891_v56 = vmul.f32 %v2886_v55, %v2879_v39  ;;  %v2935_v0 = vmul.f32 %v2931_v16, %v2923_v13  ;;  %v2936_v4 = vmul.f32 %v2931_v16, %v2924_v20 }
 0x79c   : > { %v2861_v21 = vadd.f32 %v2857_v36, %v2816_v3  ;;  %v2862_v6 = vadd.f32 %v2858_v50, %v2817_v41  ;;  %v2968_v34 = vmul.f32 %v5852_v25, %v2950_v26  ;;  %v2969_v2 = vmul.f32 %v5855_v49, %v2952_v17 }
 0x79d   : > { %v2995_v33 = vsel %vm1659_vm1, %v5731_v14, %v5743_v42  ;;  %v2997_v39 = vsel %vm1659_vm1, %v5743_v42, %v5731_v14 }
 0x79e   : > { %v2894_v59 = vadd.f32 %v2890_v40, %v2861_v21  ;;  %v2895_v29 = vadd.f32 %v2891_v56, %v2862_v6  ;;  %v3013_v41 = vmul.f32 %v5871_v28, %v2995_v33  ;;  %v3014_v16 = vmul.f32 %v5874_v27, %v2997_v39 }
 0x79f   : > { %v3021_v31 = vpop.permute.xlu1 %3020  ;;  %v2976_v22 = vpop.permute.xlu0 %2975  ;;  %v2736_v40 = vsel %vm1308_vm3, %v5719_v5, %v5725_v32  ;;  %v2738_v56 = vsel %vm1308_vm3, %v5725_v32, %v5719_v5  ;;  %v2690_v6 = vsel %vm1282_vm2, %v5717_v30, %v5723_v44  ;;  %vm3103_vm2 = vcmask 15360  }
 0x7a0   : > { %v2939_v19 = vadd.f32 %v2935_v0, %v2894_v59  ;;  %v2940_v36 = vadd.f32 %v2936_v4, %v2895_v29  ;;  %v2980_v50 = vmul.f32 %v2976_v22, %v2968_v34  ;;  %v2981_v3 = vmul.f32 %v2976_v22, %v2969_v2 }
 0x7a1   : > { %v3025_v17 = vmul.f32 %v3021_v31, %v3013_v41  ;;  %v3026_v14 = vmul.f32 %v3021_v31, %v3014_v16  ;;  %v2753_v0 = vmul.f32 %v5785_v37, %v2738_v56  ;;  %v2754_v5 = vmul.f32 %v5788_v18, %v2736_v40 }
 0x7a2   : > { %v2984_v55 = vadd.f32 %v2980_v50, %v2939_v19  ;;  %v2985_v26 = vadd.f32 %v2981_v3, %v2940_v36  ;;  %v2706_v4 = vmul.f32 %v5775_v11, %v2692_v8  ;;  %v2707_v59 = vmul.f32 %v5778_v24, %v2690_v6  ;;  %v6487_v8 = vld [vmem:[#allocation63_spill] sm:$0xff] }
 0x7a3   : > { %v2826_v29 = vsel %vm1464_vm9, %v5652_v15, %v5729_v12  ;;  %v2828_v34 = vsel %vm1464_vm9, %v5729_v12, %v5652_v15  ;;  %v2798_v18 = vmul.f32 %v5798_v38, %v5664_v1  ;;  %v2799_v11 = vmul.f32 %v5801_v48, %v5660_v51 }
 0x7a4   : > { %v2713_v42 = vpop.permute.xlu1 %2712  ;;  %v5886_v13 = vpop.permute.xlu0 %3065  ;;  %v5888_v20 = vadd.f32 %v3025_v17, %v2984_v55  ;;  %v5890_v21 = vadd.f32 %v3026_v14, %v2985_v26  ;;  %v2843_v33 = vmul.f32 %v5812_v47, %v2828_v34  ;;  %v2844_v39 = vmul.f32 %v5815_v7, %v2826_v29  ;;  %v3269_v7 = vld [vmem:[%s6010_s11 + $0x10] ss:$8 sm:$0x3] }
 0x7a5   : > { %v2720_v24 = vmul.f32 %v2713_v42, %v2706_v4  ;;  %v2721_v2 = vmul.f32 %v2713_v42, %v2707_v59  ;;  %v2904_v12 = vsel %vm1503_vm10, %v5654_v57, %v5733_v54  ;;  %v2906_v51 = vsel %vm1503_vm10, %v5733_v54, %v5654_v57 }
 0x7a6   : > { %v2876_v3 = vmul.f32 %v5769_v45, %v5569_v61  ;;  %v2877_v41 = vmul.f32 %v5772_v60, %v5571_v62  ;;  %v2921_v57 = vmul.f32 %v5829_v52, %v2904_v12  ;;  %v2922_v54 = vmul.f32 %v5832_v43, %v2906_v51 }
 0x7a7   : > { %v2994_v42 = vsel %vm1659_vm1, %v5656_v10, %v5737_v58  ;;  %v2996_v61 = vsel %vm1659_vm1, %v5737_v58, %v5656_v10  ;;  %v3049_v62 = vrot.slane %v3269_v7, %v5746_v9  ;;  %v3053_v45 = vrot.slane %v3269_v7, %v5748_v46 }
 0x7a8   : > { %v2966_v56 = vmul.f32 %v5852_v25, %v5668_v53  ;;  %v2967_v6 = vmul.f32 %v5855_v49, %v5672_v23  ;;  %v3042_v10 = vsel %vm1685_vm5, %v5750_v63, %v6487_v8  ;;  %v3011_v58 = vmul.f32 %v5871_v28, %v2994_v42  ;;  %v6489_v23 = vld [vmem:[#allocation62_spill] sm:$0xff] }
 0x7a9   : > { %v2759_v32 = vpop.permute.xlu1 %2758  ;;  %v2849_v37 = vpop.permute.xlu0 %2848  ;;  %v3012_v9 = vmul.f32 %v5874_v27, %v2996_v61  ;;  %v3059_v28 = vmul.f32 %v3053_v45, %v3042_v10 }
 0x7aa   : > { %v2765_v30 = vmul.f32 %v2759_v32, %v2753_v0  ;;  %v2766_v44 = vmul.f32 %v2759_v32, %v2754_v5  ;;  %v2855_v1 = vmul.f32 %v2849_v37, %v2843_v33  ;;  %v2856_v38 = vmul.f32 %v2849_v37, %v2844_v39  ;;  %v6488_v32 = vld [vmem:[#allocation20_spill] sm:$0xff] }
 0x7ab   : > { %v3040_v0 = vsel %vm1685_vm5, %v6487_v8, %v5750_v63  ;;  %v3039_v49 = vsel %vm1685_vm5, %v6489_v23, %v6488_v32  ;;  %v3041_v4 = vsel %vm1685_vm5, %v6488_v32, %v6489_v23 }
 0x7ac   : > { %v2769_v22 = vadd.f32 %v2765_v30, %v2720_v24  ;;  %v2770_v19 = vadd.f32 %v2766_v44, %v2721_v2  ;;  %v3058_v29 = vmul.f32 %v3049_v62, %v3040_v0  ;;  %v3056_v37 = vmul.f32 %v3049_v62, %v3039_v49 }
 0x7ad   : > { %v3071_v24 = vmul.f32 %v5886_v13, %v3059_v28 }
 0x7ae   : > { %v2804_v31 = vpop.permute.xlu1 %2803  ;;  %v2927_v50 = vpop.permute.xlu0 %2926 }
 0x7af   : > { %v2810_v36 = vmul.f32 %v2804_v31, %v2798_v18  ;;  %v2811_v15 = vmul.f32 %v2804_v31, %v2799_v11  ;;  %v2933_v60 = vmul.f32 %v2927_v50, %v2921_v57  ;;  %v2934_v52 = vmul.f32 %v2927_v50, %v2922_v54 }
 0x7b0   : > { %v3057_v18 = vmul.f32 %v3053_v45, %v3041_v4  ;;  %v3070_v11 = vmul.f32 %v5886_v13, %v3058_v29  ;;  %v3075_v12 = vadd.f32 %v3071_v24, %v5890_v21  ;;  %v3099_v13 = vld [vmem:[%s6019_s20] sm:$0xff] }
 0x7b1   : > { %v2814_v48 = vadd.f32 %v2810_v36, %v2769_v22  ;;  %v2815_v47 = vadd.f32 %v2811_v15, %v2770_v19 }
 0x7b2   : > { %v3074_v15 = vadd.f32 %v3070_v11, %v5888_v20  ;;  %v3100_v20 = vld [vmem:[%s6019_s20 + $0x8] sm:$0xff] }
 0x7b3   : > { %v2859_v16 = vadd.f32 %v2855_v1, %v2814_v48  ;;  %v2860_v55 = vadd.f32 %v2856_v38, %v2815_v47  ;;  %v2882_v26 = vpop.permute.xlu1 %2881  ;;  %v3017_v46 = vpop.permute.xlu0 %3016 }
 0x7b4   : > { %v2888_v17 = vmul.f32 %v2882_v26, %v2876_v3  ;;  %v2889_v14 = vmul.f32 %v2882_v26, %v2877_v41  ;;  %v3023_v34 = vmul.f32 %v3017_v46, %v3011_v58  ;;  %v3024_v27 = vmul.f32 %v3017_v46, %v3012_v9 }
 0x7b6   : > { %v2892_v40 = vadd.f32 %v2888_v17, %v2859_v16  ;;  %v2893_v43 = vadd.f32 %v2889_v14, %v2860_v55 }
 0x7b8   : > { %v2937_v5 = vadd.f32 %v2933_v60, %v2892_v40  ;;  %v2938_v53 = vadd.f32 %v2934_v52, %v2893_v43  ;;  %v2972_v25 = vpop.permute.xlu1 %2971  ;;  %v3079_v36 = vpop.permute.xlu0 %3078  ;;  %v3115_v52 = vld [vmem:[%s6020_s21 + $0x8] sm:$0xff]  ;;  %v3114_v40 = vld [vmem:[%s6020_s21] sm:$0xff] }
 0x7b9   : > { %v2978_v59 = vmul.f32 %v2972_v25, %v2966_v56  ;;  %v2979_v63 = vmul.f32 %v2972_v25, %v2967_v6 }
 0x7bb   : > { %v2982_v30 = vadd.f32 %v2978_v59, %v2937_v5  ;;  %v2983_v44 = vadd.f32 %v2979_v63, %v2938_v53 }
 0x7bd   : > { %v3027_v2 = vadd.f32 %v3023_v34, %v2982_v30  ;;  %v3028_v33 = vadd.f32 %v3024_v27, %v2983_v44  ;;  %v3062_v39 = vpop.permute.xlu1 %3061 }
 0x7be   : > { %v3068_v31 = vmul.f32 %v3062_v39, %v3056_v37  ;;  %v3069_v35 = vmul.f32 %v3062_v39, %v3057_v18 }
 0x7c0   : > { %v3072_v22 = vadd.f32 %v3068_v31, %v3027_v2  ;;  %v3073_v19 = vadd.f32 %v3069_v35, %v3028_v33 }
 0x7c2   : > { %v3086_v51 = vadd.f32 %v3079_v36, %v3072_v22  ;;  %v3087_v1 = vadd.f32 %v3079_v36, %v3073_v19  ;;  %v3084_v38 = vpop.permute.xlu1 %3083  ;;  %v3538_v22 = vld [vmem:[%s3820_s25 + $0x10] sm:$0xff] }
 0x7c3   : > { %v3088_v48 = vadd.f32 %v3084_v38, %v3074_v15  ;;  %v3089_v47 = vadd.f32 %v3084_v38, %v3075_v12  ;;  %v3539_v15 = vld [vmem:[%s3820_s25 + $0x18] sm:$0xff] }
 0x7c4   : > { %v3090_v7 = vadd.f32 %v3087_v1, %v3086_v51 }
 0x7c5   : > { %v3093_v50 = vadd.f32 %v3089_v47, %v3088_v48 }
 0x7c6   : > { %3091 = vadd.xlane.f32.xlu1 %v3090_v7 }
 0x7c7   : > { %3094 = vadd.xlane.f32.xlu0 %v3093_v50 }
 0x853   : > { %v3092_v3 = vpop.xlane.xlu1 %3091 }
 0x854   : > { %v3097_v41 = vmul.f32 0.00390625, %v3092_v3  ;;  %v3095_v21 = vpop.xlane.xlu0 %3094 }
 0x855   : > { %v3098_v16 = vmul.f32 0.00390625, %v3095_v21 }
 0x856   : > { %v3101_v55 = vmul.f32 %v3099_v13, %v3097_v41 }
 0x857   : > { %v3102_v26 = vmul.f32 %v3100_v20, %v3098_v16 }
 0x858   : > { %v3104_v57 = vsel %vm3103_vm2, %v3101_v55, 0.0 }
 0x859   : > { %v3105_v54 = vsel %vm3103_vm2, %v3102_v26, 0.0 }
 0x85a   : > { %v3106_v17 = vadd.f32 %v3105_v54, %v3104_v57 }
 0x85c   : > { %v3107_v14 = vrot.slane %v3106_v17, 4 }
 0x85e   : > { %v3108_v42 = vadd.f32 %v3107_v14, %v3106_v17 }
 0x860   : > { %v3109_v61 = vrot.slane %v3108_v42, 2 }
 0x862   : > { %v3110_v62 = vadd.f32 %v3109_v61, %v3108_v42 }
 0x864   : > { %v3111_v45 = vrot.slane %v3110_v62, 1 }
 0x866   : > { %v3112_v60 = vadd.f32 %v3111_v45, %v3110_v62 }
 0x868   : > { %v3113_v43 = vmax.f32 %v3112_v60, 0.0 }
 0x86a   : > { %v3117_v56 = vmul.f32 %v3115_v52, %v3113_v43  ;;  %v3116_v6 = vmul.f32 %v3114_v40, %v3113_v43 }
 0x86c   : > { %v3121_v8 = vsel %vm3103_vm2, %v3117_v56, 0.0  ;;  %v3118_v0 = vsel %vm3103_vm2, %v3116_v6, 0.0 }
 0x86d   : > { %3122 = vadd.xlane.f32.xlu1 %v3121_v8  ;;  %3119 = vadd.xlane.f32.xlu0 %v3118_v0 }
 0x8fa   : > { %v3123_v10 = vpop.xlane.xlu1 %3122  ;;  %v3120_v58 = vpop.xlane.xlu0 %3119 }
 0x8fb   : > { %v3271_v9 = vmul.f32 -1.442695, %v3123_v10  ;;  %v3270_v46 = vmul.f32 -1.442695, %v3120_v58 }
 0x8fd   : > { %3514 = vpow2.f32 %v3271_v9 }
 0x8fe   : > { %3516 = vpow2.f32 %v3270_v46 }
 0x907   : > { %v3515_v5 = vpop.eup %3514 }
 0x908   : > { %v3517_v53 = vpop.eup %3516  ;;  %v3131_v25 = vadd.f32 1.0, %v3515_v5 }
 0x909   : > { %v3130_v32 = vadd.f32 1.0, %v3517_v53 }
 0x90a   : > { %3518 = vrcp.f32 %v3131_v25 }
 0x90b   : > { %3520 = vrcp.f32 %v3130_v32 }
 0x914   : > { %v3519_v23 = vpop.eup %3518 }
 0x915   : > { %v3521_v49 = vpop.eup %3520  ;;  %v3138_v4 = vmul.f32 %v3519_v23, %v3088_v48  ;;  %v3139_v59 = vmul.f32 %v3519_v23, %v3089_v47  ;;  %v3541_v48 = vld [vmem:[%s3820_s25 + $0x8] sm:$0xff] }
 0x916   : > { %v3136_v63 = vmul.f32 %v3521_v49, %v3086_v51  ;;  %v3137_v29 = vmul.f32 %v3521_v49, %v3087_v1  ;;  %v3540_v1 = vld [vmem:[%s3820_s25] sm:$0xff] }
 0x917   : > { %v3274_v28 = vmul.f32 -1.442695, %v3138_v4  ;;  %v3275_v34 = vmul.f32 -1.442695, %v3139_v59 }
 0x918   : > { %v3272_v27 = vmul.f32 -1.442695, %v3136_v63  ;;  %v3273_v30 = vmul.f32 -1.442695, %v3137_v29 }
 0x919   : > { %3522 = vpow2.f32 %v3274_v28 }
 0x91a   : > { %3524 = vpow2.f32 %v3275_v34 }
 0x91b   : > { %3526 = vpow2.f32 %v3272_v27 }
 0x91c   : > { %3528 = vpow2.f32 %v3273_v30 }
 0x923   : > { %v3523_v44 = vpop.eup %3522 }
 0x924   : > { %v3525_v37 = vpop.eup %3524  ;;  %v3154_v18 = vadd.f32 1.0, %v3523_v44 }
 0x925   : > { %v3527_v11 = vpop.eup %3526  ;;  %v3155_v24 = vadd.f32 1.0, %v3525_v37 }
 0x926   : > { %v3529_v2 = vpop.eup %3528  ;;  %3530 = vrcp.f32 %v3154_v18  ;;  %v3152_v33 = vadd.f32 1.0, %v3527_v11 }
 0x927   : > { %3532 = vrcp.f32 %v3155_v24  ;;  %v3153_v39 = vadd.f32 1.0, %v3529_v2 }
 0x928   : > { %3534 = vrcp.f32 %v3152_v33 }
 0x929   : > { %3536 = vrcp.f32 %v3153_v39 }
 0x930   : > { %v3531_v31 = vpop.eup %3530 }
 0x931   : > { %v3533_v35 = vpop.eup %3532  ;;  %v3166_v19 = vadd.f32 %v3538_v22, %v3531_v31 }
 0x932   : > { %v3535_v36 = vpop.eup %3534  ;;  %v3167_v12 = vadd.f32 %v3539_v15, %v3533_v35 }
 0x933   : > { %v3537_v51 = vpop.eup %3536  ;;  %3170 = vst [vmem:[%s698_s7 + $0x10] sm:$0xff] %v3166_v19  ;;  %v3164_v38 = vadd.f32 %v3540_v1, %v3535_v36 }
 0x934   : > { %3171 = vst [vmem:[%s698_s7 + $0x18] sm:$0xff] %v3167_v12  ;;  %v3165_v47 = vadd.f32 %v3541_v48, %v3537_v51 }
 0x935   : > { %3168 = vst [vmem:[%s698_s7] sm:$0xff] %v3164_v38 }
 0x936   : > { %3169 = vst [vmem:[%s698_s7 + $0x8] sm:$0xff] %v3165_v47 }
 0x937 PF: > { %s6491_s28 = sld [smem:[#allocation5_spill]] }
 0x93d   : > { %s33_s3 = sadd.s32 1, %s6491_s28  }
 0x93e   : > { %p30_p3 = scmp.ge.s32.totalorder %s33_s3, 4  }
 0x940   :  { %32 = sbr.rel (!%p30_p3) target bundleno = 13 (0xd), region = 199 }
 0x947   :  { %3193 = vsyncpa [#allocation3], 1 }
 0x948   :  { %3195 = vsyncpa [#allocation3 + $0x1], 1 }

</bundles_post_ra>
